<compile_context>
chip_gen: v6e
topology: v6e:2x2x1
jax: 0.10.0
libtpu: 0.0.40
codegen_flags: <defaults>
</compile_context>

<pallas_src>
import jax
import jax.numpy as jnp
from jax.experimental import pallas as pl
from jax.experimental.pallas import tpu as pltpu

N = 16              # number of graph nodes
IN_CH = 32          # in_channels
OUT_CH = 8          # out_channels (classes)
HEADS = 4
C = 128             # per-head channels
HC = HEADS * C      # 512 (concat=True)
LOGIT_PAD = 128     # lane-aligned extra block of Wcat carrying folded att vectors
DST_OFF = 0         # dst-logit rows (after transpose) inside the pad block
SRC_OFF = 8         # src-logit rows; 8 keeps the post-transpose slice sublane-aligned
OUT_PAD = 128       # padded classifier width (lane-dense output store)
PAD_BIAS = -1e9     # bias of padded classifier columns (exp() underflows to 0)
NEG_SLOPE = 0.2     # GATConv leaky_relu slope
BN_EPS = 1e-5
NEG_INF = -1e30


def _elu(x):
    # F.elu, alpha=1
    return jnp.where(x > 0, x, jnp.exp(jnp.minimum(x, 0.0)) - 1.0)


# ---------------------------------------------------------------------------
# Single fused kernel: 4x (GATConv + ELU + BatchNorm) + MLP head + log_softmax
# ---------------------------------------------------------------------------
def fused_gat_kernel(x_ref, maskb_ref,
                     w1_ref, v1_ref, w2_ref, v2_ref, w3_ref, v3_ref, w4_ref, v4_ref,
                     mw1_ref, mb1_ref, mw2_ref, mb2_ref, mw3_ref, mb3_ref,
                     out_ref, pcat_ref, bd_ref):
    maskb = maskb_ref[...]                       # [N, N] additive: 0 edge / -1e30 non-edge
    x = x_ref[...]                               # [N, Fin] f32

    # Off-diagonal blocks of the block-diagonal aggregation operand are zero in
    # every layer -> zero the scratch exactly once.
    bd_ref[...] = jnp.zeros_like(bd_ref)

    def gat_layer(x, w_ref, v_ref):
        xb = x.astype(jnp.bfloat16)
        # ONE MXU pass: [N, Fin] @ [Fin, HC+128] -> transformed features (cols 0:HC)
        # plus both folded attention logits (cols HC:HC+128). bf16 x bf16, f32 acc.
        xw_all = jnp.dot(xb, w_ref[...], preferred_element_type=jnp.float32)
        xw16 = xw_all[:, :HC].astype(jnp.bfloat16)           # [N, HC]
        logits_t = xw_all[:, HC:].T                          # [128, N] (tile-aligned src)
        adst_t = logits_t[DST_OFF:DST_OFF + HEADS]           # [H, N]
        asrc_t = logits_t[SRC_OFF:SRC_OFF + HEADS]           # [H, N]

        # stacked per-head logits: e[h, i, j] = adst[i, h] + asrc[j, h]
        e = adst_t[:, :, None] + asrc_t[:, None, :]          # [H, N, N]
        e = jnp.where(e > 0, e, NEG_SLOPE * e)               # leaky_relu
        e = e + maskb[None, :, :]                            # kill non-edges
        e = e - jnp.max(e, axis=-1, keepdims=True)
        p = jnp.exp(e)
        p = p * pl.reciprocal(jnp.sum(p, axis=-1, keepdims=True), approx=False)

        # ONE aggregation matmul: P_cat [N, H*N] @ block_diag(xw_h) [H*N, HC].
        # Diagonal slabs of bd_ref are 16x128 bf16 tiles at aligned offsets.
        for h in range(HEADS):
            pcat_ref[:, h * N:(h + 1) * N] = p[h]
            bd_ref[h * N:(h + 1) * N, h * C:(h + 1) * C] = xw16[:, h * C:(h + 1) * C]
        agg = jnp.dot(pcat_ref[...].astype(jnp.bfloat16), bd_ref[...],
                      preferred_element_type=jnp.float32)    # [N, HC] f32

        o = agg + v_ref[0:1, :]                              # + conv bias
        o = _elu(o)                                          # F.elu
        return o * v_ref[1:2, :] + v_ref[2:3, :]             # BatchNorm (eval, folded)

    x = gat_layer(x, w1_ref, v1_ref)
    x = gat_layer(x, w2_ref, v2_ref)
    x = gat_layer(x, w3_ref, v3_ref)
    x = gat_layer(x, w4_ref, v4_ref)

    # MLP head: lin1 -> relu -> [dropout] -> lin2 -> relu -> lin3 -> log_softmax
    h1 = jnp.dot(x.astype(jnp.bfloat16), mw1_ref[...],
                 preferred_element_type=jnp.float32) + mb1_ref[...]
    h1 = jnp.maximum(h1, 0.0)
    # TODO(synk): F.dropout(p=0.5) implemented for eval mode only (identity).
    h2 = jnp.dot(h1.astype(jnp.bfloat16), mw2_ref[...],
                 preferred_element_type=jnp.float32) + mb2_ref[...]
    h2 = jnp.maximum(h2, 0.0)
    # lin3 padded to 128 lanes; padded columns get -1e9 bias -> exp underflows to 0,
    # so the log_softmax over the 8 real classes is exact.
    logits = jnp.dot(h2.astype(jnp.bfloat16), mw3_ref[...],
                     preferred_element_type=jnp.float32) + mb3_ref[...]
    z = logits - jnp.max(logits, axis=-1, keepdims=True)
    out_ref[...] = z - jnp.log(jnp.sum(jnp.exp(z), axis=-1, keepdims=True))


def gat_model_forward(x, maskb, prep):
    (w1, v1), (w2, v2), (w3, v3), (w4, v4) = prep["gat"]
    mw1, mb1, mw2, mb2, mw3, mb3 = prep["mlp"]
    args = (x, maskb,
            w1, v1, w2, v2, w3, v3, w4, v4,
            mw1, mb1, mw2, mb2, mw3, mb3)
    out_padded = pl.pallas_call(
        fused_gat_kernel,
        out_shape=jax.ShapeDtypeStruct((N, OUT_PAD), jnp.float32),
        scratch_shapes=[
            pltpu.VMEM((N, HEADS * N), jnp.float32),       # P_cat staging
            pltpu.VMEM((HEADS * N, HC), jnp.bfloat16),     # block-diagonal xw
        ],
    )(*args)
    return out_padded[:, :OUT_CH]


# ---------------------------------------------------------------------------
# Parameter init (deterministic, synthetic) and one-time folding / prep
# ---------------------------------------------------------------------------
def init_gat_params(key, fin):
    ks = jax.random.split(key, 8)
    W = jax.random.normal(ks[0], (fin, HC), jnp.float32) / jnp.sqrt(float(fin))
    att_src = 0.1 * jax.random.normal(ks[1], (HEADS, C), jnp.float32)
    att_dst = 0.1 * jax.random.normal(ks[2], (HEADS, C), jnp.float32)
    bias = 0.01 * jax.random.normal(ks[3], (HC,), jnp.float32)
    gamma = 1.0 + 0.1 * jax.random.normal(ks[4], (HC,), jnp.float32)
    beta = 0.1 * jax.random.normal(ks[5], (HC,), jnp.float32)
    rmean = 0.1 * jax.random.normal(ks[6], (HC,), jnp.float32)
    rvar = 1.0 + 0.1 * jax.random.uniform(ks[7], (HC,), jnp.float32)
    return (W, att_src, att_dst, bias, gamma, beta, rmean, rvar)


def init_lin_params(key, fin, fout):
    k1, k2 = jax.random.split(key)
    W = jax.random.normal(k1, (fin, fout), jnp.float32) / jnp.sqrt(float(fin))
    b = 0.01 * jax.random.normal(k2, (fout,), jnp.float32)
    return (W, b)


def prepare_params(params):
    """One-time parameter folding (kept OUT of the forward path)."""
    gat_prep = []
    for (W, att_src, att_dst, bias, gamma, beta, rmean, rvar) in params["gat"]:
        fin = W.shape[0]
        Wr = W.reshape(fin, HEADS, C)
        m_dst = jnp.einsum('fhc,hc->fh', Wr, att_dst)          # [Fin, H]
        m_src = jnp.einsum('fhc,hc->fh', Wr, att_src)          # [Fin, H]
        att_block = jnp.zeros((fin, LOGIT_PAD), jnp.float32)
        att_block = att_block.at[:, DST_OFF:DST_OFF + HEADS].set(m_dst)
        att_block = att_block.at[:, SRC_OFF:SRC_OFF + HEADS].set(m_src)
        wcat = jnp.concatenate([W, att_block], axis=1).astype(jnp.bfloat16)  # [Fin, HC+128]
        bn_scale = gamma / jnp.sqrt(rvar + BN_EPS)
        bn_shift = beta - rmean * bn_scale
        vecs = jnp.stack([bias, bn_scale, bn_shift], axis=0)   # [3, HC] f32
        gat_prep.append((wcat, vecs))

    (W1, b1), (W2, b2), (W3, b3) = params["lin"]
    W3p = jnp.zeros((W3.shape[0], OUT_PAD), jnp.float32).at[:, :OUT_CH].set(W3)
    b3p = jnp.full((OUT_PAD,), PAD_BIAS, jnp.float32).at[:OUT_CH].set(b3)
    mlp = (W1.astype(jnp.bfloat16), b1.reshape(1, -1).astype(jnp.float32),
           W2.astype(jnp.bfloat16), b2.reshape(1, -1).astype(jnp.float32),
           W3p.astype(jnp.bfloat16), b3p.reshape(1, -1).astype(jnp.float32))
    return {"gat": gat_prep, "mlp": mlp}


if __name__ == "__main__":
    key = jax.random.PRNGKey(0)
    k_x, k_p = jax.random.split(key)

    # node features
    x = jax.random.normal(k_x, (N, IN_CH), jnp.float32)

    # deterministic small graph: bidirectional ring + a few chords
    src, dst = [], []
    for i in range(N):
        j = (i + 1) % N
        src += [i, j]
        dst += [j, i]
    for a, b in [(0, 5), (3, 11), (7, 14), (2, 9)]:
        src += [a, b]
        dst += [b, a]
    edge_index = jnp.array([src, dst], dtype=jnp.int32)   # [2, E], row0=src, row1=dst
    batch = jnp.zeros((N,), jnp.int32)                    # unused in forward (no pooling)

    # dense adjacency mask[dst, src] + self loops (GATConv add_self_loops=True),
    # folded once into an additive bias (0 on edges, -1e30 elsewhere).
    # Self-loops guarantee every softmax row has at least one live entry.
    mask = jnp.zeros((N, N), jnp.float32).at[edge_index[1], edge_index[0]].set(1.0)
    mask = jnp.maximum(mask, jnp.eye(N, dtype=jnp.float32))
    maskb = jnp.where(mask > 0, 0.0, NEG_INF).astype(jnp.float32)

    # parameters (synthetic, deterministic) + one-time prep/folding
    kp = jax.random.split(k_p, 7)
    params = {
        "gat": [
            init_gat_params(kp[0], IN_CH),
            init_gat_params(kp[1], HC),
            init_gat_params(kp[2], HC),
            init_gat_params(kp[3], HC),
        ],
        "lin": [
            init_lin_params(kp[4], HC, 128),
            init_lin_params(kp[5], 128, 64),
            init_lin_params(kp[6], 64, OUT_CH),
        ],
    }
    prep = prepare_params(params)

    out = gat_model_forward(x, maskb, prep)
    out = jax.block_until_ready(out)

    assert out.shape == (N, OUT_CH), out.shape
    assert bool(jnp.all(jnp.isfinite(out)))
    # log_softmax rows should sum to ~1 in prob space
    assert bool(jnp.allclose(jnp.sum(jnp.exp(out), axis=-1), 1.0, atol=1e-3))
    print("KERNEL_OK")
</pallas_src>

<mosaic_0001>
module attributes {stable_mosaic.version = 11 : i64} {
  func.func @fused_gat_kernel(%arg0: memref<16x32xf32, #tpu.memory_space<vmem>>, %arg1: memref<16x16xf32, #tpu.memory_space<vmem>>, %arg2: memref<32x640xbf16, #tpu.memory_space<vmem>>, %arg3: memref<3x512xf32, #tpu.memory_space<vmem>>, %arg4: memref<512x640xbf16, #tpu.memory_space<vmem>>, %arg5: memref<3x512xf32, #tpu.memory_space<vmem>>, %arg6: memref<512x640xbf16, #tpu.memory_space<vmem>>, %arg7: memref<3x512xf32, #tpu.memory_space<vmem>>, %arg8: memref<512x640xbf16, #tpu.memory_space<vmem>>, %arg9: memref<3x512xf32, #tpu.memory_space<vmem>>, %arg10: memref<512x128xbf16, #tpu.memory_space<vmem>>, %arg11: memref<1x128xf32, #tpu.memory_space<vmem>>, %arg12: memref<128x64xbf16, #tpu.memory_space<vmem>>, %arg13: memref<1x64xf32, #tpu.memory_space<vmem>>, %arg14: memref<64x128xbf16, #tpu.memory_space<vmem>>, %arg15: memref<1x128xf32, #tpu.memory_space<vmem>>, %arg16: memref<16x128xf32, #tpu.memory_space<vmem>>, %arg17: memref<16x64xf32, #tpu.memory_space<vmem>>, %arg18: memref<64x512xbf16, #tpu.memory_space<vmem>>) attributes {dimension_semantics = [], scalar_prefetch = 0 : i64, scratch_operands = 2 : i64, tpu.core_type = #tpu.core_type<tc>} {
    %c0 = arith.constant 0 : index
    %c0_0 = arith.constant 0 : index
    %0 = vector.load %arg1[%c0, %c0_0] : memref<16x16xf32, #tpu.memory_space<vmem>>, vector<16x16xf32>
    %c0_1 = arith.constant 0 : index
    %c0_2 = arith.constant 0 : index
    %1 = vector.load %arg0[%c0_1, %c0_2] : memref<16x32xf32, #tpu.memory_space<vmem>>, vector<16x32xf32>
    %cst = arith.constant 0.000000e+00 : bf16
    %2 = vector.broadcast %cst : bf16 to vector<64x512xbf16>
    %c0_3 = arith.constant 0 : index
    %c0_4 = arith.constant 0 : index
    %3 = vector.load %arg18[%c0_3, %c0_4] : memref<64x512xbf16, #tpu.memory_space<vmem>>, vector<64x512xbf16>
    tpu.vector_store %arg18[%c0_3, %c0_4], %2 {strides = array<i32>} : memref<64x512xbf16, #tpu.memory_space<vmem>>, vector<64x512xbf16>,
    %4 = arith.truncf %1 : vector<16x32xf32> to vector<16x32xbf16>
    %c0_5 = arith.constant 0 : index
    %c0_6 = arith.constant 0 : index
    %5 = vector.load %arg2[%c0_5, %c0_6] : memref<32x640xbf16, #tpu.memory_space<vmem>>, vector<32x640xbf16>
    %cst_7 = arith.constant dense<0.000000e+00> : vector<16x640xf32>
    %6 = tpu.matmul %4, %5, %cst_7 {dimension_numbers = #tpu.dot_dimension_numbers<[1], [0], [0], [1], [0, 0, 1, 1], [], []>} : vector<16x32xbf16>, vector<32x640xbf16>, vector<16x640xf32> -> vector<16x640xf32>
    %7 = vector.extract_strided_slice %6 {offsets = [0, 0], sizes = [16, 512], strides = [1, 1]} : vector<16x640xf32> to vector<16x512xf32>
    %8 = arith.truncf %7 : vector<16x512xf32> to vector<16x512xbf16>
    %9 = vector.extract_strided_slice %6 {offsets = [0, 512], sizes = [16, 128], strides = [1, 1]} : vector<16x640xf32> to vector<16x128xf32>
    %10 = tpu.transpose %9, [1, 0] : vector<16x128xf32> -> vector<128x16xf32>
    %11 = vector.extract_strided_slice %10 {offsets = [0, 0], sizes = [4, 16], strides = [1, 1]} : vector<128x16xf32> to vector<4x16xf32>
    %12 = vector.extract_strided_slice %10 {offsets = [8, 0], sizes = [4, 16], strides = [1, 1]} : vector<128x16xf32> to vector<4x16xf32>
    %13 = vector.shape_cast %11 : vector<4x16xf32> to vector<4x16x1xf32>
    %14 = vector.shape_cast %12 : vector<4x16xf32> to vector<4x1x16xf32>
    %15 = vector.broadcast %13 : vector<4x16x1xf32> to vector<4x16x16xf32>
    %16 = vector.broadcast %14 : vector<4x1x16xf32> to vector<4x16x16xf32>
    %17 = arith.addf %15, %16 : vector<4x16x16xf32>
    %cst_8 = arith.constant 0.000000e+00 : f32
    %18 = vector.broadcast %cst_8 : f32 to vector<4x16x16xf32>
    %19 = arith.cmpf ogt, %17, %18 : vector<4x16x16xf32>
    %cst_9 = arith.constant 2.000000e-01 : f32
    %20 = vector.broadcast %cst_9 : f32 to vector<4x16x16xf32>
    %21 = arith.mulf %20, %17 : vector<4x16x16xf32>
    %22 = arith.select %19, %17, %21 : vector<4x16x16xi1>, vector<4x16x16xf32>
    %23 = vector.shape_cast %0 : vector<16x16xf32> to vector<1x16x16xf32>
    %24 = vector.broadcast %23 : vector<1x16x16xf32> to vector<4x16x16xf32>
    %25 = arith.addf %22, %24 : vector<4x16x16xf32>
    %cst_10 = arith.constant dense<0xFF800000> : vector<4x16xf32>
    %26 = vector.multi_reduction <maximumf>, %25, %cst_10 [2] : vector<4x16x16xf32> to vector<4x16xf32>
    %27 = vector.shape_cast %26 : vector<4x16xf32> to vector<4x16x1xf32>
    %28 = vector.broadcast %27 : vector<4x16x1xf32> to vector<4x16x16xf32>
    %29 = arith.subf %25, %28 : vector<4x16x16xf32>
    %30 = math.exp %29 : vector<4x16x16xf32>
    %cst_11 = arith.constant dense<0.000000e+00> : vector<4x16xf32>
    %31 = vector.multi_reduction <add>, %30, %cst_11 [2] : vector<4x16x16xf32> to vector<4x16xf32>
    %32 = vector.shape_cast %31 : vector<4x16xf32> to vector<4x16x1xf32>
    %33 = tpu.reciprocal %32 : vector<4x16x1xf32> -> vector<4x16x1xf32>
    %34 = vector.broadcast %33 : vector<4x16x1xf32> to vector<4x16x16xf32>
    %35 = arith.mulf %30, %34 : vector<4x16x16xf32>
    %36 = vector.extract_strided_slice %35 {offsets = [0, 0, 0], sizes = [1, 16, 16], strides = [1, 1, 1]} : vector<4x16x16xf32> to vector<1x16x16xf32>
    %37 = vector.shape_cast %36 : vector<1x16x16xf32> to vector<16x16xf32>
    %c0_12 = arith.constant 0 : index
    %c0_13 = arith.constant 0 : index
    %38 = vector.load %arg17[%c0_12, %c0_13] : memref<16x64xf32, #tpu.memory_space<vmem>>, vector<16x16xf32>
    tpu.vector_store %arg17[%c0_12, %c0_13], %37 {strides = array<i32>} : memref<16x64xf32, #tpu.memory_space<vmem>>, vector<16x16xf32>,
    %39 = vector.extract_strided_slice %8 {offsets = [0, 0], sizes = [16, 128], strides = [1, 1]} : vector<16x512xbf16> to vector<16x128xbf16>
    %c0_14 = arith.constant 0 : index
    %c0_15 = arith.constant 0 : index
    %40 = vector.load %arg18[%c0_14, %c0_15] : memref<64x512xbf16, #tpu.memory_space<vmem>>, vector<16x128xbf16>
    tpu.vector_store %arg18[%c0_14, %c0_15], %39 {strides = array<i32>} : memref<64x512xbf16, #tpu.memory_space<vmem>>, vector<16x128xbf16>,
    %41 = vector.extract_strided_slice %35 {offsets = [1, 0, 0], sizes = [1, 16, 16], strides = [1, 1, 1]} : vector<4x16x16xf32> to vector<1x16x16xf32>
    %42 = vector.shape_cast %41 : vector<1x16x16xf32> to vector<16x16xf32>
    %c0_16 = arith.constant 0 : index
    %c16 = arith.constant 16 : index
    %43 = vector.load %arg17[%c0_16, %c16] : memref<16x64xf32, #tpu.memory_space<vmem>>, vector<16x16xf32>
    tpu.vector_store %arg17[%c0_16, %c16], %42 {strides = array<i32>} : memref<16x64xf32, #tpu.memory_space<vmem>>, vector<16x16xf32>,
    %44 = vector.extract_strided_slice %8 {offsets = [0, 128], sizes = [16, 128], strides = [1, 1]} : vector<16x512xbf16> to vector<16x128xbf16>
    %c16_17 = arith.constant 16 : index
    %c128 = arith.constant 128 : index
    %45 = vector.load %arg18[%c16_17, %c128] : memref<64x512xbf16, #tpu.memory_space<vmem>>, vector<16x128xbf16>
    tpu.vector_store %arg18[%c16_17, %c128], %44 {strides = array<i32>} : memref<64x512xbf16, #tpu.memory_space<vmem>>, vector<16x128xbf16>,
    %46 = vector.extract_strided_slice %35 {offsets = [2, 0, 0], sizes = [1, 16, 16], strides = [1, 1, 1]} : vector<4x16x16xf32> to vector<1x16x16xf32>
    %47 = vector.shape_cast %46 : vector<1x16x16xf32> to vector<16x16xf32>
    %c0_18 = arith.constant 0 : index
    %c32 = arith.constant 32 : index
    %48 = vector.load %arg17[%c0_18, %c32] : memref<16x64xf32, #tpu.memory_space<vmem>>, vector<16x16xf32>
    tpu.vector_store %arg17[%c0_18, %c32], %47 {strides = array<i32>} : memref<16x64xf32, #tpu.memory_space<vmem>>, vector<16x16xf32>,
    %49 = vector.extract_strided_slice %8 {offsets = [0, 256], sizes = [16, 128], strides = [1, 1]} : vector<16x512xbf16> to vector<16x128xbf16>
    %c32_19 = arith.constant 32 : index
    %c256 = arith.constant 256 : index
    %50 = vector.load %arg18[%c32_19, %c256] : memref<64x512xbf16, #tpu.memory_space<vmem>>, vector<16x128xbf16>
    tpu.vector_store %arg18[%c32_19, %c256], %49 {strides = array<i32>} : memref<64x512xbf16, #tpu.memory_space<vmem>>, vector<16x128xbf16>,
    %51 = vector.extract_strided_slice %35 {offsets = [3, 0, 0], sizes = [1, 16, 16], strides = [1, 1, 1]} : vector<4x16x16xf32> to vector<1x16x16xf32>
    %52 = vector.shape_cast %51 : vector<1x16x16xf32> to vector<16x16xf32>
    %c0_20 = arith.constant 0 : index
    %c48 = arith.constant 48 : index
    %53 = vector.load %arg17[%c0_20, %c48] : memref<16x64xf32, #tpu.memory_space<vmem>>, vector<16x16xf32>
    tpu.vector_store %arg17[%c0_20, %c48], %52 {strides = array<i32>} : memref<16x64xf32, #tpu.memory_space<vmem>>, vector<16x16xf32>,
    %54 = vector.extract_strided_slice %8 {offsets = [0, 384], sizes = [16, 128], strides = [1, 1]} : vector<16x512xbf16> to vector<16x128xbf16>
    %c48_21 = arith.constant 48 : index
    %c384 = arith.constant 384 : index
    %55 = vector.load %arg18[%c48_21, %c384] : memref<64x512xbf16, #tpu.memory_space<vmem>>, vector<16x128xbf16>
    tpu.vector_store %arg18[%c48_21, %c384], %54 {strides = array<i32>} : memref<64x512xbf16, #tpu.memory_space<vmem>>, vector<16x128xbf16>,
    %c0_22 = arith.constant 0 : index
    %c0_23 = arith.constant 0 : index
    %56 = vector.load %arg17[%c0_22, %c0_23] : memref<16x64xf32, #tpu.memory_space<vmem>>, vector<16x64xf32>
    %57 = arith.truncf %56 : vector<16x64xf32> to vector<16x64xbf16>
    %c0_24 = arith.constant 0 : index
    %c0_25 = arith.constant 0 : index
    %58 = vector.load %arg18[%c0_24, %c0_25] : memref<64x512xbf16, #tpu.memory_space<vmem>>, vector<64x512xbf16>
    %cst_26 = arith.constant dense<0.000000e+00> : vector<16x512xf32>
    %59 = tpu.matmul %57, %58, %cst_26 {dimension_numbers = #tpu.dot_dimension_numbers<[1], [0], [0], [1], [0, 0, 1, 1], [], []>} : vector<16x64xbf16>, vector<64x512xbf16>, vector<16x512xf32> -> vector<16x512xf32>
    %c0_27 = arith.constant 0 : index
    %c0_28 = arith.constant 0 : index
    %60 = vector.load %arg3[%c0_27, %c0_28] : memref<3x512xf32, #tpu.memory_space<vmem>>, vector<1x512xf32>
    %61 = vector.broadcast %60 : vector<1x512xf32> to vector<16x512xf32>
    %62 = arith.addf %59, %61 : vector<16x512xf32>
    %cst_29 = arith.constant 0.000000e+00 : f32
    %63 = vector.broadcast %cst_29 : f32 to vector<16x512xf32>
    %64 = arith.cmpf ogt, %62, %63 : vector<16x512xf32>
    %cst_30 = arith.constant 0.000000e+00 : f32
    %65 = vector.broadcast %cst_30 : f32 to vector<16x512xf32>
    %66 = arith.minimumf %62, %65 : vector<16x512xf32>
    %67 = math.exp %66 : vector<16x512xf32>
    %cst_31 = arith.constant 1.000000e+00 : f32
    %68 = vector.broadcast %cst_31 : f32 to vector<16x512xf32>
    %69 = arith.subf %67, %68 : vector<16x512xf32>
    %70 = arith.select %64, %62, %69 : vector<16x512xi1>, vector<16x512xf32>
    %c1 = arith.constant 1 : index
    %c0_32 = arith.constant 0 : index
    %71 = vector.load %arg3[%c1, %c0_32] : memref<3x512xf32, #tpu.memory_space<vmem>>, vector<1x512xf32>
    %72 = vector.broadcast %71 : vector<1x512xf32> to vector<16x512xf32>
    %73 = arith.mulf %70, %72 : vector<16x512xf32>
    %c2 = arith.constant 2 : index
    %c0_33 = arith.constant 0 : index
    %74 = vector.load %arg3[%c2, %c0_33] : memref<3x512xf32, #tpu.memory_space<vmem>>, vector<1x512xf32>
    %75 = vector.broadcast %74 : vector<1x512xf32> to vector<16x512xf32>
    %76 = arith.addf %73, %75 : vector<16x512xf32>
    %77 = arith.truncf %76 : vector<16x512xf32> to vector<16x512xbf16>
    %c0_34 = arith.constant 0 : index
    %c0_35 = arith.constant 0 : index
    %78 = vector.load %arg4[%c0_34, %c0_35] : memref<512x640xbf16, #tpu.memory_space<vmem>>, vector<512x640xbf16>
    %cst_36 = arith.constant dense<0.000000e+00> : vector<16x640xf32>
    %79 = tpu.matmul %77, %78, %cst_36 {dimension_numbers = #tpu.dot_dimension_numbers<[1], [0], [0], [1], [0, 0, 1, 1], [], []>} : vector<16x512xbf16>, vector<512x640xbf16>, vector<16x640xf32> -> vector<16x640xf32>
    %80 = vector.extract_strided_slice %79 {offsets = [0, 0], sizes = [16, 512], strides = [1, 1]} : vector<16x640xf32> to vector<16x512xf32>
    %81 = arith.truncf %80 : vector<16x512xf32> to vector<16x512xbf16>
    %82 = vector.extract_strided_slice %79 {offsets = [0, 512], sizes = [16, 128], strides = [1, 1]} : vector<16x640xf32> to vector<16x128xf32>
    %83 = tpu.transpose %82, [1, 0] : vector<16x128xf32> -> vector<128x16xf32>
    %84 = vector.extract_strided_slice %83 {offsets = [0, 0], sizes = [4, 16], strides = [1, 1]} : vector<128x16xf32> to vector<4x16xf32>
    %85 = vector.extract_strided_slice %83 {offsets = [8, 0], sizes = [4, 16], strides = [1, 1]} : vector<128x16xf32> to vector<4x16xf32>
    %86 = vector.shape_cast %84 : vector<4x16xf32> to vector<4x16x1xf32>
    %87 = vector.shape_cast %85 : vector<4x16xf32> to vector<4x1x16xf32>
    %88 = vector.broadcast %86 : vector<4x16x1xf32> to vector<4x16x16xf32>
    %89 = vector.broadcast %87 : vector<4x1x16xf32> to vector<4x16x16xf32>
    %90 = arith.addf %88, %89 : vector<4x16x16xf32>
    %cst_37 = arith.constant 0.000000e+00 : f32
    %91 = vector.broadcast %cst_37 : f32 to vector<4x16x16xf32>
    %92 = arith.cmpf ogt, %90, %91 : vector<4x16x16xf32>
    %cst_38 = arith.constant 2.000000e-01 : f32
    %93 = vector.broadcast %cst_38 : f32 to vector<4x16x16xf32>
    %94 = arith.mulf %93, %90 : vector<4x16x16xf32>
    %95 = arith.select %92, %90, %94 : vector<4x16x16xi1>, vector<4x16x16xf32>
    %96 = vector.shape_cast %0 : vector<16x16xf32> to vector<1x16x16xf32>
    %97 = vector.broadcast %96 : vector<1x16x16xf32> to vector<4x16x16xf32>
    %98 = arith.addf %95, %97 : vector<4x16x16xf32>
    %cst_39 = arith.constant dense<0xFF800000> : vector<4x16xf32>
    %99 = vector.multi_reduction <maximumf>, %98, %cst_39 [2] : vector<4x16x16xf32> to vector<4x16xf32>
    %100 = vector.shape_cast %99 : vector<4x16xf32> to vector<4x16x1xf32>
    %101 = vector.broadcast %100 : vector<4x16x1xf32> to vector<4x16x16xf32>
    %102 = arith.subf %98, %101 : vector<4x16x16xf32>
    %103 = math.exp %102 : vector<4x16x16xf32>
    %cst_40 = arith.constant dense<0.000000e+00> : vector<4x16xf32>
    %104 = vector.multi_reduction <add>, %103, %cst_40 [2] : vector<4x16x16xf32> to vector<4x16xf32>
    %105 = vector.shape_cast %104 : vector<4x16xf32> to vector<4x16x1xf32>
    %106 = tpu.reciprocal %105 : vector<4x16x1xf32> -> vector<4x16x1xf32>
    %107 = vector.broadcast %106 : vector<4x16x1xf32> to vector<4x16x16xf32>
    %108 = arith.mulf %103, %107 : vector<4x16x16xf32>
    %109 = vector.extract_strided_slice %108 {offsets = [0, 0, 0], sizes = [1, 16, 16], strides = [1, 1, 1]} : vector<4x16x16xf32> to vector<1x16x16xf32>
    %110 = vector.shape_cast %109 : vector<1x16x16xf32> to vector<16x16xf32>
    %c0_41 = arith.constant 0 : index
    %c0_42 = arith.constant 0 : index
    %111 = vector.load %arg17[%c0_41, %c0_42] : memref<16x64xf32, #tpu.memory_space<vmem>>, vector<16x16xf32>
    tpu.vector_store %arg17[%c0_41, %c0_42], %110 {strides = array<i32>} : memref<16x64xf32, #tpu.memory_space<vmem>>, vector<16x16xf32>,
    %112 = vector.extract_strided_slice %81 {offsets = [0, 0], sizes = [16, 128], strides = [1, 1]} : vector<16x512xbf16> to vector<16x128xbf16>
    %c0_43 = arith.constant 0 : index
    %c0_44 = arith.constant 0 : index
    %113 = vector.load %arg18[%c0_43, %c0_44] : memref<64x512xbf16, #tpu.memory_space<vmem>>, vector<16x128xbf16>
    tpu.vector_store %arg18[%c0_43, %c0_44], %112 {strides = array<i32>} : memref<64x512xbf16, #tpu.memory_space<vmem>>, vector<16x128xbf16>,
    %114 = vector.extract_strided_slice %108 {offsets = [1, 0, 0], sizes = [1, 16, 16], strides = [1, 1, 1]} : vector<4x16x16xf32> to vector<1x16x16xf32>
    %115 = vector.shape_cast %114 : vector<1x16x16xf32> to vector<16x16xf32>
    %c0_45 = arith.constant 0 : index
    %c16_46 = arith.constant 16 : index
    %116 = vector.load %arg17[%c0_45, %c16_46] : memref<16x64xf32, #tpu.memory_space<vmem>>, vector<16x16xf32>
    tpu.vector_store %arg17[%c0_45, %c16_46], %115 {strides = array<i32>} : memref<16x64xf32, #tpu.memory_space<vmem>>, vector<16x16xf32>,
    %117 = vector.extract_strided_slice %81 {offsets = [0, 128], sizes = [16, 128], strides = [1, 1]} : vector<16x512xbf16> to vector<16x128xbf16>
    %c16_47 = arith.constant 16 : index
    %c128_48 = arith.constant 128 : index
    %118 = vector.load %arg18[%c16_47, %c128_48] : memref<64x512xbf16, #tpu.memory_space<vmem>>, vector<16x128xbf16>
    tpu.vector_store %arg18[%c16_47, %c128_48], %117 {strides = array<i32>} : memref<64x512xbf16, #tpu.memory_space<vmem>>, vector<16x128xbf16>,
    %119 = vector.extract_strided_slice %108 {offsets = [2, 0, 0], sizes = [1, 16, 16], strides = [1, 1, 1]} : vector<4x16x16xf32> to vector<1x16x16xf32>
    %120 = vector.shape_cast %119 : vector<1x16x16xf32> to vector<16x16xf32>
    %c0_49 = arith.constant 0 : index
    %c32_50 = arith.constant 32 : index
    %121 = vector.load %arg17[%c0_49, %c32_50] : memref<16x64xf32, #tpu.memory_space<vmem>>, vector<16x16xf32>
    tpu.vector_store %arg17[%c0_49, %c32_50], %120 {strides = array<i32>} : memref<16x64xf32, #tpu.memory_space<vmem>>, vector<16x16xf32>,
    %122 = vector.extract_strided_slice %81 {offsets = [0, 256], sizes = [16, 128], strides = [1, 1]} : vector<16x512xbf16> to vector<16x128xbf16>
    %c32_51 = arith.constant 32 : index
    %c256_52 = arith.constant 256 : index
    %123 = vector.load %arg18[%c32_51, %c256_52] : memref<64x512xbf16, #tpu.memory_space<vmem>>, vector<16x128xbf16>
    tpu.vector_store %arg18[%c32_51, %c256_52], %122 {strides = array<i32>} : memref<64x512xbf16, #tpu.memory_space<vmem>>, vector<16x128xbf16>,
    %124 = vector.extract_strided_slice %108 {offsets = [3, 0, 0], sizes = [1, 16, 16], strides = [1, 1, 1]} : vector<4x16x16xf32> to vector<1x16x16xf32>
    %125 = vector.shape_cast %124 : vector<1x16x16xf32> to vector<16x16xf32>
    %c0_53 = arith.constant 0 : index
    %c48_54 = arith.constant 48 : index
    %126 = vector.load %arg17[%c0_53, %c48_54] : memref<16x64xf32, #tpu.memory_space<vmem>>, vector<16x16xf32>
    tpu.vector_store %arg17[%c0_53, %c48_54], %125 {strides = array<i32>} : memref<16x64xf32, #tpu.memory_space<vmem>>, vector<16x16xf32>,
    %127 = vector.extract_strided_slice %81 {offsets = [0, 384], sizes = [16, 128], strides = [1, 1]} : vector<16x512xbf16> to vector<16x128xbf16>
    %c48_55 = arith.constant 48 : index
    %c384_56 = arith.constant 384 : index
    %128 = vector.load %arg18[%c48_55, %c384_56] : memref<64x512xbf16, #tpu.memory_space<vmem>>, vector<16x128xbf16>
    tpu.vector_store %arg18[%c48_55, %c384_56], %127 {strides = array<i32>} : memref<64x512xbf16, #tpu.memory_space<vmem>>, vector<16x128xbf16>,
    %c0_57 = arith.constant 0 : index
    %c0_58 = arith.constant 0 : index
    %129 = vector.load %arg17[%c0_57, %c0_58] : memref<16x64xf32, #tpu.memory_space<vmem>>, vector<16x64xf32>
    %130 = arith.truncf %129 : vector<16x64xf32> to vector<16x64xbf16>
    %c0_59 = arith.constant 0 : index
    %c0_60 = arith.constant 0 : index
    %131 = vector.load %arg18[%c0_59, %c0_60] : memref<64x512xbf16, #tpu.memory_space<vmem>>, vector<64x512xbf16>
    %cst_61 = arith.constant dense<0.000000e+00> : vector<16x512xf32>
    %132 = tpu.matmul %130, %131, %cst_61 {dimension_numbers = #tpu.dot_dimension_numbers<[1], [0], [0], [1], [0, 0, 1, 1], [], []>} : vector<16x64xbf16>, vector<64x512xbf16>, vector<16x512xf32> -> vector<16x512xf32>
    %c0_62 = arith.constant 0 : index
    %c0_63 = arith.constant 0 : index
    %133 = vector.load %arg5[%c0_62, %c0_63] : memref<3x512xf32, #tpu.memory_space<vmem>>, vector<1x512xf32>
    %134 = vector.broadcast %133 : vector<1x512xf32> to vector<16x512xf32>
    %135 = arith.addf %132, %134 : vector<16x512xf32>
    %cst_64 = arith.constant 0.000000e+00 : f32
    %136 = vector.broadcast %cst_64 : f32 to vector<16x512xf32>
    %137 = arith.cmpf ogt, %135, %136 : vector<16x512xf32>
    %cst_65 = arith.constant 0.000000e+00 : f32
    %138 = vector.broadcast %cst_65 : f32 to vector<16x512xf32>
    %139 = arith.minimumf %135, %138 : vector<16x512xf32>
    %140 = math.exp %139 : vector<16x512xf32>
    %cst_66 = arith.constant 1.000000e+00 : f32
    %141 = vector.broadcast %cst_66 : f32 to vector<16x512xf32>
    %142 = arith.subf %140, %141 : vector<16x512xf32>
    %143 = arith.select %137, %135, %142 : vector<16x512xi1>, vector<16x512xf32>
    %c1_67 = arith.constant 1 : index
    %c0_68 = arith.constant 0 : index
    %144 = vector.load %arg5[%c1_67, %c0_68] : memref<3x512xf32, #tpu.memory_space<vmem>>, vector<1x512xf32>
    %145 = vector.broadcast %144 : vector<1x512xf32> to vector<16x512xf32>
    %146 = arith.mulf %143, %145 : vector<16x512xf32>
    %c2_69 = arith.constant 2 : index
    %c0_70 = arith.constant 0 : index
    %147 = vector.load %arg5[%c2_69, %c0_70] : memref<3x512xf32, #tpu.memory_space<vmem>>, vector<1x512xf32>
    %148 = vector.broadcast %147 : vector<1x512xf32> to vector<16x512xf32>
    %149 = arith.addf %146, %148 : vector<16x512xf32>
    %150 = arith.truncf %149 : vector<16x512xf32> to vector<16x512xbf16>
    %c0_71 = arith.constant 0 : index
    %c0_72 = arith.constant 0 : index
    %151 = vector.load %arg6[%c0_71, %c0_72] : memref<512x640xbf16, #tpu.memory_space<vmem>>, vector<512x640xbf16>
    %cst_73 = arith.constant dense<0.000000e+00> : vector<16x640xf32>
    %152 = tpu.matmul %150, %151, %cst_73 {dimension_numbers = #tpu.dot_dimension_numbers<[1], [0], [0], [1], [0, 0, 1, 1], [], []>} : vector<16x512xbf16>, vector<512x640xbf16>, vector<16x640xf32> -> vector<16x640xf32>
    %153 = vector.extract_strided_slice %152 {offsets = [0, 0], sizes = [16, 512], strides = [1, 1]} : vector<16x640xf32> to vector<16x512xf32>
    %154 = arith.truncf %153 : vector<16x512xf32> to vector<16x512xbf16>
    %155 = vector.extract_strided_slice %152 {offsets = [0, 512], sizes = [16, 128], strides = [1, 1]} : vector<16x640xf32> to vector<16x128xf32>
    %156 = tpu.transpose %155, [1, 0] : vector<16x128xf32> -> vector<128x16xf32>
    %157 = vector.extract_strided_slice %156 {offsets = [0, 0], sizes = [4, 16], strides = [1, 1]} : vector<128x16xf32> to vector<4x16xf32>
    %158 = vector.extract_strided_slice %156 {offsets = [8, 0], sizes = [4, 16], strides = [1, 1]} : vector<128x16xf32> to vector<4x16xf32>
    %159 = vector.shape_cast %157 : vector<4x16xf32> to vector<4x16x1xf32>
    %160 = vector.shape_cast %158 : vector<4x16xf32> to vector<4x1x16xf32>
    %161 = vector.broadcast %159 : vector<4x16x1xf32> to vector<4x16x16xf32>
    %162 = vector.broadcast %160 : vector<4x1x16xf32> to vector<4x16x16xf32>
    %163 = arith.addf %161, %162 : vector<4x16x16xf32>
    %cst_74 = arith.constant 0.000000e+00 : f32
    %164 = vector.broadcast %cst_74 : f32 to vector<4x16x16xf32>
    %165 = arith.cmpf ogt, %163, %164 : vector<4x16x16xf32>
    %cst_75 = arith.constant 2.000000e-01 : f32
    %166 = vector.broadcast %cst_75 : f32 to vector<4x16x16xf32>
    %167 = arith.mulf %166, %163 : vector<4x16x16xf32>
    %168 = arith.select %165, %163, %167 : vector<4x16x16xi1>, vector<4x16x16xf32>
    %169 = vector.shape_cast %0 : vector<16x16xf32> to vector<1x16x16xf32>
    %170 = vector.broadcast %169 : vector<1x16x16xf32> to vector<4x16x16xf32>
    %171 = arith.addf %168, %170 : vector<4x16x16xf32>
    %cst_76 = arith.constant dense<0xFF800000> : vector<4x16xf32>
    %172 = vector.multi_reduction <maximumf>, %171, %cst_76 [2] : vector<4x16x16xf32> to vector<4x16xf32>
    %173 = vector.shape_cast %172 : vector<4x16xf32> to vector<4x16x1xf32>
    %174 = vector.broadcast %173 : vector<4x16x1xf32> to vector<4x16x16xf32>
    %175 = arith.subf %171, %174 : vector<4x16x16xf32>
    %176 = math.exp %175 : vector<4x16x16xf32>
    %cst_77 = arith.constant dense<0.000000e+00> : vector<4x16xf32>
    %177 = vector.multi_reduction <add>, %176, %cst_77 [2] : vector<4x16x16xf32> to vector<4x16xf32>
    %178 = vector.shape_cast %177 : vector<4x16xf32> to vector<4x16x1xf32>
    %179 = tpu.reciprocal %178 : vector<4x16x1xf32> -> vector<4x16x1xf32>
    %180 = vector.broadcast %179 : vector<4x16x1xf32> to vector<4x16x16xf32>
    %181 = arith.mulf %176, %180 : vector<4x16x16xf32>
    %182 = vector.extract_strided_slice %181 {offsets = [0, 0, 0], sizes = [1, 16, 16], strides = [1, 1, 1]} : vector<4x16x16xf32> to vector<1x16x16xf32>
    %183 = vector.shape_cast %182 : vector<1x16x16xf32> to vector<16x16xf32>
    %c0_78 = arith.constant 0 : index
    %c0_79 = arith.constant 0 : index
    %184 = vector.load %arg17[%c0_78, %c0_79] : memref<16x64xf32, #tpu.memory_space<vmem>>, vector<16x16xf32>
    tpu.vector_store %arg17[%c0_78, %c0_79], %183 {strides = array<i32>} : memref<16x64xf32, #tpu.memory_space<vmem>>, vector<16x16xf32>,
    %185 = vector.extract_strided_slice %154 {offsets = [0, 0], sizes = [16, 128], strides = [1, 1]} : vector<16x512xbf16> to vector<16x128xbf16>
    %c0_80 = arith.constant 0 : index
    %c0_81 = arith.constant 0 : index
    %186 = vector.load %arg18[%c0_80, %c0_81] : memref<64x512xbf16, #tpu.memory_space<vmem>>, vector<16x128xbf16>
    tpu.vector_store %arg18[%c0_80, %c0_81], %185 {strides = array<i32>} : memref<64x512xbf16, #tpu.memory_space<vmem>>, vector<16x128xbf16>,
    %187 = vector.extract_strided_slice %181 {offsets = [1, 0, 0], sizes = [1, 16, 16], strides = [1, 1, 1]} : vector<4x16x16xf32> to vector<1x16x16xf32>
    %188 = vector.shape_cast %187 : vector<1x16x16xf32> to vector<16x16xf32>
    %c0_82 = arith.constant 0 : index
    %c16_83 = arith.constant 16 : index
    %189 = vector.load %arg17[%c0_82, %c16_83] : memref<16x64xf32, #tpu.memory_space<vmem>>, vector<16x16xf32>
    tpu.vector_store %arg17[%c0_82, %c16_83], %188 {strides = array<i32>} : memref<16x64xf32, #tpu.memory_space<vmem>>, vector<16x16xf32>,
    %190 = vector.extract_strided_slice %154 {offsets = [0, 128], sizes = [16, 128], strides = [1, 1]} : vector<16x512xbf16> to vector<16x128xbf16>
    %c16_84 = arith.constant 16 : index
    %c128_85 = arith.constant 128 : index
    %191 = vector.load %arg18[%c16_84, %c128_85] : memref<64x512xbf16, #tpu.memory_space<vmem>>, vector<16x128xbf16>
    tpu.vector_store %arg18[%c16_84, %c128_85], %190 {strides = array<i32>} : memref<64x512xbf16, #tpu.memory_space<vmem>>, vector<16x128xbf16>,
    %192 = vector.extract_strided_slice %181 {offsets = [2, 0, 0], sizes = [1, 16, 16], strides = [1, 1, 1]} : vector<4x16x16xf32> to vector<1x16x16xf32>
    %193 = vector.shape_cast %192 : vector<1x16x16xf32> to vector<16x16xf32>
    %c0_86 = arith.constant 0 : index
    %c32_87 = arith.constant 32 : index
    %194 = vector.load %arg17[%c0_86, %c32_87] : memref<16x64xf32, #tpu.memory_space<vmem>>, vector<16x16xf32>
    tpu.vector_store %arg17[%c0_86, %c32_87], %193 {strides = array<i32>} : memref<16x64xf32, #tpu.memory_space<vmem>>, vector<16x16xf32>,
    %195 = vector.extract_strided_slice %154 {offsets = [0, 256], sizes = [16, 128], strides = [1, 1]} : vector<16x512xbf16> to vector<16x128xbf16>
    %c32_88 = arith.constant 32 : index
    %c256_89 = arith.constant 256 : index
    %196 = vector.load %arg18[%c32_88, %c256_89] : memref<64x512xbf16, #tpu.memory_space<vmem>>, vector<16x128xbf16>
    tpu.vector_store %arg18[%c32_88, %c256_89], %195 {strides = array<i32>} : memref<64x512xbf16, #tpu.memory_space<vmem>>, vector<16x128xbf16>,
    %197 = vector.extract_strided_slice %181 {offsets = [3, 0, 0], sizes = [1, 16, 16], strides = [1, 1, 1]} : vector<4x16x16xf32> to vector<1x16x16xf32>
    %198 = vector.shape_cast %197 : vector<1x16x16xf32> to vector<16x16xf32>
    %c0_90 = arith.constant 0 : index
    %c48_91 = arith.constant 48 : index
    %199 = vector.load %arg17[%c0_90, %c48_91] : memref<16x64xf32, #tpu.memory_space<vmem>>, vector<16x16xf32>
    tpu.vector_store %arg17[%c0_90, %c48_91], %198 {strides = array<i32>} : memref<16x64xf32, #tpu.memory_space<vmem>>, vector<16x16xf32>,
    %200 = vector.extract_strided_slice %154 {offsets = [0, 384], sizes = [16, 128], strides = [1, 1]} : vector<16x512xbf16> to vector<16x128xbf16>
    %c48_92 = arith.constant 48 : index
    %c384_93 = arith.constant 384 : index
    %201 = vector.load %arg18[%c48_92, %c384_93] : memref<64x512xbf16, #tpu.memory_space<vmem>>, vector<16x128xbf16>
    tpu.vector_store %arg18[%c48_92, %c384_93], %200 {strides = array<i32>} : memref<64x512xbf16, #tpu.memory_space<vmem>>, vector<16x128xbf16>,
    %c0_94 = arith.constant 0 : index
    %c0_95 = arith.constant 0 : index
    %202 = vector.load %arg17[%c0_94, %c0_95] : memref<16x64xf32, #tpu.memory_space<vmem>>, vector<16x64xf32>
    %203 = arith.truncf %202 : vector<16x64xf32> to vector<16x64xbf16>
    %c0_96 = arith.constant 0 : index
    %c0_97 = arith.constant 0 : index
    %204 = vector.load %arg18[%c0_96, %c0_97] : memref<64x512xbf16, #tpu.memory_space<vmem>>, vector<64x512xbf16>
    %cst_98 = arith.constant dense<0.000000e+00> : vector<16x512xf32>
    %205 = tpu.matmul %203, %204, %cst_98 {dimension_numbers = #tpu.dot_dimension_numbers<[1], [0], [0], [1], [0, 0, 1, 1], [], []>} : vector<16x64xbf16>, vector<64x512xbf16>, vector<16x512xf32> -> vector<16x512xf32>
    %c0_99 = arith.constant 0 : index
    %c0_100 = arith.constant 0 : index
    %206 = vector.load %arg7[%c0_99, %c0_100] : memref<3x512xf32, #tpu.memory_space<vmem>>, vector<1x512xf32>
    %207 = vector.broadcast %206 : vector<1x512xf32> to vector<16x512xf32>
    %208 = arith.addf %205, %207 : vector<16x512xf32>
    %cst_101 = arith.constant 0.000000e+00 : f32
    %209 = vector.broadcast %cst_101 : f32 to vector<16x512xf32>
    %210 = arith.cmpf ogt, %208, %209 : vector<16x512xf32>
    %cst_102 = arith.constant 0.000000e+00 : f32
    %211 = vector.broadcast %cst_102 : f32 to vector<16x512xf32>
    %212 = arith.minimumf %208, %211 : vector<16x512xf32>
    %213 = math.exp %212 : vector<16x512xf32>
    %cst_103 = arith.constant 1.000000e+00 : f32
    %214 = vector.broadcast %cst_103 : f32 to vector<16x512xf32>
    %215 = arith.subf %213, %214 : vector<16x512xf32>
    %216 = arith.select %210, %208, %215 : vector<16x512xi1>, vector<16x512xf32>
    %c1_104 = arith.constant 1 : index
    %c0_105 = arith.constant 0 : index
    %217 = vector.load %arg7[%c1_104, %c0_105] : memref<3x512xf32, #tpu.memory_space<vmem>>, vector<1x512xf32>
    %218 = vector.broadcast %217 : vector<1x512xf32> to vector<16x512xf32>
    %219 = arith.mulf %216, %218 : vector<16x512xf32>
    %c2_106 = arith.constant 2 : index
    %c0_107 = arith.constant 0 : index
    %220 = vector.load %arg7[%c2_106, %c0_107] : memref<3x512xf32, #tpu.memory_space<vmem>>, vector<1x512xf32>
    %221 = vector.broadcast %220 : vector<1x512xf32> to vector<16x512xf32>
    %222 = arith.addf %219, %221 : vector<16x512xf32>
    %223 = arith.truncf %222 : vector<16x512xf32> to vector<16x512xbf16>
    %c0_108 = arith.constant 0 : index
    %c0_109 = arith.constant 0 : index
    %224 = vector.load %arg8[%c0_108, %c0_109] : memref<512x640xbf16, #tpu.memory_space<vmem>>, vector<512x640xbf16>
    %cst_110 = arith.constant dense<0.000000e+00> : vector<16x640xf32>
    %225 = tpu.matmul %223, %224, %cst_110 {dimension_numbers = #tpu.dot_dimension_numbers<[1], [0], [0], [1], [0, 0, 1, 1], [], []>} : vector<16x512xbf16>, vector<512x640xbf16>, vector<16x640xf32> -> vector<16x640xf32>
    %226 = vector.extract_strided_slice %225 {offsets = [0, 0], sizes = [16, 512], strides = [1, 1]} : vector<16x640xf32> to vector<16x512xf32>
    %227 = arith.truncf %226 : vector<16x512xf32> to vector<16x512xbf16>
    %228 = vector.extract_strided_slice %225 {offsets = [0, 512], sizes = [16, 128], strides = [1, 1]} : vector<16x640xf32> to vector<16x128xf32>
    %229 = tpu.transpose %228, [1, 0] : vector<16x128xf32> -> vector<128x16xf32>
    %230 = vector.extract_strided_slice %229 {offsets = [0, 0], sizes = [4, 16], strides = [1, 1]} : vector<128x16xf32> to vector<4x16xf32>
    %231 = vector.extract_strided_slice %229 {offsets = [8, 0], sizes = [4, 16], strides = [1, 1]} : vector<128x16xf32> to vector<4x16xf32>
    %232 = vector.shape_cast %230 : vector<4x16xf32> to vector<4x16x1xf32>
    %233 = vector.shape_cast %231 : vector<4x16xf32> to vector<4x1x16xf32>
    %234 = vector.broadcast %232 : vector<4x16x1xf32> to vector<4x16x16xf32>
    %235 = vector.broadcast %233 : vector<4x1x16xf32> to vector<4x16x16xf32>
    %236 = arith.addf %234, %235 : vector<4x16x16xf32>
    %cst_111 = arith.constant 0.000000e+00 : f32
    %237 = vector.broadcast %cst_111 : f32 to vector<4x16x16xf32>
    %238 = arith.cmpf ogt, %236, %237 : vector<4x16x16xf32>
    %cst_112 = arith.constant 2.000000e-01 : f32
    %239 = vector.broadcast %cst_112 : f32 to vector<4x16x16xf32>
    %240 = arith.mulf %239, %236 : vector<4x16x16xf32>
    %241 = arith.select %238, %236, %240 : vector<4x16x16xi1>, vector<4x16x16xf32>
    %242 = vector.shape_cast %0 : vector<16x16xf32> to vector<1x16x16xf32>
    %243 = vector.broadcast %242 : vector<1x16x16xf32> to vector<4x16x16xf32>
    %244 = arith.addf %241, %243 : vector<4x16x16xf32>
    %cst_113 = arith.constant dense<0xFF800000> : vector<4x16xf32>
    %245 = vector.multi_reduction <maximumf>, %244, %cst_113 [2] : vector<4x16x16xf32> to vector<4x16xf32>
    %246 = vector.shape_cast %245 : vector<4x16xf32> to vector<4x16x1xf32>
    %247 = vector.broadcast %246 : vector<4x16x1xf32> to vector<4x16x16xf32>
    %248 = arith.subf %244, %247 : vector<4x16x16xf32>
    %249 = math.exp %248 : vector<4x16x16xf32>
    %cst_114 = arith.constant dense<0.000000e+00> : vector<4x16xf32>
    %250 = vector.multi_reduction <add>, %249, %cst_114 [2] : vector<4x16x16xf32> to vector<4x16xf32>
    %251 = vector.shape_cast %250 : vector<4x16xf32> to vector<4x16x1xf32>
    %252 = tpu.reciprocal %251 : vector<4x16x1xf32> -> vector<4x16x1xf32>
    %253 = vector.broadcast %252 : vector<4x16x1xf32> to vector<4x16x16xf32>
    %254 = arith.mulf %249, %253 : vector<4x16x16xf32>
    %255 = vector.extract_strided_slice %254 {offsets = [0, 0, 0], sizes = [1, 16, 16], strides = [1, 1, 1]} : vector<4x16x16xf32> to vector<1x16x16xf32>
    %256 = vector.shape_cast %255 : vector<1x16x16xf32> to vector<16x16xf32>
    %c0_115 = arith.constant 0 : index
    %c0_116 = arith.constant 0 : index
    %257 = vector.load %arg17[%c0_115, %c0_116] : memref<16x64xf32, #tpu.memory_space<vmem>>, vector<16x16xf32>
    tpu.vector_store %arg17[%c0_115, %c0_116], %256 {strides = array<i32>} : memref<16x64xf32, #tpu.memory_space<vmem>>, vector<16x16xf32>,
    %258 = vector.extract_strided_slice %227 {offsets = [0, 0], sizes = [16, 128], strides = [1, 1]} : vector<16x512xbf16> to vector<16x128xbf16>
    %c0_117 = arith.constant 0 : index
    %c0_118 = arith.constant 0 : index
    %259 = vector.load %arg18[%c0_117, %c0_118] : memref<64x512xbf16, #tpu.memory_space<vmem>>, vector<16x128xbf16>
    tpu.vector_store %arg18[%c0_117, %c0_118], %258 {strides = array<i32>} : memref<64x512xbf16, #tpu.memory_space<vmem>>, vector<16x128xbf16>,
    %260 = vector.extract_strided_slice %254 {offsets = [1, 0, 0], sizes = [1, 16, 16], strides = [1, 1, 1]} : vector<4x16x16xf32> to vector<1x16x16xf32>
    %261 = vector.shape_cast %260 : vector<1x16x16xf32> to vector<16x16xf32>
    %c0_119 = arith.constant 0 : index
    %c16_120 = arith.constant 16 : index
    %262 = vector.load %arg17[%c0_119, %c16_120] : memref<16x64xf32, #tpu.memory_space<vmem>>, vector<16x16xf32>
    tpu.vector_store %arg17[%c0_119, %c16_120], %261 {strides = array<i32>} : memref<16x64xf32, #tpu.memory_space<vmem>>, vector<16x16xf32>,
    %263 = vector.extract_strided_slice %227 {offsets = [0, 128], sizes = [16, 128], strides = [1, 1]} : vector<16x512xbf16> to vector<16x128xbf16>
    %c16_121 = arith.constant 16 : index
    %c128_122 = arith.constant 128 : index
    %264 = vector.load %arg18[%c16_121, %c128_122] : memref<64x512xbf16, #tpu.memory_space<vmem>>, vector<16x128xbf16>
    tpu.vector_store %arg18[%c16_121, %c128_122], %263 {strides = array<i32>} : memref<64x512xbf16, #tpu.memory_space<vmem>>, vector<16x128xbf16>,
    %265 = vector.extract_strided_slice %254 {offsets = [2, 0, 0], sizes = [1, 16, 16], strides = [1, 1, 1]} : vector<4x16x16xf32> to vector<1x16x16xf32>
    %266 = vector.shape_cast %265 : vector<1x16x16xf32> to vector<16x16xf32>
    %c0_123 = arith.constant 0 : index
    %c32_124 = arith.constant 32 : index
    %267 = vector.load %arg17[%c0_123, %c32_124] : memref<16x64xf32, #tpu.memory_space<vmem>>, vector<16x16xf32>
    tpu.vector_store %arg17[%c0_123, %c32_124], %266 {strides = array<i32>} : memref<16x64xf32, #tpu.memory_space<vmem>>, vector<16x16xf32>,
    %268 = vector.extract_strided_slice %227 {offsets = [0, 256], sizes = [16, 128], strides = [1, 1]} : vector<16x512xbf16> to vector<16x128xbf16>
    %c32_125 = arith.constant 32 : index
    %c256_126 = arith.constant 256 : index
    %269 = vector.load %arg18[%c32_125, %c256_126] : memref<64x512xbf16, #tpu.memory_space<vmem>>, vector<16x128xbf16>
    tpu.vector_store %arg18[%c32_125, %c256_126], %268 {strides = array<i32>} : memref<64x512xbf16, #tpu.memory_space<vmem>>, vector<16x128xbf16>,
    %270 = vector.extract_strided_slice %254 {offsets = [3, 0, 0], sizes = [1, 16, 16], strides = [1, 1, 1]} : vector<4x16x16xf32> to vector<1x16x16xf32>
    %271 = vector.shape_cast %270 : vector<1x16x16xf32> to vector<16x16xf32>
    %c0_127 = arith.constant 0 : index
    %c48_128 = arith.constant 48 : index
    %272 = vector.load %arg17[%c0_127, %c48_128] : memref<16x64xf32, #tpu.memory_space<vmem>>, vector<16x16xf32>
    tpu.vector_store %arg17[%c0_127, %c48_128], %271 {strides = array<i32>} : memref<16x64xf32, #tpu.memory_space<vmem>>, vector<16x16xf32>,
    %273 = vector.extract_strided_slice %227 {offsets = [0, 384], sizes = [16, 128], strides = [1, 1]} : vector<16x512xbf16> to vector<16x128xbf16>
    %c48_129 = arith.constant 48 : index
    %c384_130 = arith.constant 384 : index
    %274 = vector.load %arg18[%c48_129, %c384_130] : memref<64x512xbf16, #tpu.memory_space<vmem>>, vector<16x128xbf16>
    tpu.vector_store %arg18[%c48_129, %c384_130], %273 {strides = array<i32>} : memref<64x512xbf16, #tpu.memory_space<vmem>>, vector<16x128xbf16>,
    %c0_131 = arith.constant 0 : index
    %c0_132 = arith.constant 0 : index
    %275 = vector.load %arg17[%c0_131, %c0_132] : memref<16x64xf32, #tpu.memory_space<vmem>>, vector<16x64xf32>
    %276 = arith.truncf %275 : vector<16x64xf32> to vector<16x64xbf16>
    %c0_133 = arith.constant 0 : index
    %c0_134 = arith.constant 0 : index
    %277 = vector.load %arg18[%c0_133, %c0_134] : memref<64x512xbf16, #tpu.memory_space<vmem>>, vector<64x512xbf16>
    %cst_135 = arith.constant dense<0.000000e+00> : vector<16x512xf32>
    %278 = tpu.matmul %276, %277, %cst_135 {dimension_numbers = #tpu.dot_dimension_numbers<[1], [0], [0], [1], [0, 0, 1, 1], [], []>} : vector<16x64xbf16>, vector<64x512xbf16>, vector<16x512xf32> -> vector<16x512xf32>
    %c0_136 = arith.constant 0 : index
    %c0_137 = arith.constant 0 : index
    %279 = vector.load %arg9[%c0_136, %c0_137] : memref<3x512xf32, #tpu.memory_space<vmem>>, vector<1x512xf32>
    %280 = vector.broadcast %279 : vector<1x512xf32> to vector<16x512xf32>
    %281 = arith.addf %278, %280 : vector<16x512xf32>
    %cst_138 = arith.constant 0.000000e+00 : f32
    %282 = vector.broadcast %cst_138 : f32 to vector<16x512xf32>
    %283 = arith.cmpf ogt, %281, %282 : vector<16x512xf32>
    %cst_139 = arith.constant 0.000000e+00 : f32
    %284 = vector.broadcast %cst_139 : f32 to vector<16x512xf32>
    %285 = arith.minimumf %281, %284 : vector<16x512xf32>
    %286 = math.exp %285 : vector<16x512xf32>
    %cst_140 = arith.constant 1.000000e+00 : f32
    %287 = vector.broadcast %cst_140 : f32 to vector<16x512xf32>
    %288 = arith.subf %286, %287 : vector<16x512xf32>
    %289 = arith.select %283, %281, %288 : vector<16x512xi1>, vector<16x512xf32>
    %c1_141 = arith.constant 1 : index
    %c0_142 = arith.constant 0 : index
    %290 = vector.load %arg9[%c1_141, %c0_142] : memref<3x512xf32, #tpu.memory_space<vmem>>, vector<1x512xf32>
    %291 = vector.broadcast %290 : vector<1x512xf32> to vector<16x512xf32>
    %292 = arith.mulf %289, %291 : vector<16x512xf32>
    %c2_143 = arith.constant 2 : index
    %c0_144 = arith.constant 0 : index
    %293 = vector.load %arg9[%c2_143, %c0_144] : memref<3x512xf32, #tpu.memory_space<vmem>>, vector<1x512xf32>
    %294 = vector.broadcast %293 : vector<1x512xf32> to vector<16x512xf32>
    %295 = arith.addf %292, %294 : vector<16x512xf32>
    %296 = arith.truncf %295 : vector<16x512xf32> to vector<16x512xbf16>
    %c0_145 = arith.constant 0 : index
    %c0_146 = arith.constant 0 : index
    %297 = vector.load %arg10[%c0_145, %c0_146] : memref<512x128xbf16, #tpu.memory_space<vmem>>, vector<512x128xbf16>
    %cst_147 = arith.constant dense<0.000000e+00> : vector<16x128xf32>
    %298 = tpu.matmul %296, %297, %cst_147 {dimension_numbers = #tpu.dot_dimension_numbers<[1], [0], [0], [1], [0, 0, 1, 1], [], []>} : vector<16x512xbf16>, vector<512x128xbf16>, vector<16x128xf32> -> vector<16x128xf32>
    %c0_148 = arith.constant 0 : index
    %c0_149 = arith.constant 0 : index
    %299 = vector.load %arg11[%c0_148, %c0_149] : memref<1x128xf32, #tpu.memory_space<vmem>>, vector<1x128xf32>
    %300 = vector.broadcast %299 : vector<1x128xf32> to vector<16x128xf32>
    %301 = arith.addf %298, %300 : vector<16x128xf32>
    %cst_150 = arith.constant 0.000000e+00 : f32
    %302 = vector.broadcast %cst_150 : f32 to vector<16x128xf32>
    %303 = arith.maximumf %301, %302 : vector<16x128xf32>
    %304 = arith.truncf %303 : vector<16x128xf32> to vector<16x128xbf16>
    %c0_151 = arith.constant 0 : index
    %c0_152 = arith.constant 0 : index
    %305 = vector.load %arg12[%c0_151, %c0_152] : memref<128x64xbf16, #tpu.memory_space<vmem>>, vector<128x64xbf16>
    %cst_153 = arith.constant dense<0.000000e+00> : vector<16x64xf32>
    %306 = tpu.matmul %304, %305, %cst_153 {dimension_numbers = #tpu.dot_dimension_numbers<[1], [0], [0], [1], [0, 0, 1, 1], [], []>} : vector<16x128xbf16>, vector<128x64xbf16>, vector<16x64xf32> -> vector<16x64xf32>
    %c0_154 = arith.constant 0 : index
    %c0_155 = arith.constant 0 : index
    %307 = vector.load %arg13[%c0_154, %c0_155] : memref<1x64xf32, #tpu.memory_space<vmem>>, vector<1x64xf32>
    %308 = vector.broadcast %307 : vector<1x64xf32> to vector<16x64xf32>
    %309 = arith.addf %306, %308 : vector<16x64xf32>
    %cst_156 = arith.constant 0.000000e+00 : f32
    %310 = vector.broadcast %cst_156 : f32 to vector<16x64xf32>
    %311 = arith.maximumf %309, %310 : vector<16x64xf32>
    %312 = arith.truncf %311 : vector<16x64xf32> to vector<16x64xbf16>
    %c0_157 = arith.constant 0 : index
    %c0_158 = arith.constant 0 : index
    %313 = vector.load %arg14[%c0_157, %c0_158] : memref<64x128xbf16, #tpu.memory_space<vmem>>, vector<64x128xbf16>
    %cst_159 = arith.constant dense<0.000000e+00> : vector<16x128xf32>
    %314 = tpu.matmul %312, %313, %cst_159 {dimension_numbers = #tpu.dot_dimension_numbers<[1], [0], [0], [1], [0, 0, 1, 1], [], []>} : vector<16x64xbf16>, vector<64x128xbf16>, vector<16x128xf32> -> vector<16x128xf32>
    %c0_160 = arith.constant 0 : index
    %c0_161 = arith.constant 0 : index
    %315 = vector.load %arg15[%c0_160, %c0_161] : memref<1x128xf32, #tpu.memory_space<vmem>>, vector<1x128xf32>
    %316 = vector.broadcast %315 : vector<1x128xf32> to vector<16x128xf32>
    %317 = arith.addf %314, %316 : vector<16x128xf32>
    %cst_162 = arith.constant dense<0xFF800000> : vector<16xf32>
    %318 = vector.multi_reduction <maximumf>, %317, %cst_162 [1] : vector<16x128xf32> to vector<16xf32>
    %319 = vector.shape_cast %318 : vector<16xf32> to vector<16x1xf32>
    %320 = vector.broadcast %319 : vector<16x1xf32> to vector<16x128xf32>
    %321 = arith.subf %317, %320 : vector<16x128xf32>
    %322 = math.exp %321 : vector<16x128xf32>
    %cst_163 = arith.constant dense<0.000000e+00> : vector<16xf32>
    %323 = vector.multi_reduction <add>, %322, %cst_163 [1] : vector<16x128xf32> to vector<16xf32>
    %324 = vector.shape_cast %323 : vector<16xf32> to vector<16x1xf32>
    %325 = math.log %324 : vector<16x1xf32>
    %326 = vector.broadcast %325 : vector<16x1xf32> to vector<16x128xf32>
    %327 = arith.subf %321, %326 : vector<16x128xf32>
    %c0_164 = arith.constant 0 : index
    %c0_165 = arith.constant 0 : index
    %328 = vector.load %arg16[%c0_164, %c0_165] : memref<16x128xf32, #tpu.memory_space<vmem>>, vector<16x128xf32>
    tpu.vector_store %arg16[%c0_164, %c0_165], %327 {strides = array<i32>} : memref<16x128xf32, #tpu.memory_space<vmem>>, vector<16x128xf32>,
    return
  }
}

</mosaic_0001>

<bundles_post_ra>
// kernel: tpu_custom_call.1
= control target key start
LH: loop header
LB: loop body
LE: loop exit
PB: predicated region body
PF: predicated region fallthrough
CT: control target
= control target key end

     0   :  { %s10267_s0 = inlined_call_operand.hbm [shape: f32[16,32], index: 0, kind: input, shape index: {}]   ;;  %s10268_s1 = inlined_call_operand.hbm [shape: f32[16,16], index: 1, kind: input, shape index: {}]   ;;  %s10269_s2 = inlined_call_operand.vmem [shape: bf16[32,640], index: 2, kind: input, shape index: {}]   ;;  %s10270_s3 = inlined_call_operand.hbm [shape: f32[3,512], index: 3, kind: input, shape index: {}]   ;;  %s10271_s4 = inlined_call_operand.hbm [shape: bf16[512,640], index: 4, kind: input, shape index: {}]   ;;  %s10272_s5 = inlined_call_operand.hbm [shape: f32[3,512], index: 5, kind: input, shape index: {}]   ;;  %s10273_s6 = inlined_call_operand.hbm [shape: bf16[512,640], index: 6, kind: input, shape index: {}]   ;;  %s10274_s7 = inlined_call_operand.hbm [shape: f32[3,512], index: 7, kind: input, shape index: {}]   ;;  %s10275_s8 = inlined_call_operand.hbm [shape: bf16[512,640], index: 8, kind: input, shape index: {}]   ;;  %s10276_s9 = inlined_call_operand.hbm [shape: f32[3,512], index: 9, kind: input, shape index: {}]   ;;  %s10277_s10 = inlined_call_operand.hbm [shape: bf16[512,128], index: 10, kind: input, shape index: {}]   ;;  %s10278_s11 = inlined_call_operand.vmem [shape: f32[1,128], index: 11, kind: input, shape index: {}]   ;;  %s10279_s12 = inlined_call_operand.vmem [shape: bf16[128,64], index: 12, kind: input, shape index: {}]   ;;  %s10280_s13 = inlined_call_operand.vmem [shape: f32[1,64], index: 13, kind: input, shape index: {}]   ;;  %s10281_s14 = inlined_call_operand.vmem [shape: bf16[64,128], index: 14, kind: input, shape index: {}]   ;;  %s10282_s15 = inlined_call_operand.vmem [shape: f32[1,128], index: 15, kind: input, shape index: {}]   ;;  %s10283_s16 = inlined_call_operand.hbm [shape: f32[16,128], index: 16, kind: output, shape index: {}]  }
   0x1   :  { %10284 = sst [smem:[#allocation29_spill]] %s10267_s0 }
   0x2   :  { %21 = vsyncpa [#allocation5], 0 }
   0x3   :  { %22 = vsyncpa [#allocation8], 0 }
   0x4   :  { %23 = vsyncpa [#allocation11], 0 }
   0x5   :  { %24 = vsyncpa [#allocation14], 0 }
   0x6   :  { %25 = vsyncpa [#allocation17], 0 }
   0x7   :  { %26 = vsyncpa [#allocation20], 0 }
   0x8   :  { %27 = vsyncpa [#allocation6], 0  ;;  %s9595_s21 = smov [#allocation7]   ;;  %s9596_s23 = smov [#allocation10]  }
   0x9   :  { %s45_s22 = sshll.u32 %s9595_s21, 4  ;;  %s69_s24 = sshll.u32 %s9596_s23, 4  ;;  %s46_s22 = int_to_ptr.vmem [resolvable:$true] %s45_s22  ;;  %s70_s24 = int_to_ptr.vmem [resolvable:$true] %s69_s24 }
   0xa   :  { %s9369_s25 = scalar_lea.vmem %s46_s22, 256  ;;  %p9374_p1 = scmp.lt.s32.totalorder %s46_s22, %s46_s22 }
   0xb   :  { %p9370_p0 = scmp.ne.s32.totalorder %s46_s22, %s9369_s25  ;;  %p9375_p2 = scmp.lt.s32.totalorder %s9369_s25, %s9369_s25 }
   0xd   :  { %p9376_p3 = por %p9375_p2, %p9374_p1 }
   0xf   :  { %p9377_p4 = pnand %p9376_p3, %p9370_p0 }
  0x11   :  { %9380 = shalt.err (!%p9377_p4)
}
  0x12   :  { %s9597_s26 = smov 128   ;;  %s9598_s27 = smov 8  }
  0x13   :  { %51 = dma.hbm_to_vmem [thread:$0]  %s10268_s1, 256, %s46_s22, [#allocation8], %s9597_s26, %s9597_s26, %s9598_s27  }
  0x14   :  { %s9389_s30 = scalar_lea.vmem %s70_s24, 20480  ;;  %p9394_p6 = scmp.lt.s32.totalorder %s70_s24, %s70_s24 }
  0x15   :  { %p9390_p5 = scmp.ne.s32.totalorder %s70_s24, %s9389_s30  ;;  %p9395_p7 = scmp.lt.s32.totalorder %s9389_s30, %s9389_s30 }
  0x17   :  { %p9396_p8 = por %p9395_p7, %p9394_p6 }
  0x19   :  { %p9397_p9 = pnand %p9396_p8, %p9390_p5 }
  0x1b   :  { %9400 = shalt.err (!%p9397_p9)
}
  0x1c   :  { %s9599_s0 = smov 320   ;;  %s9600_s17 = smov 20  }
  0x1d   :  { %75 = dma.hbm_to_vmem [thread:$0]  %s10271_s4, 20480, %s70_s24, [#allocation11], %s9599_s0, %s9599_s0, %s9600_s17  }
  0x1e   :  { %s9601_s20 = smov [#allocation13]   ;;  %s9602_s23 = smov [#allocation16]  }
  0x1f   :  { %s91_s21 = sshll.u32 %s9601_s20, 4  ;;  %s113_s25 = sshll.u32 %s9602_s23, 4  ;;  %s92_s21 = int_to_ptr.vmem [resolvable:$true] %s91_s21  ;;  %s114_s25 = int_to_ptr.vmem [resolvable:$true] %s113_s25 }
  0x20   :  { %s9409_s1 = scalar_lea.vmem %s92_s21, 20480  ;;  %p9414_p11 = scmp.lt.s32.totalorder %s92_s21, %s92_s21 }
  0x21   :  { %p9410_p10 = scmp.ne.s32.totalorder %s92_s21, %s9409_s1  ;;  %p9415_p12 = scmp.lt.s32.totalorder %s9409_s1, %s9409_s1 }
  0x23   :  { %p9416_p13 = por %p9415_p12, %p9414_p11 }
  0x25   :  { %p9417_p0 = pnand %p9416_p13, %p9410_p10 }
  0x27   :  { %9420 = shalt.err (!%p9417_p0)
}
  0x28   :  { %97 = dma.hbm_to_vmem [thread:$0]  %s10273_s6, 20480, %s92_s21, [#allocation14], %s9599_s0, %s9599_s0, %s9600_s17  }
  0x29   :  { %s9429_s29 = scalar_lea.vmem %s114_s25, 20480  ;;  %p9434_p2 = scmp.lt.s32.totalorder %s114_s25, %s114_s25 }
  0x2a   :  { %p9430_p1 = scmp.ne.s32.totalorder %s114_s25, %s9429_s29  ;;  %p9435_p3 = scmp.lt.s32.totalorder %s9429_s29, %s9429_s29 }
  0x2c   :  { %p9436_p4 = por %p9435_p3, %p9434_p2 }
  0x2e   :  { %p9437_p5 = pnand %p9436_p4, %p9430_p1 }
  0x30   :  { %9440 = shalt.err (!%p9437_p5)
}
  0x31   :  { %119 = dma.hbm_to_vmem [thread:$0]  %s10275_s8, 20480, %s114_s25, [#allocation17], %s9599_s0, %s9599_s0, %s9600_s17  }
  0x32   :  { %s9603_s30 = smov [#allocation4]   ;;  %s9604_s19 = smov [#allocation9]  }
  0x33   :  { %s33_s18 = sshll.u32 %s9603_s30, 4  ;;  %s60_s20 = sshll.u32 %s9604_s19, 4  ;;  %s34_s18 = int_to_ptr.vmem [resolvable:$true] %s33_s18  ;;  %s61_s20 = int_to_ptr.vmem [resolvable:$true] %s60_s20 }
  0x34   :  { %s9449_s23 = scalar_lea.vmem %s34_s18, 256  ;;  %p9454_p7 = scmp.lt.s32.totalorder %s34_s18, %s34_s18 }
  0x35   :  { %p9450_p6 = scmp.ne.s32.totalorder %s34_s18, %s9449_s23  ;;  %p9455_p8 = scmp.lt.s32.totalorder %s9449_s23, %s9449_s23 }
  0x37   :  { %p9456_p9 = por %p9455_p8, %p9454_p7 }
  0x39   :  { %p9457_p10 = pnand %p9456_p9, %p9450_p6 }
  0x3b   :  { %9460 = shalt.err (!%p9457_p10)
}
  0x3c   :  { %s10285_s1 = sld [smem:[#allocation29_spill]]  ;;  %s9469_s8 = scalar_lea.vmem %s61_s20, 256 }
  0x3d   :  { %p9470_p11 = scmp.ne.s32.totalorder %s61_s20, %s9469_s8  ;;  %p9474_p12 = scmp.lt.s32.totalorder %s61_s20, %s61_s20 }
  0x3e   :  { %p9475_p13 = scmp.lt.s32.totalorder %s9469_s8, %s9469_s8 }
  0x40   :  { %p9476_p0 = por %p9475_p13, %p9474_p12 }
  0x42   :  { %39 = dma.hbm_to_vmem [thread:$0]  %s10285_s1, 256, %s34_s18, [#allocation5], %s9597_s26, %s9597_s26, %s9598_s27  }
  0x43   :  { %p9477_p1 = pnand %p9476_p0, %p9470_p11 }
  0x45   :  { %9480 = shalt.err (!%p9477_p1)
}
  0x46   :  { %63 = dma.hbm_to_vmem [thread:$0]  %s10270_s3, 256, %s61_s20, [#allocation8]  }
  0x47   :  { %s9605_s25 = smov [#allocation12]   ;;  %s9606_s28 = smov [#allocation15]  }
  0x48   :  { %s82_s22 = sshll.u32 %s9605_s25, 4  ;;  %s104_s29 = sshll.u32 %s9606_s28, 4  ;;  %s83_s22 = int_to_ptr.vmem [resolvable:$true] %s82_s22  ;;  %s105_s29 = int_to_ptr.vmem [resolvable:$true] %s104_s29 }
  0x49   :  { %s9489_s4 = scalar_lea.vmem %s83_s22, 256  ;;  %p9494_p3 = scmp.lt.s32.totalorder %s83_s22, %s83_s22 }
  0x4a   :  { %p9490_p2 = scmp.ne.s32.totalorder %s83_s22, %s9489_s4  ;;  %p9495_p4 = scmp.lt.s32.totalorder %s9489_s4, %s9489_s4 }
  0x4c   :  { %p9496_p5 = por %p9495_p4, %p9494_p3 }
  0x4e   :  { %p9497_p6 = pnand %p9496_p5, %p9490_p2 }
  0x50   :  { %9500 = shalt.err (!%p9497_p6)
}
  0x51   :  { %85 = dma.hbm_to_vmem [thread:$0]  %s10272_s5, 256, %s83_s22, [#allocation11]  }
  0x52   :  { %s9509_s18 = scalar_lea.vmem %s105_s29, 256  ;;  %p9514_p8 = scmp.lt.s32.totalorder %s105_s29, %s105_s29 }
  0x53   :  { %p9510_p7 = scmp.ne.s32.totalorder %s105_s29, %s9509_s18  ;;  %p9515_p9 = scmp.lt.s32.totalorder %s9509_s18, %s9509_s18 }
  0x55   :  { %p9516_p10 = por %p9515_p9, %p9514_p8 }
  0x57   :  { %p9517_p11 = pnand %p9516_p10, %p9510_p7 }
  0x59   :  { %9520 = shalt.err (!%p9517_p11)
}
  0x5a   :  { %107 = dma.hbm_to_vmem [thread:$0]  %s10274_s7, 256, %s105_s29, [#allocation14]  }
  0x5b   :  { %s9607_s20 = smov [#allocation18]   ;;  %s9608_s6 = smov [#allocation19]  }
  0x5c   :  { %s126_s23 = sshll.u32 %s9607_s20, 4  ;;  %s135_s21 = sshll.u32 %s9608_s6, 4  ;;  %s127_s23 = int_to_ptr.vmem [resolvable:$true] %s126_s23  ;;  %s136_s21 = int_to_ptr.vmem [resolvable:$true] %s135_s21 }
  0x5d   :  { %s9529_s1 = scalar_lea.vmem %s127_s23, 256  ;;  %p9534_p13 = scmp.lt.s32.totalorder %s127_s23, %s127_s23 }
  0x5e   :  { %p9530_p12 = scmp.ne.s32.totalorder %s127_s23, %s9529_s1  ;;  %p9535_p0 = scmp.lt.s32.totalorder %s9529_s1, %s9529_s1 }
  0x60   :  { %p9536_p1 = por %p9535_p0, %p9534_p13 }
  0x62   :  { %p9537_p2 = pnand %p9536_p1, %p9530_p12 }
  0x64   :  { %9540 = shalt.err (!%p9537_p2)
}
  0x65   :  { %129 = dma.hbm_to_vmem [thread:$0]  %s10276_s9, 256, %s127_s23, [#allocation17]  }
  0x66   :  { %s9549_s0 = scalar_lea.vmem %s136_s21, 4096  ;;  %p9554_p4 = scmp.lt.s32.totalorder %s136_s21, %s136_s21 }
  0x67   :  { %p9550_p3 = scmp.ne.s32.totalorder %s136_s21, %s9549_s0  ;;  %p9555_p5 = scmp.lt.s32.totalorder %s9549_s0, %s9549_s0 }
  0x69   :  { %p9556_p6 = por %p9555_p5, %p9554_p4 }
  0x6b   :  { %p9557_p7 = pnand %p9556_p6, %p9550_p3 }
  0x6d   :  { %9560 = shalt.err (!%p9557_p7)
}
  0x6e   :  { %s9609_s7 = smov 64   ;;  %s9610_s17 = smov 4  }
  0x6f   :  { %141 = dma.hbm_to_vmem [thread:$0]  %s10277_s10, 4096, %s136_s21, [#allocation20], %s9609_s7, %s9609_s7, %s9610_s17  }
  0x70   :  { %9581 = dma.done.wait [#allocation5], 256  }
  0x71   :  { %9582 = vsyncadd [#allocation5], 4294967040 }
  0x72   :  { %9583 = dma.done.wait [#allocation8], 512  }
  0x73   :  { %9584 = vsyncadd [#allocation8], 4294966784 }
  0x74   :  { %9585 = dma.done.wait [#allocation11], 20736  }
  0x75   :  { %9586 = vsyncadd [#allocation11], 4294946560 }
  0x76   :  { %9587 = dma.done.wait [#allocation14], 20736  }
  0x77   :  { %9588 = vsyncadd [#allocation14], 4294946560 }
  0x78   :  { %9589 = dma.done.wait [#allocation17], 20736  }
  0x79   :  { %9590 = vsyncadd [#allocation17], 4294946560 }
  0x7a   :  { %9591 = dma.done.wait [#allocation20], 4096  }
  0x7b   :  { %9592 = vsyncadd [#allocation20], 4294963200  ;;  %v9611_v0 = vmov 0   ;;  %v8374_v1 = vld [vmem:[%s10269_s2 + $0x2c] ss:$20 sps:$4 sm:$0xff]   ;;  %v185_v5 = vld [vmem:[#allocation4] sm:$0xff]  ;;  %v435_v33 = vlaneseq }
  0x7c   :  { %304 = vmatprep.mubr.bf16.mxu0 %v9611_v0  ;;  %187 = vst [vmem:[#allocation3] sm:$0xff] %v9611_v0  ;;  %188 = vst [vmem:[#allocation3 + $0x8] sm:$0xff] %v9611_v0  ;;  %347 = vmatprep.mubr.bf16.mxu1 %v9611_v0  ;;  %v8376_v2 = vld [vmem:[%s10269_s2 + $0x28] ss:$20 sps:$4 sm:$0xff]   ;;  %v8377_v3 = vld [vmem:[%s10269_s2 + $0x4] ss:$20 sps:$4 sm:$0xff]   ;;  %v9776_v15 = vcombine.high %v9611_v0, %v9611_v0  ;;  %v9778_v16 = vcombine.low %v9611_v0, %v9611_v0 }
  0x7d   :  { %189 = vst [vmem:[#allocation3 + $0x10] sm:$0xff] %v9611_v0  ;;  %191 = vst [vmem:[#allocation3 + $0x20] sm:$0xff] %v9611_v0  ;;  %284 = vmatprep.subr.bf16.mxu0 %v8374_v1  ;;  %v8379_v4 = vld [vmem:[%s10269_s2] ss:$20 sps:$4 sm:$0xff]   ;;  %v186_v6 = vld [vmem:[#allocation4 + $0x8] sm:$0xff]  ;;  %vm268_vm0 = vcmask 261120  }
  0x7e   :  { %193 = vst [vmem:[#allocation3 + $0x30] sm:$0xff] %v9611_v0  ;;  %196 = vst [vmem:[#allocation3 + $0x48] sm:$0xff] %v9611_v0  ;;  %285 = vmatpush1.bf16.msra.mxu0 %v8376_v2  ;;  %v8380_v7 = vld [vmem:[%s10269_s2 + $0x38] ss:$20 sps:$4 sm:$0xff]   ;;  %v203_v8 = vpack.c.bf16 %v186_v6, %v185_v5  ;;  %v9612_v9 = vmov 0.0   ;;  %vm9613_vm1 = vmmov 0  }
  0x7f   :  { %198 = vst [vmem:[#allocation3 + $0x58] sm:$0xff] %v9611_v0  ;;  %200 = vst [vmem:[#allocation3 + $0x68] sm:$0xff] %v9611_v0  ;;  %286 = vmatprep.subr.bf16.mxu0 %v8377_v3  ;;  %v8381_v10 = vld [vmem:[%s10269_s2 + $0x10] ss:$20 sps:$4 sm:$0xff]   ;;  %v8382_v11 = vld [vmem:[%s10269_s2 + $0x34] ss:$20 sps:$4 sm:$0xff]  }
  0x80   :  { %202 = vst [vmem:[#allocation3 + $0x78] sm:$0xff] %v9611_v0  ;;  %v8384_v12 = vld [vmem:[%s10269_s2 + $0x30] ss:$20 sps:$4 sm:$0xff]   ;;  %327 = vmatprep.subr.bf16.mxu1 %v8382_v11  ;;  %v8385_v13 = vld [vmem:[%s10269_s2 + $0xc] ss:$20 sps:$4 sm:$0xff]   ;;  %v436_v34 = vshrl.u32 %v435_v33, 7 }
  0x81   :  { %328 = vmatpush1.bf16.msra.mxu1 %v8384_v12  ;;  %v8387_v14 = vld [vmem:[%s10269_s2 + $0x8] ss:$20 sps:$4 sm:$0xff]   ;;  %v9614_v44 = vmov 1966171168   ;;  %v183_v60 = vld [vmem:[#allocation7] sm:$0xff]  ;;  %vm564_vm4 = vcmask 130048  }
  0x82   :  { %287 = vmatpush1.bf16.msra.mxu0 %v8379_v4  ;;  %329 = vmatprep.subr.bf16.mxu1 %v8385_v13  ;;  %v9785_v35 = vsub.s32 2, %v436_v34  ;;  %v9787_v36 = vsub.s32 1, %v436_v34  ;;  %v9791_v40 = vsub.s32 3, %v436_v34  ;;  %v9794_v42 = vsub.s32 0, %v436_v34  ;;  %v184_v6 = vld [vmem:[#allocation7 + $0x8] sm:$0xff]  ;;  %s9615_s2 = smov 16  }
  0x83   :  { %8310 = vmatprep.subr.bf16.mxu0 %v9612_v9  ;;  %v481_v45 = vunpack.c.l.s4 %v9614_v44  ;;  %s9616_s25 = smov 32   ;;  %s9617_s22 = smov 48   ;;  %vm672_vm11 = vcmask 261248   ;;  %vm692_vm12 = vcmask 392448   ;;  %vm712_vm13 = vcmask 523648  }
  0x84   :  { %v8391_v31 = vld [vmem:[#allocation3 + $0x4] ss:$16 sps:$4 sm:$0xff]   ;;  %vm845_vm14 = vcmask 523264  }
  0x85   :  { %7418 = vmatmul.mubr.msk.bf16.vlgmr.msra.gmra.mxu0 %vm268_vm0, %v203_v8  ;;  %330 = vmatpush1.bf16.msra.mxu1 %v8387_v14  ;;  %v8390_v30 = vld [vmem:[#allocation3 + $0x20] ss:$16 sps:$4 sm:$0xff]   ;;  %v482_v46 = vunpack.c.0.s8 %v481_v45 }
  0x86   :  { %8311 = vmatpush3.bf16.msra.mxu0 %v8380_v7  ;;  %8314 = vmatprep.mubr.msk.bf16.mxu0 %vm9613_vm1, %v9612_v9 }
  0x87   :  { %8312 = vmatprep.subr.bf16.mxu0 %v9612_v9  ;;  %857 = vmatprep.subr.bf16.mxu1 %v9776_v15  ;;  %v9797_v47 = vsub.s32 %v482_v46, %v436_v34 }
  0x88   :  { %7419 = vmatmul.mubr.msk.bf16.vlgmr.msra.gmra.mxu1 %vm268_vm0, %v203_v8 }
  0x89   :  { %858 = vmatpush1.bf16.msra.mxu1 %v9778_v16  ;;  %881 = vmatprep.mubr.bf16.mxu1 %v9611_v0 }
  0x8a   :  { %8313 = vmatpush3.bf16.msra.mxu0 %v8381_v10  ;;  %859 = vmatprep.subr.bf16.mxu1 %v9776_v15 }
  0x8d   :  { %8315 = vmatmul.mubr.msk.bf16.vlgmr.msra.gmra.mxu0 %vm268_vm0, %v203_v8  ;;  %860 = vmatpush1.bf16.msra.mxu1 %v9778_v16 }
  0x8e   :  { %924 = vmatprep.mubr.bf16.mxu0 %v9611_v0 }
 0x145   :  { %v306_v17 = vpop.f32.mrf.mxu0 }
 0x146   :  { %v8085_v18 = vpack.c.bf16 %v306_v17, %v306_v17 }
 0x147   :  { %v308_v19 = vpop.f32.mrf.mxu0 }
 0x148   :  { %662 = vst [vmem:[#allocation3] sm:$0xf] %v8085_v18  ;;  %v8087_v20 = vpack.c.bf16 %v308_v19, %v308_v19 }
 0x149   :  { %v310_v21 = vpop.f32.mrf.mxu0 }
 0x14a   :  { %682 = vst [vmem:[#allocation3 + $0x24] sm:$0xf] %v8087_v20  ;;  %v8086_v22 = vpack.c.bf16 %v310_v21, %v310_v21 }
 0x14b   :  { %v312_v23 = vpop.f32.mrf.mxu0 }
 0x14c   :  { %663 = vst [vmem:[#allocation3 + $0x10] sm:$0xf] %v8086_v22  ;;  %v8088_v24 = vpack.c.bf16 %v312_v23, %v312_v23 }
 0x14d   :  { %v392_v25 = vpop.f32.mrf.mxu0 }
 0x14e   :  { %683 = vst [vmem:[#allocation3 + $0x34] sm:$0xf] %v8088_v24  ;;  %403 = vxpose.xlu0.b32.start [1/2] (short) (narrow) %v392_v25, 16 }
 0x14f   :  { %v8316_v26 = vpop.f32.mrf.mxu0 }
 0x151   :  { %v395_v27 = vpop.f32.mrf.mxu0 }
 0x152   :  { %404 = vxpose.xlu0.b32.end [2/2] (short) (narrow) %v395_v27, 16 }
 0x153   :  { %v8317_v28 = vpop.f32.mrf.mxu0  ;;  %v8393_v32 = vld [vmem:[#allocation3] ss:$16 sps:$4 sm:$0xff]  }
 0x155   :  { %v8388_v29 = vld [vmem:[#allocation3 + $0x24] ss:$16 sps:$4 sm:$0xff]  }
 0x156   :  { %861 = vmatprep.subr.bf16.mxu1 %v8388_v29 }
 0x157   :  { %862 = vmatpush1.bf16.msra.mxu1 %v8390_v30 }
 0x158   :  { %863 = vmatprep.subr.bf16.mxu1 %v8391_v31 }
 0x15b   :  { %864 = vmatpush1.bf16.msra.mxu1 %v8393_v32 }
 0x1ca   :  { %v419_v37 = vpop.trf.xlu0 }
 0x1cb   :  { %v460_v38 = vrot.slane %v419_v37, %v9785_v35  ;;  %v449_v39 = vrot.slane %v419_v37, %v9787_v36  ;;  %v471_v41 = vrot.slane %v419_v37, %v9791_v40  ;;  %v438_v43 = vrot.slane %v419_v37, %v9794_v42 }
 0x1cd   :  { %462 = vbcast.lane.b32.xlu0 %v460_v38, 256  ;;  %451 = vbcast.lane.b32.xlu1 %v449_v39, 256 }
 0x1ce   :  { %v420_v48 = vpop.trf.xlu0 }
 0x1cf   :  { %v486_v49 = vrot.slane %v420_v48, %v9797_v47 }
 0x1d1   :  { %455 = vbcast.lane.b32.xlu1 %v449_v39, 264  ;;  %v487_v50 = vcombine.high %v486_v49, %v486_v49  ;;  %v494_v51 = vrot.slane %v486_v49, %v9797_v47 }
 0x1d3   :  { %v501_v52 = vrot.slane %v487_v50, %v9797_v47  ;;  %v502_v53 = vcombine.high %v494_v51, %v494_v51  ;;  %v507_v31 = vrot.slane %v494_v51, %v9794_v42 }
 0x1d5   :  { %466 = vbcast.lane.b32.xlu1 %v460_v38, 264  ;;  %v511_v54 = vrot.slane %v501_v52, %v9794_v42  ;;  %v515_v55 = vrot.slane %v502_v53, %v9794_v42  ;;  %v503_v5 = vcombine.high %v501_v52, %v501_v52 }
 0x1d7   :  { %v519_v17 = vrot.slane %v503_v5, %v9794_v42 }
 0x1d9   :  { %473 = vbcast.lane.b32.xlu1 %v471_v41, 256 }
 0x1dd   :  { %477 = vbcast.lane.b32.xlu1 %v471_v41, 264 }
 0x1e1   :  { %440 = vbcast.lane.b32.xlu1 %v438_v43, 256 }
 0x1e5   :  { %444 = vbcast.lane.b32.xlu1 %v438_v43, 264 }
 0x23f   :  { %v452_v56 = vpop.permute.xlu1 %451  ;;  %v463_v57 = vpop.permute.xlu0 %462 }
 0x240   :  { %v526_v58 = vadd.f32 %v511_v54, %v452_v56  ;;  %v528_v59 = vadd.f32 %v515_v55, %v463_v57 }
 0x242   :  { %v542_v61 = vmul.f32 0.2, %v526_v58  ;;  %vm536_vm2 = vcmp.gt.f32.partialorder %v528_v59, 0.0  ;;  %v544_v62 = vmul.f32 0.2, %v528_v59  ;;  %vm534_vm3 = vcmp.gt.f32.partialorder %v526_v58, 0.0 }
 0x243   :  { %v456_v63 = vpop.permute.xlu1 %455 }
 0x244   :  { %v527_v0 = vadd.f32 %v511_v54, %v456_v63  ;;  %v550_v1 = vsel %vm534_vm3, %v526_v58, %v542_v61  ;;  %v552_v2 = vsel %vm536_vm2, %v528_v59, %v544_v62 }
 0x245   :  { %v558_v3 = vadd.f32 %v550_v1, %v183_v60  ;;  %v560_v10 = vadd.f32 %v552_v2, %v183_v60 }
 0x246   :  { %v543_v4 = vmul.f32 0.2, %v527_v0  ;;  %vm535_vm5 = vcmp.gt.f32.partialorder %v527_v0, 0.0 }
 0x247   :  { %v467_v7 = vpop.permute.xlu1 %466  ;;  %v571_v8 = vsel %vm564_vm4, %v558_v3, -inf  ;;  %v577_v20 = vsel %vm564_vm4, %v560_v10, -inf }
 0x248   :  { %v529_v11 = vadd.f32 %v515_v55, %v467_v7  ;;  %572 = vmax.xlane.f32.xlu1 %v571_v8  ;;  %v551_v12 = vsel %vm535_vm5, %v527_v0, %v543_v4 }
 0x249   :  { %v559_v13 = vadd.f32 %v551_v12, %v184_v6 }
 0x24a   :  { %v545_v14 = vmul.f32 0.2, %v529_v11  ;;  %vm537_vm6 = vcmp.gt.f32.partialorder %v529_v11, 0.0 }
 0x24b   :  { %v474_v18 = vpop.permute.xlu1 %473  ;;  %v574_v19 = vsel %vm564_vm4, %v559_v13, -inf }
 0x24c   :  { %v530_v21 = vadd.f32 %v519_v17, %v474_v18  ;;  %575 = vmax.xlane.f32.xlu0 %v574_v19  ;;  %578 = vmax.xlane.f32.xlu1 %v577_v20  ;;  %v553_v22 = vsel %vm537_vm6, %v529_v11, %v545_v14 }
 0x24d   :  { %v561_v23 = vadd.f32 %v553_v22, %v184_v6 }
 0x24e   :  { %v546_v24 = vmul.f32 0.2, %v530_v21  ;;  %vm538_vm7 = vcmp.gt.f32.partialorder %v530_v21, 0.0 }
 0x24f   :  { %v478_v25 = vpop.permute.xlu1 %477  ;;  %v580_v26 = vsel %vm564_vm4, %v561_v23, -inf }
 0x250   :  { %v531_v27 = vadd.f32 %v519_v17, %v478_v25  ;;  %581 = vmax.xlane.f32.xlu1 %v580_v26  ;;  %v554_v28 = vsel %vm538_vm7, %v530_v21, %v546_v24 }
 0x251   :  { %v562_v29 = vadd.f32 %v554_v28, %v183_v60 }
 0x252   :  { %v547_v30 = vmul.f32 0.2, %v531_v27  ;;  %vm539_vm8 = vcmp.gt.f32.partialorder %v531_v27, 0.0 }
 0x253   :  { %v441_v32 = vpop.permute.xlu1 %440  ;;  %v583_v33 = vsel %vm564_vm4, %v562_v29, -inf }
 0x254   :  { %v524_v34 = vadd.f32 %v507_v31, %v441_v32  ;;  %584 = vmax.xlane.f32.xlu1 %v583_v33  ;;  %v555_v37 = vsel %vm539_vm8, %v531_v27, %v547_v30  ;;  %v349_v32 = vpop.f32.mrf.mxu1 }
 0x255   :  { %v563_v38 = vadd.f32 %v555_v37, %v184_v6  ;;  %v8089_v33 = vpack.c.bf16 %v349_v32, %v349_v32  ;;  %v8423_v32 = vld [vmem:[#allocation10 + $0x324] ss:$20 sps:$4 sm:$0xff]  }
 0x256   :  { %v540_v39 = vmul.f32 0.2, %v524_v34  ;;  %vm532_vm9 = vcmp.gt.f32.partialorder %v524_v34, 0.0 }
 0x257   :  { %v445_v41 = vpop.permute.xlu1 %444  ;;  %v586_v43 = vsel %vm564_vm4, %v563_v38, -inf  ;;  %702 = vst [vmem:[#allocation3 + $0x48] sm:$0xf] %v8089_v33  ;;  %v8418_v33 = vld [vmem:[#allocation10 + $0xa0] ss:$20 sps:$4 sm:$0xff]  }
 0x258   :  { %v525_v44 = vadd.f32 %v507_v31, %v445_v41  ;;  %587 = vmax.xlane.f32.xlu1 %v586_v43  ;;  %v548_v45 = vsel %vm532_vm9, %v524_v34, %v540_v39  ;;  %v351_v34 = vpop.f32.mrf.mxu1 }
 0x259   :  { %v556_v46 = vadd.f32 %v548_v45, %v183_v60  ;;  %v8091_v37 = vpack.c.bf16 %v351_v34, %v351_v34  ;;  %v8421_v34 = vld [vmem:[#allocation10 + $0x320] ss:$20 sps:$4 sm:$0xff]  }
 0x25a   :  { %v541_v48 = vmul.f32 0.2, %v525_v44  ;;  %vm533_vm10 = vcmp.gt.f32.partialorder %v525_v44, 0.0 }
 0x25b   :  { %v565_v49 = vsel %vm564_vm4, %v556_v46, -inf  ;;  %722 = vst [vmem:[#allocation3 + $0x6c] sm:$0xf] %v8091_v37  ;;  %v8426_v37 = vld [vmem:[#allocation10 + $0x7c] ss:$20 sps:$4 sm:$0xff]  }
 0x25c   :  { %566 = vmax.xlane.f32.xlu0 %v565_v49  ;;  %v549_v50 = vsel %vm533_vm10, %v525_v44, %v541_v48 }
 0x25d   :  { %v557_v51 = vadd.f32 %v549_v50, %v184_v6  ;;  %v8397_v50 = vld [vmem:[#allocation3 + $0x4c] ss:$16 sps:$4 sm:$0xff]  }
 0x25f   :  { %v568_v52 = vsel %vm564_vm4, %v557_v51, -inf }
 0x260   :  { %569 = vmax.xlane.f32.xlu1 %v568_v52 }
 0x2d1   :  { %v573_v53 = vpop.xlane.xlu1 %572 }
 0x2d2   :  { %v591_v54 = vsub.f32 %v558_v3, %v573_v53 }
 0x2d4   :  { %v601_v55 = vmul.f32 1.442695, %v591_v54 }
 0x2d5   :  { %v576_v56 = vpop.xlane.xlu0 %575  ;;  %v579_v57 = vpop.xlane.xlu1 %578 }
 0x2d6   :  { %9152 = vpow2.f32 %v601_v55  ;;  %v592_v58 = vsub.f32 %v559_v13, %v576_v56  ;;  %v593_v59 = vsub.f32 %v560_v10, %v579_v57 }
 0x2d8   :  { %v603_v61 = vmul.f32 1.442695, %v592_v58  ;;  %v605_v60 = vmul.f32 1.442695, %v593_v59 }
 0x2d9   :  { %v582_v62 = vpop.xlane.xlu1 %581 }
 0x2da   :  { %9154 = vpow2.f32 %v603_v61  ;;  %v594_v63 = vsub.f32 %v561_v23, %v582_v62 }
 0x2db   :  { %9156 = vpow2.f32 %v605_v60 }
 0x2dc   :  { %v607_v0 = vmul.f32 1.442695, %v594_v63 }
 0x2dd   :  { %v585_v1 = vpop.xlane.xlu1 %584 }
 0x2de   :  { %9158 = vpow2.f32 %v607_v0  ;;  %v595_v2 = vsub.f32 %v562_v29, %v585_v1 }
 0x2e0   :  { %v609_v4 = vmul.f32 1.442695, %v595_v2  ;;  %v8402_v2 = vld [vmem:[#allocation10 + $0x11c] ss:$20 sps:$4 sm:$0xff]  }
 0x2e1   :  { %v588_v5 = vpop.xlane.xlu1 %587  ;;  %2073 = vmatprep.subr.bf16.mxu1 %v8402_v2  ;;  %v8468_v2 = vld [vmem:[#allocation10 + $0x1e4] ss:$20 sps:$4 sm:$0xff]  }
 0x2e2   :  { %9160 = vpow2.f32 %v609_v4  ;;  %v596_v3 = vsub.f32 %v563_v38, %v588_v5  ;;  %v353_v38 = vpop.f32.mrf.mxu1  ;;  %v8405_v5 = vld [vmem:[#allocation10 + $0x39c] ss:$20 sps:$4 sm:$0xff]  }
 0x2e3   :  { %v9814_v6 = vpop.eup %9152  ;;  %v8090_v39 = vpack.c.bf16 %v353_v38, %v353_v38  ;;  %v8429_v38 = vld [vmem:[#allocation10 + $0x2fc] ss:$20 sps:$4 sm:$0xff]  }
 0x2e4   :  { %v611_v7 = vmul.f32 1.442695, %v596_v3  ;;  %v619_v8 = vsel %vm564_vm4, %v9814_v6, 0.0  ;;  %v355_v41 = vpop.f32.mrf.mxu1 }
 0x2e5   :  { %620 = vadd.xlane.f32.xlu0 %v619_v8  ;;  %v567_v10 = vpop.xlane.xlu0 %566  ;;  %703 = vst [vmem:[#allocation3 + $0x58] sm:$0xf] %v8090_v39  ;;  %v8092_v43 = vpack.c.bf16 %v355_v41, %v355_v41  ;;  %v8424_v39 = vld [vmem:[#allocation10 + $0x78] ss:$20 sps:$4 sm:$0xff]  }
 0x2e6   :  { %9162 = vpow2.f32 %v611_v7  ;;  %v589_v11 = vsub.f32 %v556_v46, %v567_v10  ;;  %v8396_v46 = vld [vmem:[#allocation3 + $0x68] ss:$16 sps:$4 sm:$0xff]  }
 0x2e7   :  { %v9818_v12 = vpop.eup %9154  ;;  %723 = vst [vmem:[#allocation3 + $0x7c] sm:$0xf] %v8092_v43  ;;  %v8427_v41 = vld [vmem:[#allocation10 + $0x2f8] ss:$20 sps:$4 sm:$0xff]   ;;  %v8432_v43 = vld [vmem:[#allocation10 + $0x54] ss:$20 sps:$4 sm:$0xff]  }
 0x2e8   :  { %v9820_v13 = vpop.eup %9156  ;;  %v597_v14 = vmul.f32 1.442695, %v589_v11  ;;  %v622_v17 = vsel %vm564_vm4, %v9818_v12, 0.0 }
 0x2e9   :  { %623 = vadd.xlane.f32.xlu1 %v622_v17  ;;  %v570_v18 = vpop.xlane.xlu1 %569  ;;  %v625_v19 = vsel %vm564_vm4, %v9820_v13, 0.0 }
 0x2ea   :  { %9164 = vpow2.f32 %v597_v14  ;;  %v590_v20 = vsub.f32 %v557_v51, %v570_v18  ;;  %626 = vadd.xlane.f32.xlu0 %v625_v19  ;;  %v8400_v18 = vld [vmem:[#allocation10 + $0x118] ss:$20 sps:$4 sm:$0xff]  }
 0x2eb   :  { %v9826_v21 = vpop.eup %9158 }
 0x2ec   :  { %v599_v22 = vmul.f32 1.442695, %v590_v20  ;;  %v628_v23 = vsel %vm564_vm4, %v9826_v21, 0.0  ;;  %v8399_v51 = vld [vmem:[#allocation3 + $0x48] ss:$16 sps:$4 sm:$0xff]  }
 0x2ed   :  { %629 = vadd.xlane.f32.xlu1 %v628_v23  ;;  %v8408_v23 = vld [vmem:[#allocation10 + $0xf4] ss:$20 sps:$4 sm:$0xff]  }
 0x2ee   :  { %9166 = vpow2.f32 %v599_v22  ;;  %v8394_v45 = vld [vmem:[#allocation3 + $0x6c] ss:$16 sps:$4 sm:$0xff]  }
 0x2ef   :  { %v9830_v24 = vpop.eup %9160  ;;  %900 = vmatprep.subr.bf16.mxu0 %v8394_v45  ;;  %v8430_v45 = vld [vmem:[#allocation10 + $0x50] ss:$20 sps:$4 sm:$0xff]  }
 0x2f0   :  { %v631_v25 = vsel %vm564_vm4, %v9830_v24, 0.0  ;;  %901 = vmatpush1.bf16.msra.mxu0 %v8396_v46  ;;  %v8433_v46 = vld [vmem:[#allocation10 + $0x2d0] ss:$20 sps:$4 sm:$0xff]  }
 0x2f1   :  { %632 = vadd.xlane.f32.xlu0 %v631_v25  ;;  %902 = vmatprep.subr.bf16.mxu0 %v8397_v50  ;;  %v8406_v25 = vld [vmem:[#allocation10 + $0xf0] ss:$20 sps:$4 sm:$0xff]   ;;  %v8436_v50 = vld [vmem:[#allocation10 + $0x28] ss:$20 sps:$4 sm:$0xff]  }
 0x2f3   :  { %v9834_v26 = vpop.eup %9162 }
 0x2f4   :  { %v634_v27 = vsel %vm564_vm4, %v9834_v26, 0.0  ;;  %903 = vmatpush1.bf16.msra.mxu0 %v8399_v51  ;;  %v8439_v51 = vld [vmem:[#allocation10 + $0x2a8] ss:$20 sps:$4 sm:$0xff]  }
 0x2f5   :  { %635 = vadd.xlane.f32.xlu1 %v634_v27  ;;  %904 = vmatprep.subr.bf16.mxu0 %v9776_v15  ;;  %v8414_v27 = vld [vmem:[#allocation10 + $0xcc] ss:$20 sps:$4 sm:$0xff]  }
 0x2f7   :  { %v9838_v28 = vpop.eup %9164 }
 0x2f8   :  { %v613_v29 = vsel %vm564_vm4, %v9838_v28, 0.0  ;;  %905 = vmatpush1.bf16.msra.mxu0 %v9778_v16 }
 0x2f9   :  { %614 = vadd.xlane.f32.xlu0 %v613_v29  ;;  %906 = vmatprep.subr.bf16.mxu0 %v9776_v15  ;;  %v8412_v29 = vld [vmem:[#allocation10 + $0xc8] ss:$20 sps:$4 sm:$0xff]  }
 0x2fb   :  { %v9842_v30 = vpop.eup %9166 }
 0x2fc   :  { %v616_v31 = vsel %vm564_vm4, %v9842_v30, 0.0  ;;  %907 = vmatpush1.bf16.msra.mxu0 %v9778_v16 }
 0x2fd   :  { %617 = vadd.xlane.f32.xlu1 %v616_v31  ;;  %2116 = vmatprep.subr.bf16.mxu0 %v8405_v5  ;;  %v8420_v31 = vld [vmem:[#allocation10 + $0xa4] ss:$20 sps:$4 sm:$0xff]   ;;  %v8466_v5 = vld [vmem:[#allocation10 + $0x1e0] ss:$20 sps:$4 sm:$0xff]  }
 0x36e   :  { %v621_v44 = vpop.xlane.xlu0 %620 }
 0x36f   :  { %9168 = vrcp.f32 %v621_v44  ;;  %v8435_v44 = vld [vmem:[#allocation10 + $0x2d4] ss:$20 sps:$4 sm:$0xff]  }
 0x372   :  { %v624_v48 = vpop.xlane.xlu1 %623 }
 0x373   :  { %9170 = vrcp.f32 %v624_v48  ;;  %v627_v49 = vpop.xlane.xlu0 %626  ;;  %v8438_v48 = vld [vmem:[#allocation10 + $0x2c] ss:$20 sps:$4 sm:$0xff]  }
 0x374   :  { %9172 = vrcp.f32 %v627_v49  ;;  %v8441_v49 = vld [vmem:[#allocation10 + $0x2ac] ss:$20 sps:$4 sm:$0xff]  }
 0x376   :  { %v630_v52 = vpop.xlane.xlu1 %629 }
 0x377   :  { %9174 = vrcp.f32 %v630_v52  ;;  %v8444_v52 = vld [vmem:[#allocation10 + $0x4] ss:$20 sps:$4 sm:$0xff]  }
 0x37a   :  { %v633_v53 = vpop.xlane.xlu0 %632 }
 0x37b   :  { %9176 = vrcp.f32 %v633_v53  ;;  %v8447_v53 = vld [vmem:[#allocation10 + $0x284] ss:$20 sps:$4 sm:$0xff]  }
 0x37c   :  { %v9169_v54 = vpop.eup %9168 }
 0x37d   :  { %v647_v55 = vmul.f32 %v9169_v54, %v9814_v6  ;;  %v8442_v54 = vld [vmem:[#allocation10] ss:$20 sps:$4 sm:$0xff]  }
 0x37e   :  { %v636_v56 = vpop.xlane.xlu1 %635 }
 0x37f   :  { %9178 = vrcp.f32 %v636_v56  ;;  %666 = vrot.lane.b32.xlu0 %v647_v55, %s9615_s2  ;;  %v8445_v55 = vld [vmem:[#allocation10 + $0x280] ss:$20 sps:$4 sm:$0xff]   ;;  %v8450_v56 = vld [vmem:[#allocation10 + $0x25c] ss:$20 sps:$4 sm:$0xff]  }
 0x380   :  { %v9171_v57 = vpop.eup %9170 }
 0x381   :  { %v648_v58 = vmul.f32 %v9171_v57, %v9818_v12  ;;  %v9173_v59 = vpop.eup %9172  ;;  %v8453_v57 = vld [vmem:[#allocation10 + $0x4dc] ss:$20 sps:$4 sm:$0xff]  }
 0x382   :  { %v615_v61 = vpop.xlane.xlu0 %614  ;;  %v649_v60 = vmul.f32 %v9173_v59, %v9820_v13  ;;  %v8451_v59 = vld [vmem:[#allocation10 + $0x4d8] ss:$20 sps:$4 sm:$0xff]  }
 0x383   :  { %9180 = vrcp.f32 %v615_v61  ;;  %668 = vrot.lane.b32.xlu1 %v648_v58, %s9615_s2  ;;  %v8448_v58 = vld [vmem:[#allocation10 + $0x258] ss:$20 sps:$4 sm:$0xff]   ;;  %v8456_v61 = vld [vmem:[#allocation10 + $0x234] ss:$20 sps:$4 sm:$0xff]  }
 0x384   :  { %v9175_v15 = vpop.eup %9174 }
 0x385   :  { %v650_v0 = vmul.f32 %v9175_v15, %v9826_v21  ;;  %v8403_v21 = vld [vmem:[#allocation10 + $0x398] ss:$20 sps:$4 sm:$0xff]   ;;  %v8454_v15 = vld [vmem:[#allocation10 + $0x230] ss:$20 sps:$4 sm:$0xff]  }
 0x386   :  { %v618_v62 = vpop.xlane.xlu1 %617 }
 0x387   :  { %9182 = vrcp.f32 %v618_v62  ;;  %686 = vrot.lane.b32.xlu1 %v649_v60, %s9616_s25  ;;  %v8459_v60 = vld [vmem:[#allocation10 + $0x4b4] ss:$20 sps:$4 sm:$0xff]   ;;  %v8457_v62 = vld [vmem:[#allocation10 + $0x4b0] ss:$20 sps:$4 sm:$0xff]  }
 0x388   :  { %v9177_v63 = vpop.eup %9176 }
 0x389   :  { %v651_v16 = vmul.f32 %v9177_v63, %v9830_v24  ;;  %v8411_v24 = vld [vmem:[#allocation10 + $0x374] ss:$20 sps:$4 sm:$0xff]   ;;  %v8462_v63 = vld [vmem:[#allocation10 + $0x20c] ss:$20 sps:$4 sm:$0xff]  }
 0x38b   :  { %688 = vrot.lane.b32.xlu1 %v650_v0, %s9616_s25  ;;  %706 = vrot.lane.b32.xlu0 %v651_v16, %s9617_s22  ;;  %v8465_v0 = vld [vmem:[#allocation10 + $0x48c] ss:$20 sps:$4 sm:$0xff]   ;;  %v8460_v16 = vld [vmem:[#allocation10 + $0x208] ss:$20 sps:$4 sm:$0xff]  }
 0x38c   :  { %v9179_v1 = vpop.eup %9178 }
 0x38d   :  { %v652_v4 = vmul.f32 %v9179_v1, %v9834_v26  ;;  %v8409_v26 = vld [vmem:[#allocation10 + $0x370] ss:$20 sps:$4 sm:$0xff]   ;;  %v8463_v1 = vld [vmem:[#allocation10 + $0x488] ss:$20 sps:$4 sm:$0xff]  }
 0x38f   :  { %708 = vrot.lane.b32.xlu1 %v652_v4, %s9617_s22  ;;  %v8471_v4 = vld [vmem:[#allocation10 + $0x464] ss:$20 sps:$4 sm:$0xff]  }
 0x390   :  { %v9181_v3 = vpop.eup %9180 }
 0x391   :  { %v645_v6 = vmul.f32 %v9181_v3, %v9838_v28  ;;  %v8417_v28 = vld [vmem:[#allocation10 + $0x34c] ss:$20 sps:$4 sm:$0xff]  }
 0x392   :  { %v8469_v3 = vld [vmem:[#allocation10 + $0x460] ss:$20 sps:$4 sm:$0xff]  }
 0x393   :  { %653 = vst.msk [vmem:[#allocation2] sm:$0xff] %vm564_vm4, %v645_v6  ;;  %v8474_v6 = vld [vmem:[#allocation10 + $0x1bc] ss:$20 sps:$4 sm:$0xff]  }
 0x394   :  { %v9183_v7 = vpop.eup %9182 }
 0x395   :  { %v646_v8 = vmul.f32 %v9183_v7, %v9842_v30  ;;  %v8415_v30 = vld [vmem:[#allocation10 + $0x348] ss:$20 sps:$4 sm:$0xff]  }
 0x396   :  { %v8477_v7 = vld [vmem:[#allocation10 + $0x43c] ss:$20 sps:$4 sm:$0xff]  }
 0x397   :  { %654 = vst.msk [vmem:[#allocation2 + $0x8] sm:$0xff] %vm564_vm4, %v646_v8  ;;  %v8472_v8 = vld [vmem:[#allocation10 + $0x1b8] ss:$20 sps:$4 sm:$0xff]  }
 0x3f1   :  { %v667_v10 = vpop.permute.xlu0 %666 }
 0x3f2   :  { %673 = vst.msk [vmem:[#allocation2] sm:$0xff] %vm672_vm11, %v667_v10  ;;  %v8475_v10 = vld [vmem:[#allocation10 + $0x438] ss:$20 sps:$4 sm:$0xff]  }
 0x3f5   :  { %v669_v11 = vpop.permute.xlu1 %668 }
 0x3f6   :  { %674 = vst.msk [vmem:[#allocation2 + $0x8] sm:$0xff] %vm672_vm11, %v669_v11  ;;  %v8480_v11 = vld [vmem:[#allocation10 + $0x194] ss:$20 sps:$4 sm:$0xff]  }
 0x3f9   :  { %v687_v12 = vpop.permute.xlu1 %686 }
 0x3fa   :  { %693 = vst.msk [vmem:[#allocation2] sm:$0xff] %vm692_vm12, %v687_v12  ;;  %v8483_v12 = vld [vmem:[#allocation10 + $0x414] ss:$20 sps:$4 sm:$0xff]  }
 0x3fd   :  { %v689_v13 = vpop.permute.xlu1 %688  ;;  %v707_v14 = vpop.permute.xlu0 %706 }
 0x3fe   :  { %694 = vst.msk [vmem:[#allocation2 + $0x8] sm:$0xff] %vm692_vm12, %v689_v13  ;;  %v8478_v13 = vld [vmem:[#allocation10 + $0x190] ss:$20 sps:$4 sm:$0xff]  }
 0x3ff   :  { %713 = vst.msk [vmem:[#allocation2] sm:$0xff] %vm712_vm13, %v707_v14  ;;  %v8481_v14 = vld [vmem:[#allocation10 + $0x410] ss:$20 sps:$4 sm:$0xff]  }
 0x401   :  { %v709_v17 = vpop.permute.xlu1 %708 }
 0x402   :  { %714 = vst.msk [vmem:[#allocation2 + $0x8] sm:$0xff] %vm712_vm13, %v709_v17  ;;  %v8486_v17 = vld [vmem:[#allocation10 + $0x16c] ss:$20 sps:$4 sm:$0xff]  }
 0x406   :  { %v724_v19 = vld [vmem:[#allocation2] sm:$0xff] }
 0x409   :  { %v725_v20 = vld [vmem:[#allocation2 + $0x8] sm:$0xff] }
 0x40a   :  { %v726_v22 = vpack.c.bf16 %v725_v20, %v724_v19  ;;  %v8484_v19 = vld [vmem:[#allocation10 + $0x168] ss:$20 sps:$4 sm:$0xff]  }
 0x40b   :  { %v8487_v20 = vld [vmem:[#allocation10 + $0x3e8] ss:$20 sps:$4 sm:$0xff]  }
 0x40c   :  { %7445 = vmatmul.mubr.msk.bf16.vlgmr.msra.gmra.mxu1 %vm845_vm14, %v726_v22  ;;  %7446 = vmatmul.mubr.msk.bf16.vlgmr.msra.gmra.mxu0 %vm845_vm14, %v726_v22  ;;  %v8492_v22 = vld [vmem:[#allocation10 + $0x144] ss:$20 sps:$4 sm:$0xff]  }
 0x40d   :  { %2074 = vmatpush1.bf16.msra.mxu1 %v8400_v18  ;;  %2117 = vmatpush1.bf16.msra.mxu0 %v8403_v21  ;;  %v8489_v18 = vld [vmem:[#allocation10 + $0x3ec] ss:$20 sps:$4 sm:$0xff]  }
 0x40e   :  { %2075 = vmatprep.subr.bf16.mxu1 %v8408_v23  ;;  %2118 = vmatprep.subr.bf16.mxu0 %v8411_v24  ;;  %v8490_v21 = vld [vmem:[#allocation10 + $0x140] ss:$20 sps:$4 sm:$0xff]   ;;  %v8495_v24 = vld [vmem:[#allocation10 + $0x3c4] ss:$20 sps:$4 sm:$0xff]  }
 0x40f   :  { %v8493_v23 = vld [vmem:[#allocation10 + $0x3c0] ss:$20 sps:$4 sm:$0xff]  }
 0x411   :  { %2076 = vmatpush1.bf16.msra.mxu1 %v8406_v25  ;;  %2119 = vmatpush1.bf16.msra.mxu0 %v8409_v26  ;;  %v8498_v25 = vld [vmem:[#allocation10 + $0x124] ss:$20 sps:$4 sm:$0xff]  }
 0x412   :  { %2077 = vmatprep.subr.bf16.mxu1 %v8414_v27  ;;  %2120 = vmatprep.subr.bf16.mxu0 %v8417_v28  ;;  %v8501_v26 = vld [vmem:[#allocation10 + $0x3a4] ss:$20 sps:$4 sm:$0xff]  }
 0x413   :  { %v743_v27 = vld [vmem:[#allocation9] ss:$4 sm:$0xf] }
 0x414   :  { %v748_v28 = vrot.slane %v743_v27, %v9794_v42 }
 0x415   :  { %2078 = vmatpush1.bf16.msra.mxu1 %v8412_v29  ;;  %2121 = vmatpush1.bf16.msra.mxu0 %v8415_v30  ;;  %v756_v29 = vrot.slane %v743_v27, %v9785_v35 }
 0x416   :  { %2079 = vmatprep.subr.bf16.mxu1 %v8420_v31  ;;  %2122 = vmatprep.subr.bf16.mxu0 %v8423_v32  ;;  %v752_v32 = vrot.slane %v743_v27, %v9787_v36 }
 0x419   :  { %2080 = vmatpush1.bf16.msra.mxu1 %v8418_v33  ;;  %2123 = vmatpush1.bf16.msra.mxu0 %v8421_v34  ;;  %v760_v33 = vrot.slane %v743_v27, %v9791_v40 }
 0x41a   :  { %2081 = vmatprep.subr.bf16.mxu1 %v8426_v37  ;;  %2124 = vmatprep.subr.bf16.mxu0 %v8429_v38 }
 0x41d   :  { %2082 = vmatpush1.bf16.msra.mxu1 %v8424_v39  ;;  %2125 = vmatpush1.bf16.msra.mxu0 %v8427_v41 }
 0x41e   :  { %2083 = vmatprep.subr.bf16.mxu1 %v8432_v43  ;;  %2126 = vmatprep.subr.bf16.mxu0 %v8435_v44 }
 0x421   :  { %2084 = vmatpush1.bf16.msra.mxu1 %v8430_v45  ;;  %2127 = vmatpush1.bf16.msra.mxu0 %v8433_v46 }
 0x422   :  { %2085 = vmatprep.subr.bf16.mxu1 %v8438_v48  ;;  %2128 = vmatprep.subr.bf16.mxu0 %v8441_v49 }
 0x425   :  { %2086 = vmatpush1.bf16.msra.mxu1 %v8436_v50  ;;  %2129 = vmatpush1.bf16.msra.mxu0 %v8439_v51 }
 0x426   :  { %2087 = vmatprep.subr.bf16.mxu1 %v8444_v52  ;;  %2130 = vmatprep.subr.bf16.mxu0 %v8447_v53 }
 0x429   :  { %2088 = vmatpush1.bf16.msra.mxu1 %v8442_v54  ;;  %2131 = vmatpush1.bf16.msra.mxu0 %v8445_v55 }
 0x42a   :  { %2089 = vmatprep.subr.bf16.mxu1 %v8450_v56  ;;  %2132 = vmatprep.subr.bf16.mxu0 %v8453_v57 }
 0x42d   :  { %2090 = vmatpush2.bf16.msra.mxu1 %v8448_v58  ;;  %2133 = vmatpush2.bf16.msra.mxu0 %v8451_v59 }
 0x42e   :  { %2091 = vmatprep.subr.bf16.mxu1 %v8456_v61  ;;  %2134 = vmatprep.subr.bf16.mxu0 %v8459_v60 }
 0x431   :  { %2092 = vmatpush2.bf16.msra.mxu1 %v8454_v15  ;;  %2135 = vmatpush2.bf16.msra.mxu0 %v8457_v62 }
 0x432   :  { %2093 = vmatprep.subr.bf16.mxu1 %v8462_v63  ;;  %2136 = vmatprep.subr.bf16.mxu0 %v8465_v0 }
 0x435   :  { %2094 = vmatpush2.bf16.msra.mxu1 %v8460_v16  ;;  %2137 = vmatpush2.bf16.msra.mxu0 %v8463_v1 }
 0x436   :  { %2095 = vmatprep.subr.bf16.mxu1 %v8468_v2  ;;  %2138 = vmatprep.subr.bf16.mxu0 %v8471_v4  ;;  %v984_v4 = vld [vmem:[#allocation9 + $0x1] ss:$4 sm:$0xf] }
 0x439   :  { %2096 = vmatpush2.bf16.msra.mxu1 %v8466_v5  ;;  %2139 = vmatpush2.bf16.msra.mxu0 %v8469_v3  ;;  %v1015_v5 = vld [vmem:[#allocation9 + $0x2] ss:$4 sm:$0xf] }
 0x43a   :  { %2097 = vmatprep.subr.bf16.mxu1 %v8474_v6  ;;  %2140 = vmatprep.subr.bf16.mxu0 %v8477_v7 }
 0x43d   :  { %2098 = vmatpush2.bf16.msra.mxu1 %v8472_v8  ;;  %2141 = vmatpush2.bf16.msra.mxu0 %v8475_v10  ;;  %v989_v8 = vrot.slane %v984_v4, %v9794_v42  ;;  %v1020_v10 = vrot.slane %v1015_v5, %v9794_v42 }
 0x43e   :  { %2099 = vmatprep.subr.bf16.mxu1 %v8480_v11  ;;  %2142 = vmatprep.subr.bf16.mxu0 %v8483_v12  ;;  %v997_v11 = vrot.slane %v984_v4, %v9785_v35 }
 0x441   :  { %2100 = vmatpush2.bf16.msra.mxu1 %v8478_v13  ;;  %2143 = vmatpush2.bf16.msra.mxu0 %v8481_v14 }
 0x442   :  { %2101 = vmatprep.subr.bf16.mxu1 %v8486_v17  ;;  %2144 = vmatprep.subr.bf16.mxu0 %v8489_v18  ;;  %v993_v17 = vrot.slane %v984_v4, %v9787_v36  ;;  %v1001_v18 = vrot.slane %v984_v4, %v9791_v40  ;;  %v8502_v4 = vld [vmem:[#allocation10 + $0xf8] ss:$20 sps:$4 sm:$0xff]  }
 0x445   :  { %2102 = vmatpush2.bf16.msra.mxu1 %v8484_v19  ;;  %2145 = vmatpush2.bf16.msra.mxu0 %v8487_v20 }
 0x446   :  { %2103 = vmatprep.subr.bf16.mxu1 %v8492_v22  ;;  %2146 = vmatprep.subr.bf16.mxu0 %v8495_v24  ;;  %v1024_v22 = vrot.slane %v1015_v5, %v9787_v36 }
 0x449   :  { %2104 = vmatpush2.bf16.msra.mxu1 %v8490_v21  ;;  %2147 = vmatpush2.bf16.msra.mxu0 %v8493_v23  ;;  %v1032_v23 = vrot.slane %v1015_v5, %v9791_v40 }
 0x44a   :  { %2159 = vmatprep.subr.bf16.mxu1 %v8498_v25  ;;  %2202 = vmatprep.subr.bf16.mxu0 %v8501_v26 }
 0x4cc   :  { %v883_v30 = vpop.f32.mrf.mxu1  ;;  %v926_v31 = vpop.f32.mrf.mxu0 }
 0x4cd   :  { %v9878_v34 = vadd.f32 %v883_v30, %v748_v28  ;;  %v9880_v37 = vadd.f32 %v926_v31, %v756_v29 }
 0x4ce   :  { %v885_v38 = vpop.f32.mrf.mxu1  ;;  %v928_v39 = vpop.f32.mrf.mxu0 }
 0x4cf   :  { %v943_v41 = vmin.f32 %v9878_v34, 0.0  ;;  %v945_v43 = vmin.f32 %v9880_v37, 0.0  ;;  %v886_v44 = vadd.f32 %v885_v38, %v752_v32  ;;  %v929_v45 = vadd.f32 %v928_v39, %v760_v33 }
 0x4d0   :  { %v887_v46 = vpop.f32.mrf.mxu1  ;;  %v930_v48 = vpop.f32.mrf.mxu0  ;;  %vm935_vm15 = vcmp.gt.f32.partialorder %v9878_v34, 0.0  ;;  %vm937_vm0 = vcmp.gt.f32.partialorder %v9880_v37, 0.0 }
 0x4d1   :  { %v951_v49 = vmul.f32 1.442695, %v943_v41  ;;  %v955_v50 = vmul.f32 1.442695, %v945_v43  ;;  %v888_v51 = vadd.f32 %v887_v46, %v748_v28  ;;  %v931_v52 = vadd.f32 %v930_v48, %v756_v29 }
 0x4d2   :  { %v944_v53 = vmin.f32 %v886_v44, 0.0  ;;  %v946_v54 = vmin.f32 %v929_v45, 0.0  ;;  %v889_v55 = vpop.f32.mrf.mxu1  ;;  %v932_v56 = vpop.f32.mrf.mxu0  ;;  %vm936_vm2 = vcmp.gt.f32.partialorder %v886_v44, 0.0  ;;  %vm938_vm3 = vcmp.gt.f32.partialorder %v929_v45, 0.0 }
 0x4d3   :  { %v947_v57 = vmin.f32 %v888_v51, 0.0  ;;  %9184 = vpow2.f32 %v951_v49  ;;  %v949_v61 = vmin.f32 %v931_v52, 0.0  ;;  %v890_v15 = vadd.f32 %v889_v55, %v752_v32 }
 0x4d4   :  { %v953_v58 = vmul.f32 1.442695, %v944_v53  ;;  %v957_v59 = vmul.f32 1.442695, %v946_v54  ;;  %9186 = vpow2.f32 %v955_v50  ;;  %v933_v62 = vadd.f32 %v932_v56, %v760_v33 }
 0x4d5   :  { %v959_v60 = vmul.f32 1.442695, %v947_v57  ;;  %v963_v63 = vmul.f32 1.442695, %v949_v61  ;;  %v948_v0 = vmin.f32 %v890_v15, 0.0  ;;  %vm939_vm5 = vcmp.gt.f32.partialorder %v888_v51, 0.0 }
 0x4d6   :  { %9188 = vpow2.f32 %v953_v58  ;;  %v950_v16 = vmin.f32 %v933_v62, 0.0  ;;  %vm941_vm6 = vcmp.gt.f32.partialorder %v931_v52, 0.0  ;;  %vm940_vm7 = vcmp.gt.f32.partialorder %v890_v15, 0.0 }
 0x4d7   :  { %9190 = vpow2.f32 %v957_v59  ;;  %v961_v1 = vmul.f32 1.442695, %v948_v0  ;;  %vm942_vm8 = vcmp.gt.f32.partialorder %v933_v62, 0.0 }
 0x4d8   :  { %9192 = vpow2.f32 %v959_v60  ;;  %v965_v2 = vmul.f32 1.442695, %v950_v16 }
 0x4d9   :  { %9194 = vpow2.f32 %v963_v63  ;;  %v8496_v63 = vld [vmem:[#allocation10 + $0x120] ss:$20 sps:$4 sm:$0xff]  }
 0x4da   :  { %9196 = vpow2.f32 %v961_v1  ;;  %v8504_v1 = vld [vmem:[#allocation10 + $0xfc] ss:$20 sps:$4 sm:$0xff]  }
 0x4db   :  { %9198 = vpow2.f32 %v965_v2  ;;  %v8507_v2 = vld [vmem:[#allocation10 + $0x37c] ss:$20 sps:$4 sm:$0xff]  }
 0x4e0   :  { %v9185_v3 = vpop.eup %9184 }
 0x4e1   :  { %v9187_v6 = vpop.eup %9186  ;;  %v7447_v13 = vadd.f32 -1.0, %v9185_v3  ;;  %v8510_v3 = vld [vmem:[#allocation10 + $0xd4] ss:$20 sps:$4 sm:$0xff]  }
 0x4e2   :  { %v7449_v20 = vadd.f32 -1.0, %v9187_v6  ;;  %v8513_v6 = vld [vmem:[#allocation10 + $0x354] ss:$20 sps:$4 sm:$0xff]  }
 0x4e3   :  { %v9189_v7 = vpop.eup %9188  ;;  %v975_v29 = vsel %vm935_vm15, %v9878_v34, %v7447_v13  ;;  %v1028_v34 = vrot.slane %v1015_v5, %v9785_v35  ;;  %v8505_v5 = vld [vmem:[#allocation10 + $0x378] ss:$20 sps:$4 sm:$0xff]   ;;  %v8517_v13 = vld [vmem:[#allocation10 + $0x328] ss:$20 sps:$4 sm:$0xff]  }
 0x4e4   :  { %v9191_v12 = vpop.eup %9190  ;;  %v7448_v14 = vadd.f32 -1.0, %v9189_v7  ;;  %v977_v33 = vsel %vm937_vm0, %v9880_v37, %v7449_v20  ;;  %v8508_v7 = vld [vmem:[#allocation10 + $0xd0] ss:$20 sps:$4 sm:$0xff]  }
 0x4e5   :  { %v9193_v19 = vpop.eup %9192  ;;  %v7450_v21 = vadd.f32 -1.0, %v9191_v12  ;;  %v1008_v53 = vmul.f32 %v997_v11, %v977_v33  ;;  %v8514_v12 = vld [vmem:[#allocation10 + $0xa8] ss:$20 sps:$4 sm:$0xff]   ;;  %v8549_v33 = vld [vmem:[#allocation10 + $0x4e4] ss:$20 sps:$4 sm:$0xff]  }
 0x4e6   :  { %v9195_v24 = vpop.eup %9194  ;;  %v7451_v25 = vadd.f32 -1.0, %v9193_v19  ;;  %v976_v26 = vsel %vm936_vm2, %v886_v44, %v7448_v14  ;;  %v1006_v44 = vmul.f32 %v989_v8, %v975_v29  ;;  %v8522_v14 = vld [vmem:[#allocation10 + $0x84] ss:$20 sps:$4 sm:$0xff]   ;;  %v8523_v19 = vld [vmem:[#allocation10 + $0x300] ss:$20 sps:$4 sm:$0xff]  }
 0x4e7   :  { %v7453_v27 = vadd.f32 -1.0, %v9195_v24  ;;  %v9197_v28 = vpop.eup %9196  ;;  %v978_v30 = vsel %vm938_vm3, %v929_v45, %v7450_v21  ;;  %v1007_v43 = vmul.f32 %v993_v17, %v976_v26  ;;  %v1039_v61 = vadd.f32 %v1028_v34, %v1008_v53  ;;  %v8528_v20 = vld [vmem:[#allocation10 + $0x5c] ss:$20 sps:$4 sm:$0xff]   ;;  %v8534_v24 = vld [vmem:[#allocation10 + $0x34] ss:$20 sps:$4 sm:$0xff]  }
 0x4e8   :  { %v979_v31 = vsel %vm939_vm5, %v888_v51, %v7451_v25  ;;  %v9199_v32 = vpop.eup %9198  ;;  %v7452_v41 = vadd.f32 -1.0, %v9197_v28  ;;  %v1009_v49 = vmul.f32 %v1001_v18, %v978_v30  ;;  %v8531_v21 = vld [vmem:[#allocation10 + $0x2dc] ss:$20 sps:$4 sm:$0xff]   ;;  %v8537_v25 = vld [vmem:[#allocation10 + $0x2b4] ss:$20 sps:$4 sm:$0xff]  }
 0x4e9   :  { %v1010_v38 = vmul.f32 %v989_v8, %v979_v31  ;;  %v981_v39 = vsel %vm941_vm6, %v931_v52, %v7453_v27  ;;  %v7454_v48 = vadd.f32 -1.0, %v9199_v32  ;;  %v1038_v37 = vadd.f32 %v1024_v22, %v1007_v43  ;;  %v8511_v8 = vld [vmem:[#allocation10 + $0x350] ss:$20 sps:$4 sm:$0xff]   ;;  %v8540_v28 = vld [vmem:[#allocation10 + $0xc] ss:$20 sps:$4 sm:$0xff]  }
 0x4ea   :  { %v1012_v46 = vmul.f32 %v997_v11, %v981_v39  ;;  %v980_v50 = vsel %vm940_vm7, %v890_v15, %v7452_v41  ;;  %v1037_v52 = vadd.f32 %v1020_v10, %v1006_v44  ;;  %v1040_v58 = vadd.f32 %v1032_v23, %v1009_v49  ;;  %v8499_v15 = vld [vmem:[#allocation10 + $0x3a0] ss:$20 sps:$4 sm:$0xff]   ;;  %v8532_v26 = vld [vmem:[#allocation10 + $0x30] ss:$20 sps:$4 sm:$0xff]   ;;  %v8538_v30 = vld [vmem:[#allocation10 + $0x8] ss:$20 sps:$4 sm:$0xff]  }
 0x4eb   :  { %v1011_v45 = vmul.f32 %v993_v17, %v980_v50  ;;  %v982_v51 = vsel %vm942_vm8, %v933_v62, %v7454_v48  ;;  %v1041_v54 = vadd.f32 %v1020_v10, %v1010_v38  ;;  %v8516_v10 = vld [vmem:[#allocation10 + $0xac] ss:$20 sps:$4 sm:$0xff]   ;;  %v8525_v17 = vld [vmem:[#allocation10 + $0x304] ss:$20 sps:$4 sm:$0xff]   ;;  %v8541_v31 = vld [vmem:[#allocation10 + $0x288] ss:$20 sps:$4 sm:$0xff]  }
 0x4ec   :  { %v1013_v55 = vmul.f32 %v1001_v18, %v982_v51  ;;  %v1043_v56 = vadd.f32 %v1028_v34, %v1012_v46  ;;  %v8519_v11 = vld [vmem:[#allocation10 + $0x32c] ss:$20 sps:$4 sm:$0xff]   ;;  %v8535_v27 = vld [vmem:[#allocation10 + $0x2b0] ss:$20 sps:$4 sm:$0xff]   ;;  %v8558_v44 = vld [vmem:[#allocation10 + $0x214] ss:$20 sps:$4 sm:$0xff]  }
 0x4ed   :  { %v1042_v57 = vadd.f32 %v1024_v22, %v1011_v45  ;;  %v9900_v16 = vpack.c.bf16 %v1041_v54, %v1037_v52  ;;  %v8520_v18 = vld [vmem:[#allocation10 + $0x80] ss:$20 sps:$4 sm:$0xff]   ;;  %v8526_v22 = vld [vmem:[#allocation10 + $0x58] ss:$20 sps:$4 sm:$0xff]   ;;  %v8552_v41 = vld [vmem:[#allocation10 + $0x23c] ss:$20 sps:$4 sm:$0xff]  }
 0x4ee   :  { %v1044_v59 = vadd.f32 %v1032_v23, %v1013_v55  ;;  %v9903_v62 = vpack.c.bf16 %v1043_v56, %v1039_v61  ;;  %v8529_v23 = vld [vmem:[#allocation10 + $0x2d8] ss:$20 sps:$4 sm:$0xff]   ;;  %v8544_v38 = vld [vmem:[#allocation10 + $0x260] ss:$20 sps:$4 sm:$0xff]   ;;  %v8555_v43 = vld [vmem:[#allocation10 + $0x4bc] ss:$20 sps:$4 sm:$0xff]  }
 0x4ef   :  { %v9896_v60 = vpack.c.bf16 %v1042_v57, %v1038_v37  ;;  %v8543_v29 = vld [vmem:[#allocation10 + $0x28c] ss:$20 sps:$4 sm:$0xff]   ;;  %v8546_v32 = vld [vmem:[#allocation10 + $0x264] ss:$20 sps:$4 sm:$0xff]   ;;  %v8561_v49 = vld [vmem:[#allocation10 + $0x494] ss:$20 sps:$4 sm:$0xff]  }
 0x4f0   :  { %v9898_v0 = vpack.c.bf16 %v1044_v59, %v1040_v58  ;;  %v8547_v39 = vld [vmem:[#allocation10 + $0x4e0] ss:$20 sps:$4 sm:$0xff]   ;;  %v8550_v46 = vld [vmem:[#allocation10 + $0x238] ss:$20 sps:$4 sm:$0xff]   ;;  %v8556_v50 = vld [vmem:[#allocation10 + $0x210] ss:$20 sps:$4 sm:$0xff]  }
 0x4f1   :  { %2105 = vmatprep.mubr.bf16.mxu1 %v9896_v60  ;;  %v8553_v48 = vld [vmem:[#allocation10 + $0x4b8] ss:$20 sps:$4 sm:$0xff]   ;;  %v8559_v53 = vld [vmem:[#allocation10 + $0x490] ss:$20 sps:$4 sm:$0xff]   ;;  %v8562_v51 = vld [vmem:[#allocation10 + $0x1e8] ss:$20 sps:$4 sm:$0xff]  }
 0x4f2   :  { %2148 = vmatprep.mubr.bf16.mxu0 %v9898_v0  ;;  %2106 = vmatmul.mubr.bf16.vlgmr.msra.gmra.mxu1 %v9900_v16  ;;  %v8564_v34 = vld [vmem:[#allocation10 + $0x1ec] ss:$20 sps:$4 sm:$0xff]   ;;  %v8565_v54 = vld [vmem:[#allocation10 + $0x468] ss:$20 sps:$4 sm:$0xff]   ;;  %v8570_v55 = vld [vmem:[#allocation10 + $0x1c4] ss:$20 sps:$4 sm:$0xff]  }
 0x4f3   :  { %2149 = vmatmul.mubr.bf16.vlgmr.msra.gmra.mxu0 %v9903_v62  ;;  %2160 = vmatpush1.bf16.msra.mxu1 %v8496_v63  ;;  %v8567_v45 = vld [vmem:[#allocation10 + $0x46c] ss:$20 sps:$4 sm:$0xff]   ;;  %v8573_v56 = vld [vmem:[#allocation10 + $0x444] ss:$20 sps:$4 sm:$0xff]   ;;  %v8576_v52 = vld [vmem:[#allocation10 + $0x19c] ss:$20 sps:$4 sm:$0xff]  }
 0x4f4   :  { %2203 = vmatpush1.bf16.msra.mxu0 %v8499_v15  ;;  %2191 = vmatprep.mubr.bf16.mxu1 %v9896_v60  ;;  %v8568_v37 = vld [vmem:[#allocation10 + $0x1c0] ss:$20 sps:$4 sm:$0xff]   ;;  %v8579_v58 = vld [vmem:[#allocation10 + $0x41c] ss:$20 sps:$4 sm:$0xff]   ;;  %v8574_v59 = vld [vmem:[#allocation10 + $0x198] ss:$20 sps:$4 sm:$0xff]  }
 0x4f5   :  { %2234 = vmatprep.mubr.bf16.mxu0 %v9898_v0  ;;  %2161 = vmatprep.subr.bf16.mxu1 %v8504_v1  ;;  %v8571_v57 = vld [vmem:[#allocation10 + $0x440] ss:$20 sps:$4 sm:$0xff]   ;;  %v8577_v61 = vld [vmem:[#allocation10 + $0x418] ss:$20 sps:$4 sm:$0xff]   ;;  %v8580_v1 = vld [vmem:[#allocation10 + $0x170] ss:$20 sps:$4 sm:$0xff]  }
 0x4f6   :  { %2204 = vmatprep.subr.bf16.mxu0 %v8507_v2  ;;  %v8582_v63 = vld [vmem:[#allocation10 + $0x174] ss:$20 sps:$4 sm:$0xff]   ;;  %v8583_v2 = vld [vmem:[#allocation10 + $0x3f0] ss:$20 sps:$4 sm:$0xff]  }
 0x4f7   :  { %2162 = vmatpush1.bf16.msra.mxu1 %v8502_v4  ;;  %v8585_v15 = vld [vmem:[#allocation10 + $0x3f4] ss:$20 sps:$4 sm:$0xff]   ;;  %v8588_v4 = vld [vmem:[#allocation10 + $0x14c] ss:$20 sps:$4 sm:$0xff]  }
 0x4f8   :  { %2205 = vmatpush1.bf16.msra.mxu0 %v8505_v5  ;;  %2163 = vmatprep.subr.bf16.mxu1 %v8510_v3  ;;  %v8591_v5 = vld [vmem:[#allocation10 + $0x3cc] ss:$20 sps:$4 sm:$0xff]   ;;  %v8586_v3 = vld [vmem:[#allocation10 + $0x148] ss:$20 sps:$4 sm:$0xff]  }
 0x4f9   :  { %2206 = vmatprep.subr.bf16.mxu0 %v8513_v6  ;;  %v8589_v6 = vld [vmem:[#allocation10 + $0x3c8] ss:$20 sps:$4 sm:$0xff]  }
 0x4fb   :  { %2164 = vmatpush1.bf16.msra.mxu1 %v8508_v7  ;;  %v8592_v7 = vld [vmem:[#allocation10 + $0x268] ss:$20 sps:$4 sm:$0xff]  }
 0x4fc   :  { %2207 = vmatpush1.bf16.msra.mxu0 %v8511_v8  ;;  %2165 = vmatprep.subr.bf16.mxu1 %v8516_v10  ;;  %v8593_v8 = vld [vmem:[#allocation10 + $0x4e8] ss:$20 sps:$4 sm:$0xff]  }
 0x4fd   :  { %2208 = vmatprep.subr.bf16.mxu0 %v8519_v11  ;;  %v8594_v10 = vld [vmem:[#allocation10 + $0x128] ss:$20 sps:$4 sm:$0xff]  }
 0x4fe   :  { %v8595_v11 = vld [vmem:[#allocation10 + $0x3a8] ss:$20 sps:$4 sm:$0xff]  }
 0x4ff   :  { %2166 = vmatpush1.bf16.msra.mxu1 %v8514_v12  ;;  %v8596_v12 = vld [vmem:[#allocation10 + $0x240] ss:$20 sps:$4 sm:$0xff]  }
 0x500   :  { %2209 = vmatpush1.bf16.msra.mxu0 %v8517_v13  ;;  %2167 = vmatprep.subr.bf16.mxu1 %v8522_v14  ;;  %v8597_v13 = vld [vmem:[#allocation10 + $0x4c0] ss:$20 sps:$4 sm:$0xff]  }
 0x501   :  { %2210 = vmatprep.subr.bf16.mxu0 %v8525_v17  ;;  %v8598_v14 = vld [vmem:[#allocation10 + $0x100] ss:$20 sps:$4 sm:$0xff]  }
 0x502   :  { %v8599_v17 = vld [vmem:[#allocation10 + $0x380] ss:$20 sps:$4 sm:$0xff]  }
 0x503   :  { %2168 = vmatpush1.bf16.msra.mxu1 %v8520_v18  ;;  %v8600_v18 = vld [vmem:[#allocation10 + $0x218] ss:$20 sps:$4 sm:$0xff]  }
 0x504   :  { %2211 = vmatpush1.bf16.msra.mxu0 %v8523_v19  ;;  %2169 = vmatprep.subr.bf16.mxu1 %v8528_v20  ;;  %v8601_v19 = vld [vmem:[#allocation10 + $0x498] ss:$20 sps:$4 sm:$0xff]  }
 0x505   :  { %2212 = vmatprep.subr.bf16.mxu0 %v8531_v21  ;;  %v8602_v20 = vld [vmem:[#allocation10 + $0xd8] ss:$20 sps:$4 sm:$0xff]  }
 0x506   :  { %v8603_v21 = vld [vmem:[#allocation10 + $0x358] ss:$20 sps:$4 sm:$0xff]  }
 0x507   :  { %2170 = vmatpush1.bf16.msra.mxu1 %v8526_v22  ;;  %v8604_v22 = vld [vmem:[#allocation10 + $0x1f0] ss:$20 sps:$4 sm:$0xff]  }
 0x508   :  { %2213 = vmatpush1.bf16.msra.mxu0 %v8529_v23  ;;  %2171 = vmatprep.subr.bf16.mxu1 %v8534_v24  ;;  %v8605_v23 = vld [vmem:[#allocation10 + $0x470] ss:$20 sps:$4 sm:$0xff]  }
 0x509   :  { %2214 = vmatprep.subr.bf16.mxu0 %v8537_v25  ;;  %v8606_v24 = vld [vmem:[#allocation10 + $0xb0] ss:$20 sps:$4 sm:$0xff]   ;;  %v8608_v25 = vld [vmem:[#allocation10 + $0x1c8] ss:$20 sps:$4 sm:$0xff]  }
 0x50b   :  { %2172 = vmatpush1.bf16.msra.mxu1 %v8532_v26  ;;  %v8609_v26 = vld [vmem:[#allocation10 + $0x448] ss:$20 sps:$4 sm:$0xff]  }
 0x50c   :  { %2215 = vmatpush1.bf16.msra.mxu0 %v8535_v27  ;;  %2173 = vmatprep.subr.bf16.mxu1 %v8540_v28  ;;  %v8611_v27 = vld [vmem:[#allocation10 + $0x308] ss:$20 sps:$4 sm:$0xff]   ;;  %v8612_v28 = vld [vmem:[#allocation10 + $0x1a0] ss:$20 sps:$4 sm:$0xff]  }
 0x50d   :  { %2216 = vmatprep.subr.bf16.mxu0 %v8543_v29  ;;  %v8613_v29 = vld [vmem:[#allocation10 + $0x420] ss:$20 sps:$4 sm:$0xff]  }
 0x50f   :  { %2174 = vmatpush1.bf16.msra.mxu1 %v8538_v30  ;;  %v8614_v30 = vld [vmem:[#allocation10 + $0x60] ss:$20 sps:$4 sm:$0xff]  }
 0x510   :  { %2217 = vmatpush1.bf16.msra.mxu0 %v8541_v31  ;;  %2175 = vmatprep.subr.bf16.mxu1 %v8546_v32  ;;  %v8615_v31 = vld [vmem:[#allocation10 + $0x2e0] ss:$20 sps:$4 sm:$0xff]   ;;  %v8616_v32 = vld [vmem:[#allocation10 + $0x178] ss:$20 sps:$4 sm:$0xff]  }
 0x511   :  { %2218 = vmatprep.subr.bf16.mxu0 %v8549_v33  ;;  %v8617_v33 = vld [vmem:[#allocation10 + $0x3f8] ss:$20 sps:$4 sm:$0xff]  }
 0x513   :  { %2176 = vmatpush2.bf16.msra.mxu1 %v8544_v38  ;;  %v8618_v38 = vld [vmem:[#allocation10 + $0x38] ss:$20 sps:$4 sm:$0xff]  }
 0x514   :  { %2219 = vmatpush2.bf16.msra.mxu0 %v8547_v39  ;;  %2177 = vmatprep.subr.bf16.mxu1 %v8552_v41  ;;  %v8619_v39 = vld [vmem:[#allocation10 + $0x2b8] ss:$20 sps:$4 sm:$0xff]   ;;  %v8620_v41 = vld [vmem:[#allocation10 + $0x150] ss:$20 sps:$4 sm:$0xff]  }
 0x515   :  { %2220 = vmatprep.subr.bf16.mxu0 %v8555_v43  ;;  %v8621_v43 = vld [vmem:[#allocation10 + $0x3d0] ss:$20 sps:$4 sm:$0xff]  }
 0x517   :  { %2178 = vmatpush2.bf16.msra.mxu1 %v8550_v46  ;;  %v8622_v46 = vld [vmem:[#allocation10 + $0x10] ss:$20 sps:$4 sm:$0xff]  }
 0x518   :  { %2221 = vmatpush2.bf16.msra.mxu0 %v8553_v48  ;;  %2179 = vmatprep.subr.bf16.mxu1 %v8558_v44  ;;  %v8623_v48 = vld [vmem:[#allocation10 + $0x290] ss:$20 sps:$4 sm:$0xff]   ;;  %v9352_v44 = vld [vmem:[#allocation3 + $0x8] sm:$0xff] }
 0x519   :  { %2222 = vmatprep.subr.bf16.mxu0 %v8561_v49  ;;  %v9914_v49 = vcombine.high %v9352_v44, %v9352_v44 }
 0x51b   :  { %2180 = vmatpush2.bf16.msra.mxu1 %v8556_v50  ;;  %v9916_v50 = vcombine.low %v9352_v44, %v9352_v44 }
 0x51c   :  { %2223 = vmatpush2.bf16.msra.mxu0 %v8559_v53  ;;  %2181 = vmatprep.subr.bf16.mxu1 %v8564_v34 }
 0x51d   :  { %2224 = vmatprep.subr.bf16.mxu0 %v8567_v45 }
 0x51f   :  { %2182 = vmatpush2.bf16.msra.mxu1 %v8562_v51 }
 0x520   :  { %2225 = vmatpush2.bf16.msra.mxu0 %v8565_v54  ;;  %2183 = vmatprep.subr.bf16.mxu1 %v8570_v55 }
 0x521   :  { %2226 = vmatprep.subr.bf16.mxu0 %v8573_v56 }
 0x523   :  { %2184 = vmatpush2.bf16.msra.mxu1 %v8568_v37 }
 0x524   :  { %2227 = vmatpush2.bf16.msra.mxu0 %v8571_v57  ;;  %2185 = vmatprep.subr.bf16.mxu1 %v8576_v52 }
 0x525   :  { %2228 = vmatprep.subr.bf16.mxu0 %v8579_v58 }
 0x527   :  { %2186 = vmatpush2.bf16.msra.mxu1 %v8574_v59 }
 0x528   :  { %2229 = vmatpush2.bf16.msra.mxu0 %v8577_v61  ;;  %2187 = vmatprep.subr.bf16.mxu1 %v8582_v63 }
 0x529   :  { %2230 = vmatprep.subr.bf16.mxu0 %v8585_v15 }
 0x52b   :  { %2188 = vmatpush2.bf16.msra.mxu1 %v8580_v1  ;;  %v8626_v1 = vld [vmem:[#allocation3 + $0x20] ss:$16 sps:$4 sm:$0xff]  }
 0x52c   :  { %2231 = vmatpush2.bf16.msra.mxu0 %v8583_v2  ;;  %2189 = vmatprep.subr.bf16.mxu1 %v8588_v4  ;;  %v8627_v2 = vld [vmem:[#allocation3 + $0x4] ss:$16 sps:$4 sm:$0xff]  }
 0x52d   :  { %2232 = vmatprep.subr.bf16.mxu0 %v8591_v5 }
 0x52f   :  { %2190 = vmatpush2.bf16.msra.mxu1 %v8586_v3 }
 0x530   :  { %2233 = vmatpush2.bf16.msra.mxu0 %v8589_v6  ;;  %8120 = vmatprep.subr.bf16.mxu1 %v8592_v7 }
 0x531   :  { %8142 = vmatprep.subr.bf16.mxu0 %v8593_v8 }
 0x532   :  { %2192 = vmatmul.mubr.bf16.vlgmr.msra.gmra.mxu1 %v9900_v16 }
 0x533   :  { %2235 = vmatmul.mubr.bf16.vlgmr.msra.gmra.mxu0 %v9903_v62  ;;  %8121 = vmatpush3.bf16.msra.mxu1 %v8594_v10 }
 0x534   :  { %2277 = vmatprep.mubr.bf16.mxu1 %v9896_v60  ;;  %8143 = vmatpush3.bf16.msra.mxu0 %v8595_v11  ;;  %v8607_v60 = vld [vmem:[#allocation10 + $0x330] ss:$20 sps:$4 sm:$0xff]  }
 0x535   :  { %2318 = vmatprep.mubr.bf16.mxu0 %v9898_v0  ;;  %8122 = vmatprep.subr.bf16.mxu1 %v8596_v12  ;;  %v8610_v0 = vld [vmem:[#allocation10 + $0x88] ss:$20 sps:$4 sm:$0xff]  }
 0x536   :  { %8144 = vmatprep.subr.bf16.mxu0 %v8597_v13 }
 0x537   :  { %8123 = vmatpush3.bf16.msra.mxu1 %v8598_v14 }
 0x538   :  { %8145 = vmatpush3.bf16.msra.mxu0 %v8599_v17  ;;  %8124 = vmatprep.subr.bf16.mxu1 %v8600_v18 }
 0x539   :  { %8146 = vmatprep.subr.bf16.mxu0 %v8601_v19 }
 0x53b   :  { %8125 = vmatpush3.bf16.msra.mxu1 %v8602_v20 }
 0x53c   :  { %8147 = vmatpush3.bf16.msra.mxu0 %v8603_v21  ;;  %8126 = vmatprep.subr.bf16.mxu1 %v8604_v22 }
 0x53d   :  { %8148 = vmatprep.subr.bf16.mxu0 %v8605_v23 }
 0x53f   :  { %8127 = vmatpush3.bf16.msra.mxu1 %v8606_v24  ;;  %v8632_v24 = vld [vmem:[#allocation3 + $0x68] ss:$16 sps:$4 sm:$0xff]  }
 0x540   :  { %8149 = vmatpush3.bf16.msra.mxu0 %v8607_v60  ;;  %8128 = vmatprep.subr.bf16.mxu1 %v8608_v25  ;;  %v8633_v60 = vld [vmem:[#allocation3 + $0x4c] ss:$16 sps:$4 sm:$0xff]  }
 0x541   :  { %8150 = vmatprep.subr.bf16.mxu0 %v8609_v26 }
 0x543   :  { %8129 = vmatpush3.bf16.msra.mxu1 %v8610_v0 }
 0x544   :  { %8151 = vmatpush3.bf16.msra.mxu0 %v8611_v27  ;;  %8130 = vmatprep.subr.bf16.mxu1 %v8612_v28 }
 0x545   :  { %8152 = vmatprep.subr.bf16.mxu0 %v8613_v29 }
 0x547   :  { %8131 = vmatpush3.bf16.msra.mxu1 %v8614_v30 }
 0x548   :  { %8153 = vmatpush3.bf16.msra.mxu0 %v8615_v31  ;;  %8132 = vmatprep.subr.bf16.mxu1 %v8616_v32 }
 0x549   :  { %8154 = vmatprep.subr.bf16.mxu0 %v8617_v33 }
 0x54b   :  { %8133 = vmatpush3.bf16.msra.mxu1 %v8618_v38 }
 0x54c   :  { %8155 = vmatpush3.bf16.msra.mxu0 %v8619_v39  ;;  %8134 = vmatprep.subr.bf16.mxu1 %v8620_v41 }
 0x54d   :  { %8156 = vmatprep.subr.bf16.mxu0 %v8621_v43 }
 0x54f   :  { %8135 = vmatpush3.bf16.msra.mxu1 %v8622_v46 }
 0x550   :  { %8157 = vmatpush3.bf16.msra.mxu0 %v8623_v48  ;;  %2780 = vmatprep.subr.bf16.mxu1 %v9914_v49 }
 0x552   :  { %2278 = vmatmul.mubr.bf16.vlgmr.msra.gmra.mxu1 %v9900_v16 }
 0x553   :  { %2319 = vmatmul.mubr.bf16.vlgmr.msra.gmra.mxu0 %v9903_v62  ;;  %2781 = vmatpush1.bf16.msra.mxu1 %v9916_v50 }
 0x554   :  { %2782 = vmatprep.subr.bf16.mxu1 %v9914_v49  ;;  %2804 = vmatprep.mubr.bf16.mxu1 %v9352_v44 }
 0x555   :  { %2847 = vmatprep.mubr.bf16.mxu0 %v9352_v44 }
 0x557   :  { %2783 = vmatpush1.bf16.msra.mxu1 %v9916_v50 }
 0x5b2   :  { %v2107_v53 = vpop.f32.mrf.mxu1 }
 0x5b3   :  { %v2150_v34 = vpop.f32.mrf.mxu0 }
 0x5b4   :  { %v2151_v45 = vadd.f32 %v2150_v34, %v2107_v53  ;;  %v2109_v51 = vpop.f32.mrf.mxu1 }
 0x5b5   :  { %v2152_v54 = vpop.f32.mrf.mxu0 }
 0x5b6   :  { %v8093_v55 = vpack.c.bf16 %v2151_v45, %v2151_v45  ;;  %v2153_v56 = vadd.f32 %v2152_v54, %v2109_v51  ;;  %v2111_v37 = vpop.f32.mrf.mxu1 }
 0x5b7   :  { %v2154_v57 = vpop.f32.mrf.mxu0 }
 0x5b8   :  { %2589 = vst [vmem:[#allocation3] sm:$0xf] %v8093_v55  ;;  %v8095_v16 = vpack.c.bf16 %v2153_v56, %v2153_v56  ;;  %v2155_v62 = vadd.f32 %v2154_v57, %v2111_v37  ;;  %v2113_v52 = vpop.f32.mrf.mxu1 }
 0x5b9   :  { %v2156_v58 = vpop.f32.mrf.mxu0 }
 0x5ba   :  { %2608 = vst [vmem:[#allocation3 + $0x24] sm:$0xf] %v8095_v16  ;;  %v8094_v59 = vpack.c.bf16 %v2155_v62, %v2155_v62  ;;  %v2157_v61 = vadd.f32 %v2156_v58, %v2113_v52 }
 0x5bc   :  { %2590 = vst [vmem:[#allocation3 + $0x10] sm:$0xf] %v8094_v59  ;;  %v8096_v63 = vpack.c.bf16 %v2157_v61, %v2157_v61 }
 0x5be   :  { %2609 = vst [vmem:[#allocation3 + $0x34] sm:$0xf] %v8096_v63  ;;  %v9353_v63 = vld [vmem:[#allocation7] sm:$0xff] }
 0x5c3   :  { %v8629_v4 = vld [vmem:[#allocation3] ss:$16 sps:$4 sm:$0xff]  }
 0x5c5   :  { %v8624_v15 = vld [vmem:[#allocation3 + $0x24] ss:$16 sps:$4 sm:$0xff]  }
 0x5c6   :  { %2784 = vmatprep.subr.bf16.mxu1 %v8624_v15 }
 0x5c7   :  { %2785 = vmatpush1.bf16.msra.mxu1 %v8626_v1 }
 0x5c8   :  { %2786 = vmatprep.subr.bf16.mxu1 %v8627_v2 }
 0x5cb   :  { %2787 = vmatpush1.bf16.msra.mxu1 %v8629_v4 }
 0x5f2   :  { %v2193_v5 = vpop.f32.mrf.mxu1 }
 0x5f3   :  { %v2236_v3 = vpop.f32.mrf.mxu0 }
 0x5f4   :  { %v2237_v6 = vadd.f32 %v2236_v3, %v2193_v5  ;;  %v2195_v7 = vpop.f32.mrf.mxu1 }
 0x5f5   :  { %v2238_v8 = vpop.f32.mrf.mxu0 }
 0x5f6   :  { %v8097_v10 = vpack.c.bf16 %v2237_v6, %v2237_v6  ;;  %v2239_v11 = vadd.f32 %v2238_v8, %v2195_v7  ;;  %v2197_v12 = vpop.f32.mrf.mxu1  ;;  %v9354_v6 = vld [vmem:[#allocation7 + $0x8] sm:$0xff] }
 0x5f7   :  { %v2240_v13 = vpop.f32.mrf.mxu0 }
 0x5f8   :  { %2627 = vst [vmem:[#allocation3 + $0x48] sm:$0xf] %v8097_v10  ;;  %v8099_v14 = vpack.c.bf16 %v2239_v11, %v2239_v11  ;;  %v2241_v17 = vadd.f32 %v2240_v13, %v2197_v12  ;;  %v2199_v18 = vpop.f32.mrf.mxu1 }
 0x5f9   :  { %v2242_v19 = vpop.f32.mrf.mxu0 }
 0x5fa   :  { %2646 = vst [vmem:[#allocation3 + $0x6c] sm:$0xf] %v8099_v14  ;;  %v8098_v20 = vpack.c.bf16 %v2241_v17, %v2241_v17  ;;  %v2243_v21 = vadd.f32 %v2242_v19, %v2199_v18 }
 0x5fc   :  { %2628 = vst [vmem:[#allocation3 + $0x58] sm:$0xf] %v8098_v20  ;;  %v8100_v22 = vpack.c.bf16 %v2243_v21, %v2243_v21 }
 0x5fe   :  { %2647 = vst [vmem:[#allocation3 + $0x7c] sm:$0xf] %v8100_v22 }
 0x603   :  { %v8635_v25 = vld [vmem:[#allocation3 + $0x48] ss:$16 sps:$4 sm:$0xff]  }
 0x605   :  { %v8630_v23 = vld [vmem:[#allocation3 + $0x6c] ss:$16 sps:$4 sm:$0xff]  }
 0x606   :  { %2823 = vmatprep.subr.bf16.mxu0 %v8630_v23 }
 0x607   :  { %2824 = vmatpush1.bf16.msra.mxu0 %v8632_v24 }
 0x608   :  { %2825 = vmatprep.subr.bf16.mxu0 %v8633_v60 }
 0x60b   :  { %2826 = vmatpush1.bf16.msra.mxu0 %v8635_v25 }
 0x60c   :  { %2827 = vmatprep.subr.bf16.mxu0 %v9914_v49 }
 0x60f   :  { %2828 = vmatpush1.bf16.msra.mxu0 %v9916_v50 }
 0x610   :  { %2829 = vmatprep.subr.bf16.mxu0 %v9914_v49 }
 0x612   :  { %v8136_v26 = vpop.f32.mrf.mxu1 }
 0x613   :  { %v8158_v0 = vpop.f32.mrf.mxu0  ;;  %2830 = vmatpush1.bf16.msra.mxu0 %v9916_v50 }
 0x614   :  { %v8137_v27 = vpop.f32.mrf.mxu1 }
 0x615   :  { %v8138_v28 = vadd.f32 %v8137_v27, %v8136_v26  ;;  %v8159_v29 = vpop.f32.mrf.mxu0 }
 0x616   :  { %v8160_v30 = vadd.f32 %v8159_v29, %v8158_v0  ;;  %v8139_v31 = vpop.f32.mrf.mxu1 }
 0x617   :  { %v8161_v32 = vpop.f32.mrf.mxu0 }
 0x618   :  { %v2321_v33 = vadd.f32 %v8160_v30, %v8138_v28  ;;  %v8140_v38 = vpop.f32.mrf.mxu1 }
 0x619   :  { %v8141_v39 = vadd.f32 %v8140_v38, %v8139_v31  ;;  %v8162_v41 = vpop.f32.mrf.mxu0 }
 0x61a   :  { %v8163_v43 = vadd.f32 %v8162_v41, %v8161_v32  ;;  %2331 = vxpose.xlu0.b32.start [1/2] (short) (narrow) %v2321_v33, 16 }
 0x61c   :  { %v2324_v46 = vadd.f32 %v8163_v43, %v8141_v39 }
 0x61e   :  { %2332 = vxpose.xlu0.b32.end [2/2] (short) (narrow) %v2324_v46, 16 }
 0x696   :  { %v2347_v48 = vpop.trf.xlu0 }
 0x697   :  { %v2377_v44 = vrot.slane %v2347_v48, %v9787_v36  ;;  %v2388_v49 = vrot.slane %v2347_v48, %v9785_v35  ;;  %v2399_v50 = vrot.slane %v2347_v48, %v9791_v40  ;;  %v2366_v53 = vrot.slane %v2347_v48, %v9794_v42 }
 0x699   :  { %2379 = vbcast.lane.b32.xlu1 %v2377_v44, 256 }
 0x69a   :  { %v2348_v34 = vpop.trf.xlu0 }
 0x69b   :  { %v2414_v45 = vrot.slane %v2348_v34, %v9797_v47 }
 0x69d   :  { %2383 = vbcast.lane.b32.xlu1 %v2377_v44, 264  ;;  %v2415_v51 = vcombine.high %v2414_v45, %v2414_v45  ;;  %v2422_v55 = vrot.slane %v2414_v45, %v9797_v47 }
 0x69f   :  { %v2429_v54 = vrot.slane %v2415_v51, %v9797_v47  ;;  %v2430_v57 = vcombine.high %v2422_v55, %v2422_v55  ;;  %v2435_v30 = vrot.slane %v2422_v55, %v9794_v42 }
 0x6a1   :  { %2390 = vbcast.lane.b32.xlu1 %v2388_v49, 256  ;;  %v2439_v56 = vrot.slane %v2429_v54, %v9794_v42  ;;  %v2443_v59 = vrot.slane %v2430_v57, %v9794_v42  ;;  %v2431_v10 = vcombine.high %v2429_v54, %v2429_v54 }
 0x6a3   :  { %v2447_v19 = vrot.slane %v2431_v10, %v9794_v42 }
 0x6a5   :  { %2394 = vbcast.lane.b32.xlu1 %v2388_v49, 264 }
 0x6a9   :  { %2401 = vbcast.lane.b32.xlu1 %v2399_v50, 256 }
 0x6ad   :  { %2405 = vbcast.lane.b32.xlu1 %v2399_v50, 264 }
 0x6b1   :  { %2368 = vbcast.lane.b32.xlu1 %v2366_v53, 256 }
 0x6b5   :  { %2372 = vbcast.lane.b32.xlu1 %v2366_v53, 264 }
 0x70b   :  { %v2380_v37 = vpop.permute.xlu1 %2379 }
 0x70c   :  { %v2454_v16 = vadd.f32 %v2439_v56, %v2380_v37 }
 0x70e   :  { %v2470_v62 = vmul.f32 0.2, %v2454_v16  ;;  %vm2462_vm9 = vcmp.gt.f32.partialorder %v2454_v16, 0.0 }
 0x70f   :  { %v2384_v52 = vpop.permute.xlu1 %2383 }
 0x710   :  { %v2455_v58 = vadd.f32 %v2439_v56, %v2384_v52  ;;  %v2478_v61 = vsel %vm2462_vm9, %v2454_v16, %v2470_v62 }
 0x711   :  { %v9937_v15 = vadd.f32 %v9353_v63, %v2478_v61 }
 0x712   :  { %v2471_v1 = vmul.f32 0.2, %v2455_v58  ;;  %vm2463_vm10 = vcmp.gt.f32.partialorder %v2455_v58, 0.0 }
 0x713   :  { %v2391_v2 = vpop.permute.xlu1 %2390  ;;  %v2498_v4 = vsel %vm564_vm4, %v9937_v15, -inf }
 0x714   :  { %v2456_v5 = vadd.f32 %v2443_v59, %v2391_v2  ;;  %2499 = vmax.xlane.f32.xlu0 %v2498_v4  ;;  %v2479_v3 = vsel %vm2463_vm10, %v2455_v58, %v2471_v1 }
 0x715   :  { %v2487_v7 = vadd.f32 %v9354_v6, %v2479_v3 }
 0x716   :  { %v2472_v8 = vmul.f32 0.2, %v2456_v5  ;;  %vm2464_vm15 = vcmp.gt.f32.partialorder %v2456_v5, 0.0 }
 0x717   :  { %v2395_v11 = vpop.permute.xlu1 %2394  ;;  %v2501_v12 = vsel %vm564_vm4, %v2487_v7, -inf }
 0x718   :  { %v2457_v13 = vadd.f32 %v2443_v59, %v2395_v11  ;;  %2502 = vmax.xlane.f32.xlu1 %v2501_v12  ;;  %v2480_v14 = vsel %vm2464_vm15, %v2456_v5, %v2472_v8 }
 0x719   :  { %v2488_v17 = vadd.f32 %v9353_v63, %v2480_v14 }
 0x71a   :  { %v2473_v18 = vmul.f32 0.2, %v2457_v13  ;;  %vm2465_vm0 = vcmp.gt.f32.partialorder %v2457_v13, 0.0 }
 0x71b   :  { %v2402_v20 = vpop.permute.xlu1 %2401  ;;  %v2504_v21 = vsel %vm564_vm4, %v2488_v17, -inf }
 0x71c   :  { %v2458_v22 = vadd.f32 %v2447_v19, %v2402_v20  ;;  %2505 = vmax.xlane.f32.xlu1 %v2504_v21  ;;  %v2481_v23 = vsel %vm2465_vm0, %v2457_v13, %v2473_v18 }
 0x71d   :  { %v2489_v24 = vadd.f32 %v9354_v6, %v2481_v23 }
 0x71e   :  { %v2474_v60 = vmul.f32 0.2, %v2458_v22  ;;  %vm2466_vm2 = vcmp.gt.f32.partialorder %v2458_v22, 0.0 }
 0x71f   :  { %v2406_v25 = vpop.permute.xlu1 %2405  ;;  %v2507_v26 = vsel %vm564_vm4, %v2489_v24, -inf }
 0x720   :  { %v2459_v0 = vadd.f32 %v2447_v19, %v2406_v25  ;;  %2508 = vmax.xlane.f32.xlu1 %v2507_v26  ;;  %v2482_v27 = vsel %vm2466_vm2, %v2458_v22, %v2474_v60 }
 0x721   :  { %v2490_v28 = vadd.f32 %v9353_v63, %v2482_v27 }
 0x722   :  { %v2475_v29 = vmul.f32 0.2, %v2459_v0  ;;  %vm2467_vm3 = vcmp.gt.f32.partialorder %v2459_v0, 0.0 }
 0x723   :  { %v2369_v31 = vpop.permute.xlu1 %2368  ;;  %v2510_v32 = vsel %vm564_vm4, %v2490_v28, -inf }
 0x724   :  { %v2452_v33 = vadd.f32 %v2435_v30, %v2369_v31  ;;  %2511 = vmax.xlane.f32.xlu0 %v2510_v32  ;;  %v2483_v38 = vsel %vm2467_vm3, %v2459_v0, %v2475_v29 }
 0x725   :  { %v2491_v39 = vadd.f32 %v9354_v6, %v2483_v38 }
 0x726   :  { %v2468_v41 = vmul.f32 0.2, %v2452_v33  ;;  %vm2460_vm5 = vcmp.gt.f32.partialorder %v2452_v33, 0.0 }
 0x727   :  { %v2373_v43 = vpop.permute.xlu1 %2372  ;;  %v2513_v46 = vsel %vm564_vm4, %v2491_v39, -inf }
 0x728   :  { %v2453_v48 = vadd.f32 %v2435_v30, %v2373_v43  ;;  %2514 = vmax.xlane.f32.xlu1 %v2513_v46  ;;  %v2476_v44 = vsel %vm2460_vm5, %v2452_v33, %v2468_v41 }
 0x729   :  { %v2484_v49 = vadd.f32 %v9353_v63, %v2476_v44 }
 0x72a   :  { %v2469_v50 = vmul.f32 0.2, %v2453_v48  ;;  %vm2461_vm6 = vcmp.gt.f32.partialorder %v2453_v48, 0.0 }
 0x72b   :  { %v2492_v53 = vsel %vm564_vm4, %v2484_v49, -inf }
 0x72c   :  { %2493 = vmax.xlane.f32.xlu0 %v2492_v53  ;;  %v2477_v34 = vsel %vm2461_vm6, %v2453_v48, %v2469_v50 }
 0x72d   :  { %v2485_v45 = vadd.f32 %v9354_v6, %v2477_v34 }
 0x72f   :  { %v2495_v51 = vsel %vm564_vm4, %v2485_v45, -inf }
 0x730   :  { %2496 = vmax.xlane.f32.xlu1 %v2495_v51 }
 0x79d   :  { %v2500_v54 = vpop.xlane.xlu0 %2499 }
 0x79e   :  { %v2518_v55 = vsub.f32 %v9937_v15, %v2500_v54 }
 0x7a0   :  { %v2528_v56 = vmul.f32 1.442695, %v2518_v55  ;;  %v8638_v55 = vld [vmem:[#allocation13 + $0x11c] ss:$20 sps:$4 sm:$0xff]  }
 0x7a1   :  { %v2503_v37 = vpop.xlane.xlu1 %2502  ;;  %3996 = vmatprep.subr.bf16.mxu1 %v8638_v55  ;;  %v8704_v55 = vld [vmem:[#allocation13 + $0x1e4] ss:$20 sps:$4 sm:$0xff]  }
 0x7a2   :  { %9200 = vpow2.f32 %v2528_v56  ;;  %v2519_v57 = vsub.f32 %v2487_v7, %v2503_v37  ;;  %v8641_v37 = vld [vmem:[#allocation13 + $0x39c] ss:$20 sps:$4 sm:$0xff]  }
 0x7a3   :  { %4039 = vmatprep.subr.bf16.mxu0 %v8641_v37  ;;  %v8702_v37 = vld [vmem:[#allocation13 + $0x1e0] ss:$20 sps:$4 sm:$0xff]  }
 0x7a4   :  { %v2530_v16 = vmul.f32 1.442695, %v2519_v57 }
 0x7a5   :  { %v2506_v62 = vpop.xlane.xlu1 %2505 }
 0x7a6   :  { %9202 = vpow2.f32 %v2530_v16  ;;  %v2520_v52 = vsub.f32 %v2488_v17, %v2506_v62 }
 0x7a8   :  { %v2532_v58 = vmul.f32 1.442695, %v2520_v52 }
 0x7a9   :  { %v2509_v59 = vpop.xlane.xlu1 %2508 }
 0x7aa   :  { %9204 = vpow2.f32 %v2532_v58  ;;  %v2521_v61 = vsub.f32 %v2489_v24, %v2509_v59 }
 0x7ac   :  { %v2534_v63 = vmul.f32 1.442695, %v2521_v61 }
 0x7ad   :  { %v2512_v1 = vpop.xlane.xlu0 %2511 }
 0x7ae   :  { %9206 = vpow2.f32 %v2534_v63  ;;  %v2522_v2 = vsub.f32 %v2490_v28, %v2512_v1 }
 0x7af   :  { %v9201_v4 = vpop.eup %9200 }
 0x7b0   :  { %v2536_v5 = vmul.f32 1.442695, %v2522_v2  ;;  %v2546_v15 = vsel %vm564_vm4, %v9201_v4, 0.0 }
 0x7b1   :  { %v2515_v3 = vpop.xlane.xlu1 %2514  ;;  %2547 = vadd.xlane.f32.xlu0 %v2546_v15 }
 0x7b2   :  { %9208 = vpow2.f32 %v2536_v5  ;;  %v2523_v6 = vsub.f32 %v2491_v39, %v2515_v3  ;;  %v8639_v3 = vld [vmem:[#allocation13 + $0x398] ss:$20 sps:$4 sm:$0xff]  }
 0x7b3   :  { %v9203_v7 = vpop.eup %9202 }
 0x7b4   :  { %v2538_v8 = vmul.f32 1.442695, %v2523_v6  ;;  %v2549_v10 = vsel %vm564_vm4, %v9203_v7, 0.0 }
 0x7b5   :  { %2550 = vadd.xlane.f32.xlu1 %v2549_v10  ;;  %v2494_v11 = vpop.xlane.xlu0 %2493  ;;  %v8642_v10 = vld [vmem:[#allocation13 + $0xf0] ss:$20 sps:$4 sm:$0xff]  }
 0x7b6   :  { %9210 = vpow2.f32 %v2538_v8  ;;  %v2516_v12 = vsub.f32 %v2484_v49, %v2494_v11  ;;  %v8647_v8 = vld [vmem:[#allocation13 + $0x374] ss:$20 sps:$4 sm:$0xff]   ;;  %v8645_v11 = vld [vmem:[#allocation13 + $0x370] ss:$20 sps:$4 sm:$0xff]  }
 0x7b7   :  { %v9205_v13 = vpop.eup %9204 }
 0x7b8   :  { %v2524_v14 = vmul.f32 1.442695, %v2516_v12  ;;  %v2552_v17 = vsel %vm564_vm4, %v9205_v13, 0.0  ;;  %v8650_v12 = vld [vmem:[#allocation13 + $0xcc] ss:$20 sps:$4 sm:$0xff]  }
 0x7b9   :  { %v2497_v18 = vpop.xlane.xlu1 %2496  ;;  %2553 = vadd.xlane.f32.xlu0 %v2552_v17  ;;  %v8651_v17 = vld [vmem:[#allocation13 + $0x348] ss:$20 sps:$4 sm:$0xff]  }
 0x7ba   :  { %9212 = vpow2.f32 %v2524_v14  ;;  %v2517_v19 = vsub.f32 %v2485_v45, %v2497_v18  ;;  %v8648_v14 = vld [vmem:[#allocation13 + $0xc8] ss:$20 sps:$4 sm:$0xff]   ;;  %v8656_v18 = vld [vmem:[#allocation13 + $0xa4] ss:$20 sps:$4 sm:$0xff]  }
 0x7bb   :  { %v9207_v20 = vpop.eup %9206 }
 0x7bc   :  { %v2526_v21 = vmul.f32 1.442695, %v2517_v19  ;;  %v2555_v22 = vsel %vm564_vm4, %v9207_v20, 0.0  ;;  %v8659_v19 = vld [vmem:[#allocation13 + $0x324] ss:$20 sps:$4 sm:$0xff]  }
 0x7bd   :  { %2556 = vadd.xlane.f32.xlu1 %v2555_v22  ;;  %v8662_v22 = vld [vmem:[#allocation13 + $0x7c] ss:$20 sps:$4 sm:$0xff]  }
 0x7be   :  { %9214 = vpow2.f32 %v2526_v21  ;;  %v8657_v21 = vld [vmem:[#allocation13 + $0x320] ss:$20 sps:$4 sm:$0xff]  }
 0x7bf   :  { %v9209_v23 = vpop.eup %9208 }
 0x7c0   :  { %v2558_v24 = vsel %vm564_vm4, %v9209_v23, 0.0 }
 0x7c1   :  { %2559 = vadd.xlane.f32.xlu0 %v2558_v24  ;;  %v8660_v24 = vld [vmem:[#allocation13 + $0x78] ss:$20 sps:$4 sm:$0xff]  }
 0x7c3   :  { %v9211_v60 = vpop.eup %9210 }
 0x7c4   :  { %v2561_v25 = vsel %vm564_vm4, %v9211_v60, 0.0 }
 0x7c5   :  { %2562 = vadd.xlane.f32.xlu1 %v2561_v25  ;;  %v8668_v25 = vld [vmem:[#allocation13 + $0x54] ss:$20 sps:$4 sm:$0xff]  }
 0x7c7   :  { %v9213_v26 = vpop.eup %9212 }
 0x7c8   :  { %v2540_v0 = vsel %vm564_vm4, %v9213_v26, 0.0 }
 0x7c9   :  { %2541 = vadd.xlane.f32.xlu0 %v2540_v0  ;;  %v8666_v0 = vld [vmem:[#allocation13 + $0x50] ss:$20 sps:$4 sm:$0xff]  }
 0x7cb   :  { %v9215_v27 = vpop.eup %9214 }
 0x7cc   :  { %v2543_v28 = vsel %vm564_vm4, %v9215_v27, 0.0 }
 0x7cd   :  { %2544 = vadd.xlane.f32.xlu1 %v2543_v28  ;;  %v8674_v28 = vld [vmem:[#allocation13 + $0x2c] ss:$20 sps:$4 sm:$0xff]  }
 0x83a   :  { %v2548_v29 = vpop.xlane.xlu0 %2547 }
 0x83b   :  { %9216 = vrcp.f32 %v2548_v29  ;;  %v8677_v29 = vld [vmem:[#allocation13 + $0x2ac] ss:$20 sps:$4 sm:$0xff]  }
 0x83e   :  { %v2551_v30 = vpop.xlane.xlu1 %2550 }
 0x83f   :  { %9218 = vrcp.f32 %v2551_v30  ;;  %v8672_v30 = vld [vmem:[#allocation13 + $0x28] ss:$20 sps:$4 sm:$0xff]  }
 0x842   :  { %v2554_v31 = vpop.xlane.xlu0 %2553 }
 0x843   :  { %9220 = vrcp.f32 %v2554_v31  ;;  %v8675_v31 = vld [vmem:[#allocation13 + $0x2a8] ss:$20 sps:$4 sm:$0xff]  }
 0x846   :  { %v2557_v32 = vpop.xlane.xlu1 %2556 }
 0x847   :  { %9222 = vrcp.f32 %v2557_v32  ;;  %v8680_v32 = vld [vmem:[#allocation13 + $0x4] ss:$20 sps:$4 sm:$0xff]  }
 0x848   :  { %v9217_v33 = vpop.eup %9216 }
 0x849   :  { %v2574_v38 = vmul.f32 %v9217_v33, %v9201_v4  ;;  %v8636_v4 = vld [vmem:[#allocation13 + $0x118] ss:$20 sps:$4 sm:$0xff]  }
 0x84a   :  { %v2560_v39 = vpop.xlane.xlu0 %2559  ;;  %v8683_v33 = vld [vmem:[#allocation13 + $0x284] ss:$20 sps:$4 sm:$0xff]  }
 0x84b   :  { %9224 = vrcp.f32 %v2560_v39  ;;  %2593 = vrot.lane.b32.xlu0 %v2574_v38, %s9615_s2  ;;  %v8678_v38 = vld [vmem:[#allocation13] ss:$20 sps:$4 sm:$0xff]  }
 0x84c   :  { %v9219_v41 = vpop.eup %9218  ;;  %v8681_v39 = vld [vmem:[#allocation13 + $0x280] ss:$20 sps:$4 sm:$0xff]  }
 0x84d   :  { %v2575_v43 = vmul.f32 %v9219_v41, %v9203_v7  ;;  %v8644_v7 = vld [vmem:[#allocation13 + $0xf4] ss:$20 sps:$4 sm:$0xff]   ;;  %v8686_v41 = vld [vmem:[#allocation13 + $0x25c] ss:$20 sps:$4 sm:$0xff]  }
 0x84e   :  { %v2563_v46 = vpop.xlane.xlu1 %2562 }
 0x84f   :  { %9226 = vrcp.f32 %v2563_v46  ;;  %2595 = vrot.lane.b32.xlu1 %v2575_v43, %s9615_s2  ;;  %v8689_v43 = vld [vmem:[#allocation13 + $0x4dc] ss:$20 sps:$4 sm:$0xff]   ;;  %v8684_v46 = vld [vmem:[#allocation13 + $0x258] ss:$20 sps:$4 sm:$0xff]  }
 0x850   :  { %v9221_v48 = vpop.eup %9220 }
 0x851   :  { %v2576_v44 = vmul.f32 %v9221_v48, %v9205_v13  ;;  %v8653_v13 = vld [vmem:[#allocation13 + $0x34c] ss:$20 sps:$4 sm:$0xff]  }
 0x852   :  { %v2542_v49 = vpop.xlane.xlu0 %2541  ;;  %v8687_v48 = vld [vmem:[#allocation13 + $0x4d8] ss:$20 sps:$4 sm:$0xff]  }
 0x853   :  { %9228 = vrcp.f32 %v2542_v49  ;;  %2612 = vrot.lane.b32.xlu1 %v2576_v44, %s9616_s25  ;;  %v8692_v44 = vld [vmem:[#allocation13 + $0x234] ss:$20 sps:$4 sm:$0xff]  }
 0x854   :  { %v9223_v50 = vpop.eup %9222  ;;  %v8695_v49 = vld [vmem:[#allocation13 + $0x4b4] ss:$20 sps:$4 sm:$0xff]  }
 0x855   :  { %v2577_v53 = vmul.f32 %v9223_v50, %v9207_v20  ;;  %v8654_v20 = vld [vmem:[#allocation13 + $0xa0] ss:$20 sps:$4 sm:$0xff]   ;;  %v8690_v50 = vld [vmem:[#allocation13 + $0x230] ss:$20 sps:$4 sm:$0xff]  }
 0x856   :  { %v2545_v34 = vpop.xlane.xlu1 %2544 }
 0x857   :  { %9230 = vrcp.f32 %v2545_v34  ;;  %2614 = vrot.lane.b32.xlu1 %v2577_v53, %s9616_s25  ;;  %v8693_v53 = vld [vmem:[#allocation13 + $0x4b0] ss:$20 sps:$4 sm:$0xff]   ;;  %v8698_v34 = vld [vmem:[#allocation13 + $0x20c] ss:$20 sps:$4 sm:$0xff]  }
 0x858   :  { %v9225_v45 = vpop.eup %9224 }
 0x859   :  { %v2578_v51 = vmul.f32 %v9225_v45, %v9209_v23  ;;  %v8665_v23 = vld [vmem:[#allocation13 + $0x2fc] ss:$20 sps:$4 sm:$0xff]   ;;  %v8701_v45 = vld [vmem:[#allocation13 + $0x48c] ss:$20 sps:$4 sm:$0xff]  }
 0x85b   :  { %2631 = vrot.lane.b32.xlu0 %v2578_v51, %s9617_s22  ;;  %v8696_v51 = vld [vmem:[#allocation13 + $0x208] ss:$20 sps:$4 sm:$0xff]  }
 0x85c   :  { %v9227_v54 = vpop.eup %9226 }
 0x85d   :  { %v2579_v56 = vmul.f32 %v9227_v54, %v9211_v60  ;;  %v8663_v60 = vld [vmem:[#allocation13 + $0x2f8] ss:$20 sps:$4 sm:$0xff]   ;;  %v8699_v54 = vld [vmem:[#allocation13 + $0x488] ss:$20 sps:$4 sm:$0xff]  }
 0x85f   :  { %2633 = vrot.lane.b32.xlu1 %v2579_v56, %s9617_s22  ;;  %v8707_v56 = vld [vmem:[#allocation13 + $0x464] ss:$20 sps:$4 sm:$0xff]  }
 0x860   :  { %v9229_v57 = vpop.eup %9228 }
 0x861   :  { %v2572_v16 = vmul.f32 %v9229_v57, %v9213_v26  ;;  %v8671_v26 = vld [vmem:[#allocation13 + $0x2d4] ss:$20 sps:$4 sm:$0xff]  }
 0x862   :  { %v8705_v57 = vld [vmem:[#allocation13 + $0x460] ss:$20 sps:$4 sm:$0xff]  }
 0x863   :  { %2580 = vst.msk [vmem:[#allocation2] sm:$0xff] %vm564_vm4, %v2572_v16  ;;  %v8710_v16 = vld [vmem:[#allocation13 + $0x1bc] ss:$20 sps:$4 sm:$0xff]  }
 0x864   :  { %v9231_v62 = vpop.eup %9230 }
 0x865   :  { %v2573_v52 = vmul.f32 %v9231_v62, %v9215_v27  ;;  %v8669_v27 = vld [vmem:[#allocation13 + $0x2d0] ss:$20 sps:$4 sm:$0xff]  }
 0x866   :  { %v8713_v62 = vld [vmem:[#allocation13 + $0x43c] ss:$20 sps:$4 sm:$0xff]  }
 0x867   :  { %2581 = vst.msk [vmem:[#allocation2 + $0x8] sm:$0xff] %vm564_vm4, %v2573_v52  ;;  %v8708_v52 = vld [vmem:[#allocation13 + $0x1b8] ss:$20 sps:$4 sm:$0xff]  }
 0x8bd   :  { %v2594_v58 = vpop.permute.xlu0 %2593 }
 0x8be   :  { %2599 = vst.msk [vmem:[#allocation2] sm:$0xff] %vm672_vm11, %v2594_v58  ;;  %v8711_v58 = vld [vmem:[#allocation13 + $0x438] ss:$20 sps:$4 sm:$0xff]  }
 0x8c1   :  { %v2596_v59 = vpop.permute.xlu1 %2595 }
 0x8c2   :  { %2600 = vst.msk [vmem:[#allocation2 + $0x8] sm:$0xff] %vm672_vm11, %v2596_v59  ;;  %v8716_v59 = vld [vmem:[#allocation13 + $0x194] ss:$20 sps:$4 sm:$0xff]  }
 0x8c5   :  { %v2613_v61 = vpop.permute.xlu1 %2612 }
 0x8c6   :  { %2618 = vst.msk [vmem:[#allocation2] sm:$0xff] %vm692_vm12, %v2613_v61  ;;  %v8719_v61 = vld [vmem:[#allocation13 + $0x414] ss:$20 sps:$4 sm:$0xff]  }
 0x8c9   :  { %v2615_v63 = vpop.permute.xlu1 %2614 }
 0x8ca   :  { %2619 = vst.msk [vmem:[#allocation2 + $0x8] sm:$0xff] %vm692_vm12, %v2615_v63  ;;  %v8714_v63 = vld [vmem:[#allocation13 + $0x190] ss:$20 sps:$4 sm:$0xff]  }
 0x8cd   :  { %v2632_v1 = vpop.permute.xlu0 %2631 }
 0x8ce   :  { %2637 = vst.msk [vmem:[#allocation2] sm:$0xff] %vm712_vm13, %v2632_v1  ;;  %v8717_v1 = vld [vmem:[#allocation13 + $0x410] ss:$20 sps:$4 sm:$0xff]  }
 0x8d1   :  { %v2634_v2 = vpop.permute.xlu1 %2633 }
 0x8d2   :  { %2638 = vst.msk [vmem:[#allocation2 + $0x8] sm:$0xff] %vm712_vm13, %v2634_v2  ;;  %v8722_v2 = vld [vmem:[#allocation13 + $0x16c] ss:$20 sps:$4 sm:$0xff]  }
 0x8d5   :  { %v2648_v5 = vld [vmem:[#allocation2] sm:$0xff] }
 0x8d9   :  { %v2649_v15 = vld [vmem:[#allocation2 + $0x8] sm:$0xff] }
 0x8da   :  { %v2650_v6 = vpack.c.bf16 %v2649_v15, %v2648_v5  ;;  %v8720_v5 = vld [vmem:[#allocation13 + $0x168] ss:$20 sps:$4 sm:$0xff]  }
 0x8db   :  { %v8723_v15 = vld [vmem:[#allocation13 + $0x3e8] ss:$20 sps:$4 sm:$0xff]  }
 0x8dc   :  { %7639 = vmatmul.mubr.msk.bf16.vlgmr.msra.gmra.mxu1 %vm845_vm14, %v2650_v6  ;;  %7640 = vmatmul.mubr.msk.bf16.vlgmr.msra.gmra.mxu0 %vm845_vm14, %v2650_v6  ;;  %v8728_v6 = vld [vmem:[#allocation13 + $0x144] ss:$20 sps:$4 sm:$0xff]  }
 0x8dd   :  { %3997 = vmatpush1.bf16.msra.mxu1 %v8636_v4  ;;  %4040 = vmatpush1.bf16.msra.mxu0 %v8639_v3  ;;  %v8725_v4 = vld [vmem:[#allocation13 + $0x3ec] ss:$20 sps:$4 sm:$0xff]  }
 0x8de   :  { %3998 = vmatprep.subr.bf16.mxu1 %v8644_v7  ;;  %4041 = vmatprep.subr.bf16.mxu0 %v8647_v8  ;;  %v8726_v3 = vld [vmem:[#allocation13 + $0x140] ss:$20 sps:$4 sm:$0xff]   ;;  %v8731_v8 = vld [vmem:[#allocation13 + $0x3c4] ss:$20 sps:$4 sm:$0xff]  }
 0x8df   :  { %v8729_v7 = vld [vmem:[#allocation13 + $0x3c0] ss:$20 sps:$4 sm:$0xff]  }
 0x8e1   :  { %3999 = vmatpush1.bf16.msra.mxu1 %v8642_v10  ;;  %4042 = vmatpush1.bf16.msra.mxu0 %v8645_v11  ;;  %v8734_v10 = vld [vmem:[#allocation13 + $0x124] ss:$20 sps:$4 sm:$0xff]  }
 0x8e2   :  { %4000 = vmatprep.subr.bf16.mxu1 %v8650_v12  ;;  %4043 = vmatprep.subr.bf16.mxu0 %v8653_v13  ;;  %v8737_v11 = vld [vmem:[#allocation13 + $0x3a4] ss:$20 sps:$4 sm:$0xff]  }
 0x8e3   :  { %v2667_v12 = vld [vmem:[#allocation12] ss:$4 sm:$0xf] }
 0x8e4   :  { %v2672_v13 = vrot.slane %v2667_v12, %v9794_v42 }
 0x8e5   :  { %4001 = vmatpush1.bf16.msra.mxu1 %v8648_v14  ;;  %4044 = vmatpush1.bf16.msra.mxu0 %v8651_v17  ;;  %v2680_v14 = vrot.slane %v2667_v12, %v9785_v35 }
 0x8e6   :  { %4002 = vmatprep.subr.bf16.mxu1 %v8656_v18  ;;  %4045 = vmatprep.subr.bf16.mxu0 %v8659_v19  ;;  %v2676_v19 = vrot.slane %v2667_v12, %v9787_v36 }
 0x8e9   :  { %4003 = vmatpush1.bf16.msra.mxu1 %v8654_v20  ;;  %4046 = vmatpush1.bf16.msra.mxu0 %v8657_v21  ;;  %v2684_v20 = vrot.slane %v2667_v12, %v9791_v40 }
 0x8ea   :  { %4004 = vmatprep.subr.bf16.mxu1 %v8662_v22  ;;  %4047 = vmatprep.subr.bf16.mxu0 %v8665_v23 }
 0x8ed   :  { %4005 = vmatpush1.bf16.msra.mxu1 %v8660_v24  ;;  %4048 = vmatpush1.bf16.msra.mxu0 %v8663_v60 }
 0x8ee   :  { %4006 = vmatprep.subr.bf16.mxu1 %v8668_v25  ;;  %4049 = vmatprep.subr.bf16.mxu0 %v8671_v26 }
 0x8f1   :  { %4007 = vmatpush1.bf16.msra.mxu1 %v8666_v0  ;;  %4050 = vmatpush1.bf16.msra.mxu0 %v8669_v27 }
 0x8f2   :  { %4008 = vmatprep.subr.bf16.mxu1 %v8674_v28  ;;  %4051 = vmatprep.subr.bf16.mxu0 %v8677_v29 }
 0x8f5   :  { %4009 = vmatpush1.bf16.msra.mxu1 %v8672_v30  ;;  %4052 = vmatpush1.bf16.msra.mxu0 %v8675_v31 }
 0x8f6   :  { %4010 = vmatprep.subr.bf16.mxu1 %v8680_v32  ;;  %4053 = vmatprep.subr.bf16.mxu0 %v8683_v33 }
 0x8f9   :  { %4011 = vmatpush1.bf16.msra.mxu1 %v8678_v38  ;;  %4054 = vmatpush1.bf16.msra.mxu0 %v8681_v39 }
 0x8fa   :  { %4012 = vmatprep.subr.bf16.mxu1 %v8686_v41  ;;  %4055 = vmatprep.subr.bf16.mxu0 %v8689_v43 }
 0x8fd   :  { %4013 = vmatpush2.bf16.msra.mxu1 %v8684_v46  ;;  %4056 = vmatpush2.bf16.msra.mxu0 %v8687_v48 }
 0x8fe   :  { %4014 = vmatprep.subr.bf16.mxu1 %v8692_v44  ;;  %4057 = vmatprep.subr.bf16.mxu0 %v8695_v49 }
 0x901   :  { %4015 = vmatpush2.bf16.msra.mxu1 %v8690_v50  ;;  %4058 = vmatpush2.bf16.msra.mxu0 %v8693_v53 }
 0x902   :  { %4016 = vmatprep.subr.bf16.mxu1 %v8698_v34  ;;  %4059 = vmatprep.subr.bf16.mxu0 %v8701_v45 }
 0x905   :  { %4017 = vmatpush2.bf16.msra.mxu1 %v8696_v51  ;;  %4060 = vmatpush2.bf16.msra.mxu0 %v8699_v54 }
 0x906   :  { %4018 = vmatprep.subr.bf16.mxu1 %v8704_v55  ;;  %4061 = vmatprep.subr.bf16.mxu0 %v8707_v56  ;;  %v2907_v56 = vld [vmem:[#allocation12 + $0x1] ss:$4 sm:$0xf] }
 0x909   :  { %4019 = vmatpush2.bf16.msra.mxu1 %v8702_v37  ;;  %4062 = vmatpush2.bf16.msra.mxu0 %v8705_v57  ;;  %v2938_v37 = vld [vmem:[#allocation12 + $0x2] ss:$4 sm:$0xf] }
 0x90a   :  { %4020 = vmatprep.subr.bf16.mxu1 %v8710_v16  ;;  %4063 = vmatprep.subr.bf16.mxu0 %v8713_v62 }
 0x90d   :  { %4021 = vmatpush2.bf16.msra.mxu1 %v8708_v52  ;;  %4064 = vmatpush2.bf16.msra.mxu0 %v8711_v58  ;;  %v2912_v52 = vrot.slane %v2907_v56, %v9794_v42  ;;  %v2943_v58 = vrot.slane %v2938_v37, %v9794_v42 }
 0x90e   :  { %4022 = vmatprep.subr.bf16.mxu1 %v8716_v59  ;;  %4065 = vmatprep.subr.bf16.mxu0 %v8719_v61  ;;  %v2920_v59 = vrot.slane %v2907_v56, %v9785_v35 }
 0x911   :  { %4023 = vmatpush2.bf16.msra.mxu1 %v8714_v63  ;;  %4066 = vmatpush2.bf16.msra.mxu0 %v8717_v1 }
 0x912   :  { %4024 = vmatprep.subr.bf16.mxu1 %v8722_v2  ;;  %4067 = vmatprep.subr.bf16.mxu0 %v8725_v4  ;;  %v2916_v2 = vrot.slane %v2907_v56, %v9787_v36  ;;  %v2924_v4 = vrot.slane %v2907_v56, %v9791_v40  ;;  %v8738_v56 = vld [vmem:[#allocation13 + $0xf8] ss:$20 sps:$4 sm:$0xff]  }
 0x915   :  { %4025 = vmatpush2.bf16.msra.mxu1 %v8720_v5  ;;  %4068 = vmatpush2.bf16.msra.mxu0 %v8723_v15 }
 0x916   :  { %4026 = vmatprep.subr.bf16.mxu1 %v8728_v6  ;;  %4069 = vmatprep.subr.bf16.mxu0 %v8731_v8  ;;  %v2947_v6 = vrot.slane %v2938_v37, %v9787_v36 }
 0x919   :  { %4027 = vmatpush2.bf16.msra.mxu1 %v8726_v3  ;;  %4070 = vmatpush2.bf16.msra.mxu0 %v8729_v7  ;;  %v2955_v7 = vrot.slane %v2938_v37, %v9791_v40 }
 0x91a   :  { %4082 = vmatprep.subr.bf16.mxu1 %v8734_v10  ;;  %4125 = vmatprep.subr.bf16.mxu0 %v8737_v11 }
 0x99c   :  { %v2806_v17 = vpop.f32.mrf.mxu1  ;;  %v2849_v18 = vpop.f32.mrf.mxu0 }
 0x99d   :  { %v9979_v21 = vadd.f32 %v2806_v17, %v2672_v13  ;;  %v9981_v22 = vadd.f32 %v2849_v18, %v2680_v14 }
 0x99e   :  { %v2808_v23 = vpop.f32.mrf.mxu1  ;;  %v2851_v24 = vpop.f32.mrf.mxu0 }
 0x99f   :  { %v2866_v60 = vmin.f32 %v9979_v21, 0.0  ;;  %v2868_v25 = vmin.f32 %v9981_v22, 0.0  ;;  %v2809_v26 = vadd.f32 %v2808_v23, %v2676_v19  ;;  %v2852_v0 = vadd.f32 %v2851_v24, %v2684_v20 }
 0x9a0   :  { %v2810_v27 = vpop.f32.mrf.mxu1  ;;  %v2853_v28 = vpop.f32.mrf.mxu0  ;;  %vm2858_vm7 = vcmp.gt.f32.partialorder %v9979_v21, 0.0  ;;  %vm2860_vm8 = vcmp.gt.f32.partialorder %v9981_v22, 0.0 }
 0x9a1   :  { %v2874_v29 = vmul.f32 1.442695, %v2866_v60  ;;  %v2878_v30 = vmul.f32 1.442695, %v2868_v25  ;;  %v2811_v31 = vadd.f32 %v2810_v27, %v2672_v13  ;;  %v2854_v32 = vadd.f32 %v2853_v28, %v2680_v14 }
 0x9a2   :  { %v2867_v33 = vmin.f32 %v2809_v26, 0.0  ;;  %v2869_v38 = vmin.f32 %v2852_v0, 0.0  ;;  %v2812_v39 = vpop.f32.mrf.mxu1  ;;  %v2855_v41 = vpop.f32.mrf.mxu0  ;;  %vm2859_vm9 = vcmp.gt.f32.partialorder %v2809_v26, 0.0  ;;  %vm2861_vm10 = vcmp.gt.f32.partialorder %v2852_v0, 0.0 }
 0x9a3   :  { %v2870_v43 = vmin.f32 %v2811_v31, 0.0  ;;  %9232 = vpow2.f32 %v2874_v29  ;;  %v2872_v44 = vmin.f32 %v2854_v32, 0.0  ;;  %v2813_v50 = vadd.f32 %v2812_v39, %v2676_v19 }
 0x9a4   :  { %v2876_v46 = vmul.f32 1.442695, %v2867_v33  ;;  %v2880_v48 = vmul.f32 1.442695, %v2869_v38  ;;  %9234 = vpow2.f32 %v2878_v30  ;;  %v2856_v53 = vadd.f32 %v2855_v41, %v2684_v20 }
 0x9a5   :  { %v2882_v49 = vmul.f32 1.442695, %v2870_v43  ;;  %v2886_v34 = vmul.f32 1.442695, %v2872_v44  ;;  %v2871_v45 = vmin.f32 %v2813_v50, 0.0  ;;  %vm2862_vm15 = vcmp.gt.f32.partialorder %v2811_v31, 0.0 }
 0x9a6   :  { %9236 = vpow2.f32 %v2876_v46  ;;  %v2873_v51 = vmin.f32 %v2856_v53, 0.0  ;;  %vm2864_vm0 = vcmp.gt.f32.partialorder %v2854_v32, 0.0  ;;  %vm2863_vm2 = vcmp.gt.f32.partialorder %v2813_v50, 0.0 }
 0x9a7   :  { %9238 = vpow2.f32 %v2880_v48  ;;  %v2884_v54 = vmul.f32 1.442695, %v2871_v45  ;;  %vm2865_vm3 = vcmp.gt.f32.partialorder %v2856_v53, 0.0 }
 0x9a8   :  { %9240 = vpow2.f32 %v2882_v49  ;;  %v2888_v55 = vmul.f32 1.442695, %v2873_v51 }
 0x9a9   :  { %9242 = vpow2.f32 %v2886_v34  ;;  %v8732_v34 = vld [vmem:[#allocation13 + $0x120] ss:$20 sps:$4 sm:$0xff]  }
 0x9aa   :  { %9244 = vpow2.f32 %v2884_v54  ;;  %v8740_v54 = vld [vmem:[#allocation13 + $0xfc] ss:$20 sps:$4 sm:$0xff]  }
 0x9ab   :  { %9246 = vpow2.f32 %v2888_v55  ;;  %v8743_v55 = vld [vmem:[#allocation13 + $0x37c] ss:$20 sps:$4 sm:$0xff]  }
 0x9b0   :  { %v9233_v57 = vpop.eup %9232 }
 0x9b1   :  { %v9235_v16 = vpop.eup %9234  ;;  %v7641_v63 = vadd.f32 -1.0, %v9233_v57  ;;  %v8746_v57 = vld [vmem:[#allocation13 + $0xd4] ss:$20 sps:$4 sm:$0xff]  }
 0x9b2   :  { %v7643_v15 = vadd.f32 -1.0, %v9235_v16  ;;  %v8749_v16 = vld [vmem:[#allocation13 + $0x354] ss:$20 sps:$4 sm:$0xff]  }
 0x9b3   :  { %v9237_v62 = vpop.eup %9236  ;;  %v2898_v14 = vsel %vm2858_vm7, %v9979_v21, %v7641_v63  ;;  %v2951_v21 = vrot.slane %v2938_v37, %v9785_v35  ;;  %v8741_v37 = vld [vmem:[#allocation13 + $0x378] ss:$20 sps:$4 sm:$0xff]   ;;  %v8753_v63 = vld [vmem:[#allocation13 + $0x328] ss:$20 sps:$4 sm:$0xff]  }
 0x9b4   :  { %v9239_v61 = vpop.eup %9238  ;;  %v7642_v1 = vadd.f32 -1.0, %v9237_v62  ;;  %v2900_v20 = vsel %vm2860_vm8, %v9981_v22, %v7643_v15  ;;  %v8744_v62 = vld [vmem:[#allocation13 + $0xd0] ss:$20 sps:$4 sm:$0xff]  }
 0x9b5   :  { %v9241_v5 = vpop.eup %9240  ;;  %v7644_v3 = vadd.f32 -1.0, %v9239_v61  ;;  %v2931_v33 = vmul.f32 %v2920_v59, %v2900_v20  ;;  %v8750_v61 = vld [vmem:[#allocation13 + $0xa8] ss:$20 sps:$4 sm:$0xff]   ;;  %v8785_v20 = vld [vmem:[#allocation13 + $0x4e4] ss:$20 sps:$4 sm:$0xff]  }
 0x9b6   :  { %v9243_v8 = vpop.eup %9242  ;;  %v7645_v10 = vadd.f32 -1.0, %v9241_v5  ;;  %v2899_v11 = vsel %vm2859_vm9, %v2809_v26, %v7642_v1  ;;  %v2929_v26 = vmul.f32 %v2912_v52, %v2898_v14  ;;  %v8758_v1 = vld [vmem:[#allocation13 + $0x84] ss:$20 sps:$4 sm:$0xff]   ;;  %v8759_v5 = vld [vmem:[#allocation13 + $0x300] ss:$20 sps:$4 sm:$0xff]  }
 0x9b7   :  { %v7647_v12 = vadd.f32 -1.0, %v9243_v8  ;;  %v9245_v13 = vpop.eup %9244  ;;  %v2901_v17 = vsel %vm2861_vm10, %v2852_v0, %v7644_v3  ;;  %v2930_v25 = vmul.f32 %v2916_v2, %v2899_v11  ;;  %v2962_v44 = vadd.f32 %v2951_v21, %v2931_v33  ;;  %v8764_v15 = vld [vmem:[#allocation13 + $0x5c] ss:$20 sps:$4 sm:$0xff]   ;;  %v8770_v8 = vld [vmem:[#allocation13 + $0x34] ss:$20 sps:$4 sm:$0xff]  }
 0x9b8   :  { %v2902_v18 = vsel %vm2862_vm15, %v2811_v31, %v7645_v10  ;;  %v9247_v19 = vpop.eup %9246  ;;  %v7646_v60 = vadd.f32 -1.0, %v9245_v13  ;;  %v2932_v29 = vmul.f32 %v2924_v4, %v2901_v17  ;;  %v8767_v3 = vld [vmem:[#allocation13 + $0x2dc] ss:$20 sps:$4 sm:$0xff]   ;;  %v8773_v10 = vld [vmem:[#allocation13 + $0x2b4] ss:$20 sps:$4 sm:$0xff]  }
 0x9b9   :  { %v2933_v23 = vmul.f32 %v2912_v52, %v2902_v18  ;;  %v2904_v24 = vsel %vm2864_vm0, %v2854_v32, %v7647_v12  ;;  %v7648_v28 = vadd.f32 -1.0, %v9247_v19  ;;  %v2961_v22 = vadd.f32 %v2947_v6, %v2930_v25  ;;  %v8747_v52 = vld [vmem:[#allocation13 + $0x350] ss:$20 sps:$4 sm:$0xff]   ;;  %v8776_v13 = vld [vmem:[#allocation13 + $0xc] ss:$20 sps:$4 sm:$0xff]  }
 0x9ba   :  { %v2935_v27 = vmul.f32 %v2920_v59, %v2904_v24  ;;  %v2903_v30 = vsel %vm2863_vm2, %v2813_v50, %v7646_v60  ;;  %v2960_v32 = vadd.f32 %v2943_v58, %v2929_v26  ;;  %v2963_v46 = vadd.f32 %v2955_v7, %v2932_v29  ;;  %v8735_v50 = vld [vmem:[#allocation13 + $0x3a0] ss:$20 sps:$4 sm:$0xff]   ;;  %v8768_v11 = vld [vmem:[#allocation13 + $0x30] ss:$20 sps:$4 sm:$0xff]   ;;  %v8774_v17 = vld [vmem:[#allocation13 + $0x8] ss:$20 sps:$4 sm:$0xff]  }
 0x9bb   :  { %v2934_v0 = vmul.f32 %v2916_v2, %v2903_v30  ;;  %v2905_v31 = vsel %vm2865_vm3, %v2856_v53, %v7648_v28  ;;  %v2964_v38 = vadd.f32 %v2943_v58, %v2933_v23  ;;  %v8752_v58 = vld [vmem:[#allocation13 + $0xac] ss:$20 sps:$4 sm:$0xff]   ;;  %v8761_v2 = vld [vmem:[#allocation13 + $0x304] ss:$20 sps:$4 sm:$0xff]   ;;  %v8777_v18 = vld [vmem:[#allocation13 + $0x288] ss:$20 sps:$4 sm:$0xff]  }
 0x9bc   :  { %v2936_v39 = vmul.f32 %v2924_v4, %v2905_v31  ;;  %v2966_v41 = vadd.f32 %v2951_v21, %v2935_v27  ;;  %v8755_v59 = vld [vmem:[#allocation13 + $0x32c] ss:$20 sps:$4 sm:$0xff]   ;;  %v8771_v12 = vld [vmem:[#allocation13 + $0x2b0] ss:$20 sps:$4 sm:$0xff]   ;;  %v8794_v26 = vld [vmem:[#allocation13 + $0x214] ss:$20 sps:$4 sm:$0xff]  }
 0x9bd   :  { %v2965_v43 = vadd.f32 %v2947_v6, %v2934_v0  ;;  %v10001_v51 = vpack.c.bf16 %v2964_v38, %v2960_v32  ;;  %v8756_v4 = vld [vmem:[#allocation13 + $0x80] ss:$20 sps:$4 sm:$0xff]   ;;  %v8762_v6 = vld [vmem:[#allocation13 + $0x58] ss:$20 sps:$4 sm:$0xff]   ;;  %v8788_v60 = vld [vmem:[#allocation13 + $0x23c] ss:$20 sps:$4 sm:$0xff]  }
 0x9be   :  { %v2967_v48 = vadd.f32 %v2955_v7, %v2936_v39  ;;  %v10004_v53 = vpack.c.bf16 %v2966_v41, %v2962_v44  ;;  %v8765_v7 = vld [vmem:[#allocation13 + $0x2d8] ss:$20 sps:$4 sm:$0xff]   ;;  %v8780_v23 = vld [vmem:[#allocation13 + $0x260] ss:$20 sps:$4 sm:$0xff]   ;;  %v8791_v25 = vld [vmem:[#allocation13 + $0x4bc] ss:$20 sps:$4 sm:$0xff]  }
 0x9bf   :  { %v9997_v49 = vpack.c.bf16 %v2965_v43, %v2961_v22  ;;  %v8779_v14 = vld [vmem:[#allocation13 + $0x28c] ss:$20 sps:$4 sm:$0xff]   ;;  %v8782_v19 = vld [vmem:[#allocation13 + $0x264] ss:$20 sps:$4 sm:$0xff]   ;;  %v8797_v29 = vld [vmem:[#allocation13 + $0x494] ss:$20 sps:$4 sm:$0xff]  }
 0x9c0   :  { %v9999_v45 = vpack.c.bf16 %v2967_v48, %v2963_v46  ;;  %v8783_v24 = vld [vmem:[#allocation13 + $0x4e0] ss:$20 sps:$4 sm:$0xff]   ;;  %v8786_v27 = vld [vmem:[#allocation13 + $0x238] ss:$20 sps:$4 sm:$0xff]   ;;  %v8792_v30 = vld [vmem:[#allocation13 + $0x210] ss:$20 sps:$4 sm:$0xff]  }
 0x9c1   :  { %4028 = vmatprep.mubr.bf16.mxu1 %v9997_v49  ;;  %v8789_v28 = vld [vmem:[#allocation13 + $0x4b8] ss:$20 sps:$4 sm:$0xff]   ;;  %v8795_v33 = vld [vmem:[#allocation13 + $0x490] ss:$20 sps:$4 sm:$0xff]   ;;  %v8798_v31 = vld [vmem:[#allocation13 + $0x1e8] ss:$20 sps:$4 sm:$0xff]  }
 0x9c2   :  { %4071 = vmatprep.mubr.bf16.mxu0 %v9999_v45  ;;  %4029 = vmatmul.mubr.bf16.vlgmr.msra.gmra.mxu1 %v10001_v51  ;;  %v8800_v21 = vld [vmem:[#allocation13 + $0x1ec] ss:$20 sps:$4 sm:$0xff]   ;;  %v8801_v38 = vld [vmem:[#allocation13 + $0x468] ss:$20 sps:$4 sm:$0xff]   ;;  %v8806_v39 = vld [vmem:[#allocation13 + $0x1c4] ss:$20 sps:$4 sm:$0xff]  }
 0x9c3   :  { %4072 = vmatmul.mubr.bf16.vlgmr.msra.gmra.mxu0 %v10004_v53  ;;  %4083 = vmatpush1.bf16.msra.mxu1 %v8732_v34  ;;  %v8803_v0 = vld [vmem:[#allocation13 + $0x46c] ss:$20 sps:$4 sm:$0xff]   ;;  %v8809_v41 = vld [vmem:[#allocation13 + $0x444] ss:$20 sps:$4 sm:$0xff]   ;;  %v8812_v32 = vld [vmem:[#allocation13 + $0x19c] ss:$20 sps:$4 sm:$0xff]  }
 0x9c4   :  { %4126 = vmatpush1.bf16.msra.mxu0 %v8735_v50  ;;  %4114 = vmatprep.mubr.bf16.mxu1 %v9997_v49  ;;  %v8804_v22 = vld [vmem:[#allocation13 + $0x1c0] ss:$20 sps:$4 sm:$0xff]   ;;  %v8815_v46 = vld [vmem:[#allocation13 + $0x41c] ss:$20 sps:$4 sm:$0xff]   ;;  %v8810_v48 = vld [vmem:[#allocation13 + $0x198] ss:$20 sps:$4 sm:$0xff]  }
 0x9c5   :  { %4157 = vmatprep.mubr.bf16.mxu0 %v9999_v45  ;;  %4084 = vmatprep.subr.bf16.mxu1 %v8740_v54  ;;  %v8807_v43 = vld [vmem:[#allocation13 + $0x440] ss:$20 sps:$4 sm:$0xff]   ;;  %v8813_v44 = vld [vmem:[#allocation13 + $0x418] ss:$20 sps:$4 sm:$0xff]   ;;  %v8816_v54 = vld [vmem:[#allocation13 + $0x170] ss:$20 sps:$4 sm:$0xff]  }
 0x9c6   :  { %4127 = vmatprep.subr.bf16.mxu0 %v8743_v55  ;;  %v8818_v34 = vld [vmem:[#allocation13 + $0x174] ss:$20 sps:$4 sm:$0xff]   ;;  %v8819_v55 = vld [vmem:[#allocation13 + $0x3f0] ss:$20 sps:$4 sm:$0xff]  }
 0x9c7   :  { %4085 = vmatpush1.bf16.msra.mxu1 %v8738_v56  ;;  %v8821_v50 = vld [vmem:[#allocation13 + $0x3f4] ss:$20 sps:$4 sm:$0xff]   ;;  %v8824_v56 = vld [vmem:[#allocation13 + $0x14c] ss:$20 sps:$4 sm:$0xff]  }
 0x9c8   :  { %4128 = vmatpush1.bf16.msra.mxu0 %v8741_v37  ;;  %4086 = vmatprep.subr.bf16.mxu1 %v8746_v57  ;;  %v8827_v37 = vld [vmem:[#allocation13 + $0x3cc] ss:$20 sps:$4 sm:$0xff]   ;;  %v8822_v57 = vld [vmem:[#allocation13 + $0x148] ss:$20 sps:$4 sm:$0xff]  }
 0x9c9   :  { %4129 = vmatprep.subr.bf16.mxu0 %v8749_v16  ;;  %v8825_v16 = vld [vmem:[#allocation13 + $0x3c8] ss:$20 sps:$4 sm:$0xff]  }
 0x9cb   :  { %4087 = vmatpush1.bf16.msra.mxu1 %v8744_v62  ;;  %v8828_v62 = vld [vmem:[#allocation13 + $0x268] ss:$20 sps:$4 sm:$0xff]  }
 0x9cc   :  { %4130 = vmatpush1.bf16.msra.mxu0 %v8747_v52  ;;  %4088 = vmatprep.subr.bf16.mxu1 %v8752_v58  ;;  %v8829_v52 = vld [vmem:[#allocation13 + $0x4e8] ss:$20 sps:$4 sm:$0xff]  }
 0x9cd   :  { %4131 = vmatprep.subr.bf16.mxu0 %v8755_v59  ;;  %v8830_v58 = vld [vmem:[#allocation13 + $0x128] ss:$20 sps:$4 sm:$0xff]  }
 0x9ce   :  { %v8831_v59 = vld [vmem:[#allocation13 + $0x3a8] ss:$20 sps:$4 sm:$0xff]  }
 0x9cf   :  { %4089 = vmatpush1.bf16.msra.mxu1 %v8750_v61  ;;  %v8832_v61 = vld [vmem:[#allocation13 + $0x240] ss:$20 sps:$4 sm:$0xff]  }
 0x9d0   :  { %4132 = vmatpush1.bf16.msra.mxu0 %v8753_v63  ;;  %4090 = vmatprep.subr.bf16.mxu1 %v8758_v1  ;;  %v8833_v63 = vld [vmem:[#allocation13 + $0x4c0] ss:$20 sps:$4 sm:$0xff]  }
 0x9d1   :  { %4133 = vmatprep.subr.bf16.mxu0 %v8761_v2  ;;  %v8834_v1 = vld [vmem:[#allocation13 + $0x100] ss:$20 sps:$4 sm:$0xff]  }
 0x9d2   :  { %v8835_v2 = vld [vmem:[#allocation13 + $0x380] ss:$20 sps:$4 sm:$0xff]  }
 0x9d3   :  { %4091 = vmatpush1.bf16.msra.mxu1 %v8756_v4  ;;  %v8836_v4 = vld [vmem:[#allocation13 + $0x218] ss:$20 sps:$4 sm:$0xff]  }
 0x9d4   :  { %4134 = vmatpush1.bf16.msra.mxu0 %v8759_v5  ;;  %4092 = vmatprep.subr.bf16.mxu1 %v8764_v15  ;;  %v8837_v5 = vld [vmem:[#allocation13 + $0x498] ss:$20 sps:$4 sm:$0xff]  }
 0x9d5   :  { %4135 = vmatprep.subr.bf16.mxu0 %v8767_v3  ;;  %v8838_v15 = vld [vmem:[#allocation13 + $0xd8] ss:$20 sps:$4 sm:$0xff]  }
 0x9d6   :  { %v8839_v3 = vld [vmem:[#allocation13 + $0x358] ss:$20 sps:$4 sm:$0xff]  }
 0x9d7   :  { %4093 = vmatpush1.bf16.msra.mxu1 %v8762_v6  ;;  %v8840_v6 = vld [vmem:[#allocation13 + $0x1f0] ss:$20 sps:$4 sm:$0xff]  }
 0x9d8   :  { %4136 = vmatpush1.bf16.msra.mxu0 %v8765_v7  ;;  %4094 = vmatprep.subr.bf16.mxu1 %v8770_v8  ;;  %v8841_v7 = vld [vmem:[#allocation13 + $0x470] ss:$20 sps:$4 sm:$0xff]  }
 0x9d9   :  { %4137 = vmatprep.subr.bf16.mxu0 %v8773_v10  ;;  %v8842_v8 = vld [vmem:[#allocation13 + $0xb0] ss:$20 sps:$4 sm:$0xff]   ;;  %v8844_v10 = vld [vmem:[#allocation13 + $0x1c8] ss:$20 sps:$4 sm:$0xff]  }
 0x9db   :  { %4095 = vmatpush1.bf16.msra.mxu1 %v8768_v11  ;;  %v8845_v11 = vld [vmem:[#allocation13 + $0x448] ss:$20 sps:$4 sm:$0xff]  }
 0x9dc   :  { %4138 = vmatpush1.bf16.msra.mxu0 %v8771_v12  ;;  %4096 = vmatprep.subr.bf16.mxu1 %v8776_v13  ;;  %v8847_v12 = vld [vmem:[#allocation13 + $0x308] ss:$20 sps:$4 sm:$0xff]   ;;  %v8848_v13 = vld [vmem:[#allocation13 + $0x1a0] ss:$20 sps:$4 sm:$0xff]  }
 0x9dd   :  { %4139 = vmatprep.subr.bf16.mxu0 %v8779_v14  ;;  %v8849_v14 = vld [vmem:[#allocation13 + $0x420] ss:$20 sps:$4 sm:$0xff]  }
 0x9df   :  { %4097 = vmatpush1.bf16.msra.mxu1 %v8774_v17  ;;  %v8850_v17 = vld [vmem:[#allocation13 + $0x60] ss:$20 sps:$4 sm:$0xff]  }
 0x9e0   :  { %4140 = vmatpush1.bf16.msra.mxu0 %v8777_v18  ;;  %4098 = vmatprep.subr.bf16.mxu1 %v8782_v19  ;;  %v8851_v18 = vld [vmem:[#allocation13 + $0x2e0] ss:$20 sps:$4 sm:$0xff]   ;;  %v8852_v19 = vld [vmem:[#allocation13 + $0x178] ss:$20 sps:$4 sm:$0xff]  }
 0x9e1   :  { %4141 = vmatprep.subr.bf16.mxu0 %v8785_v20  ;;  %v8853_v20 = vld [vmem:[#allocation13 + $0x3f8] ss:$20 sps:$4 sm:$0xff]  }
 0x9e3   :  { %4099 = vmatpush2.bf16.msra.mxu1 %v8780_v23  ;;  %v8854_v23 = vld [vmem:[#allocation13 + $0x38] ss:$20 sps:$4 sm:$0xff]  }
 0x9e4   :  { %4142 = vmatpush2.bf16.msra.mxu0 %v8783_v24  ;;  %4100 = vmatprep.subr.bf16.mxu1 %v8788_v60  ;;  %v8855_v24 = vld [vmem:[#allocation13 + $0x2b8] ss:$20 sps:$4 sm:$0xff]   ;;  %v8856_v60 = vld [vmem:[#allocation13 + $0x150] ss:$20 sps:$4 sm:$0xff]  }
 0x9e5   :  { %4143 = vmatprep.subr.bf16.mxu0 %v8791_v25  ;;  %v8857_v25 = vld [vmem:[#allocation13 + $0x3d0] ss:$20 sps:$4 sm:$0xff]  }
 0x9e7   :  { %4101 = vmatpush2.bf16.msra.mxu1 %v8786_v27  ;;  %v8858_v27 = vld [vmem:[#allocation13 + $0x10] ss:$20 sps:$4 sm:$0xff]  }
 0x9e8   :  { %4144 = vmatpush2.bf16.msra.mxu0 %v8789_v28  ;;  %4102 = vmatprep.subr.bf16.mxu1 %v8794_v26  ;;  %v8859_v28 = vld [vmem:[#allocation13 + $0x290] ss:$20 sps:$4 sm:$0xff]   ;;  %v9355_v26 = vld [vmem:[#allocation3 + $0x8] sm:$0xff] }
 0x9e9   :  { %4145 = vmatprep.subr.bf16.mxu0 %v8797_v29  ;;  %v10015_v29 = vcombine.high %v9355_v26, %v9355_v26 }
 0x9eb   :  { %4103 = vmatpush2.bf16.msra.mxu1 %v8792_v30  ;;  %v10017_v30 = vcombine.low %v9355_v26, %v9355_v26 }
 0x9ec   :  { %4146 = vmatpush2.bf16.msra.mxu0 %v8795_v33  ;;  %4104 = vmatprep.subr.bf16.mxu1 %v8800_v21 }
 0x9ed   :  { %4147 = vmatprep.subr.bf16.mxu0 %v8803_v0 }
 0x9ef   :  { %4105 = vmatpush2.bf16.msra.mxu1 %v8798_v31 }
 0x9f0   :  { %4148 = vmatpush2.bf16.msra.mxu0 %v8801_v38  ;;  %4106 = vmatprep.subr.bf16.mxu1 %v8806_v39 }
 0x9f1   :  { %4149 = vmatprep.subr.bf16.mxu0 %v8809_v41 }
 0x9f3   :  { %4107 = vmatpush2.bf16.msra.mxu1 %v8804_v22 }
 0x9f4   :  { %4150 = vmatpush2.bf16.msra.mxu0 %v8807_v43  ;;  %4108 = vmatprep.subr.bf16.mxu1 %v8812_v32 }
 0x9f5   :  { %4151 = vmatprep.subr.bf16.mxu0 %v8815_v46 }
 0x9f7   :  { %4109 = vmatpush2.bf16.msra.mxu1 %v8810_v48 }
 0x9f8   :  { %4152 = vmatpush2.bf16.msra.mxu0 %v8813_v44  ;;  %4110 = vmatprep.subr.bf16.mxu1 %v8818_v34 }
 0x9f9   :  { %4153 = vmatprep.subr.bf16.mxu0 %v8821_v50 }
 0x9fb   :  { %4111 = vmatpush2.bf16.msra.mxu1 %v8816_v54  ;;  %v8862_v54 = vld [vmem:[#allocation3 + $0x20] ss:$16 sps:$4 sm:$0xff]  }
 0x9fc   :  { %4154 = vmatpush2.bf16.msra.mxu0 %v8819_v55  ;;  %4112 = vmatprep.subr.bf16.mxu1 %v8824_v56  ;;  %v8863_v55 = vld [vmem:[#allocation3 + $0x4] ss:$16 sps:$4 sm:$0xff]  }
 0x9fd   :  { %4155 = vmatprep.subr.bf16.mxu0 %v8827_v37 }
 0x9ff   :  { %4113 = vmatpush2.bf16.msra.mxu1 %v8822_v57 }
 0xa00   :  { %4156 = vmatpush2.bf16.msra.mxu0 %v8825_v16  ;;  %8164 = vmatprep.subr.bf16.mxu1 %v8828_v62 }
 0xa01   :  { %8186 = vmatprep.subr.bf16.mxu0 %v8829_v52 }
 0xa02   :  { %4115 = vmatmul.mubr.bf16.vlgmr.msra.gmra.mxu1 %v10001_v51 }
 0xa03   :  { %4158 = vmatmul.mubr.bf16.vlgmr.msra.gmra.mxu0 %v10004_v53  ;;  %8165 = vmatpush3.bf16.msra.mxu1 %v8830_v58 }
 0xa04   :  { %4200 = vmatprep.mubr.bf16.mxu1 %v9997_v49  ;;  %8187 = vmatpush3.bf16.msra.mxu0 %v8831_v59  ;;  %v8843_v49 = vld [vmem:[#allocation13 + $0x330] ss:$20 sps:$4 sm:$0xff]  }
 0xa05   :  { %4241 = vmatprep.mubr.bf16.mxu0 %v9999_v45  ;;  %8166 = vmatprep.subr.bf16.mxu1 %v8832_v61  ;;  %v8846_v45 = vld [vmem:[#allocation13 + $0x88] ss:$20 sps:$4 sm:$0xff]  }
 0xa06   :  { %8188 = vmatprep.subr.bf16.mxu0 %v8833_v63 }
 0xa07   :  { %8167 = vmatpush3.bf16.msra.mxu1 %v8834_v1 }
 0xa08   :  { %8189 = vmatpush3.bf16.msra.mxu0 %v8835_v2  ;;  %8168 = vmatprep.subr.bf16.mxu1 %v8836_v4 }
 0xa09   :  { %8190 = vmatprep.subr.bf16.mxu0 %v8837_v5 }
 0xa0b   :  { %8169 = vmatpush3.bf16.msra.mxu1 %v8838_v15 }
 0xa0c   :  { %8191 = vmatpush3.bf16.msra.mxu0 %v8839_v3  ;;  %8170 = vmatprep.subr.bf16.mxu1 %v8840_v6 }
 0xa0d   :  { %8192 = vmatprep.subr.bf16.mxu0 %v8841_v7 }
 0xa0f   :  { %8171 = vmatpush3.bf16.msra.mxu1 %v8842_v8  ;;  %v8868_v8 = vld [vmem:[#allocation3 + $0x68] ss:$16 sps:$4 sm:$0xff]  }
 0xa10   :  { %8193 = vmatpush3.bf16.msra.mxu0 %v8843_v49  ;;  %8172 = vmatprep.subr.bf16.mxu1 %v8844_v10  ;;  %v8869_v49 = vld [vmem:[#allocation3 + $0x4c] ss:$16 sps:$4 sm:$0xff]  }
 0xa11   :  { %8194 = vmatprep.subr.bf16.mxu0 %v8845_v11 }
 0xa13   :  { %8173 = vmatpush3.bf16.msra.mxu1 %v8846_v45 }
 0xa14   :  { %8195 = vmatpush3.bf16.msra.mxu0 %v8847_v12  ;;  %8174 = vmatprep.subr.bf16.mxu1 %v8848_v13 }
 0xa15   :  { %8196 = vmatprep.subr.bf16.mxu0 %v8849_v14 }
 0xa17   :  { %8175 = vmatpush3.bf16.msra.mxu1 %v8850_v17 }
 0xa18   :  { %8197 = vmatpush3.bf16.msra.mxu0 %v8851_v18  ;;  %8176 = vmatprep.subr.bf16.mxu1 %v8852_v19 }
 0xa19   :  { %8198 = vmatprep.subr.bf16.mxu0 %v8853_v20 }
 0xa1b   :  { %8177 = vmatpush3.bf16.msra.mxu1 %v8854_v23 }
 0xa1c   :  { %8199 = vmatpush3.bf16.msra.mxu0 %v8855_v24  ;;  %8178 = vmatprep.subr.bf16.mxu1 %v8856_v60 }
 0xa1d   :  { %8200 = vmatprep.subr.bf16.mxu0 %v8857_v25 }
 0xa1f   :  { %8179 = vmatpush3.bf16.msra.mxu1 %v8858_v27 }
 0xa20   :  { %8201 = vmatpush3.bf16.msra.mxu0 %v8859_v28  ;;  %4703 = vmatprep.subr.bf16.mxu1 %v10015_v29 }
 0xa22   :  { %4201 = vmatmul.mubr.bf16.vlgmr.msra.gmra.mxu1 %v10001_v51 }
 0xa23   :  { %4242 = vmatmul.mubr.bf16.vlgmr.msra.gmra.mxu0 %v10004_v53  ;;  %4704 = vmatpush1.bf16.msra.mxu1 %v10017_v30 }
 0xa24   :  { %4705 = vmatprep.subr.bf16.mxu1 %v10015_v29  ;;  %4727 = vmatprep.mubr.bf16.mxu1 %v9355_v26 }
 0xa25   :  { %4770 = vmatprep.mubr.bf16.mxu0 %v9355_v26 }
 0xa27   :  { %4706 = vmatpush1.bf16.msra.mxu1 %v10017_v30 }
 0xa82   :  { %v4030_v33 = vpop.f32.mrf.mxu1 }
 0xa83   :  { %v4073_v21 = vpop.f32.mrf.mxu0 }
 0xa84   :  { %v4074_v0 = vadd.f32 %v4073_v21, %v4030_v33  ;;  %v4032_v31 = vpop.f32.mrf.mxu1 }
 0xa85   :  { %v4075_v38 = vpop.f32.mrf.mxu0 }
 0xa86   :  { %v8101_v39 = vpack.c.bf16 %v4074_v0, %v4074_v0  ;;  %v4076_v41 = vadd.f32 %v4075_v38, %v4032_v31  ;;  %v4034_v22 = vpop.f32.mrf.mxu1 }
 0xa87   :  { %v4077_v43 = vpop.f32.mrf.mxu0 }
 0xa88   :  { %4512 = vst [vmem:[#allocation3] sm:$0xf] %v8101_v39  ;;  %v8103_v51 = vpack.c.bf16 %v4076_v41, %v4076_v41  ;;  %v4078_v53 = vadd.f32 %v4077_v43, %v4034_v22  ;;  %v4036_v32 = vpop.f32.mrf.mxu1 }
 0xa89   :  { %v4079_v46 = vpop.f32.mrf.mxu0 }
 0xa8a   :  { %4531 = vst [vmem:[#allocation3 + $0x24] sm:$0xf] %v8103_v51  ;;  %v8102_v48 = vpack.c.bf16 %v4078_v53, %v4078_v53  ;;  %v4080_v44 = vadd.f32 %v4079_v46, %v4036_v32 }
 0xa8c   :  { %4513 = vst [vmem:[#allocation3 + $0x10] sm:$0xf] %v8102_v48  ;;  %v8104_v34 = vpack.c.bf16 %v4080_v44, %v4080_v44 }
 0xa8e   :  { %4532 = vst [vmem:[#allocation3 + $0x34] sm:$0xf] %v8104_v34  ;;  %v9356_v34 = vld [vmem:[#allocation7] sm:$0xff] }
 0xa93   :  { %v8865_v56 = vld [vmem:[#allocation3] ss:$16 sps:$4 sm:$0xff]  }
 0xa95   :  { %v8860_v50 = vld [vmem:[#allocation3 + $0x24] ss:$16 sps:$4 sm:$0xff]  }
 0xa96   :  { %4707 = vmatprep.subr.bf16.mxu1 %v8860_v50 }
 0xa97   :  { %4708 = vmatpush1.bf16.msra.mxu1 %v8862_v54 }
 0xa98   :  { %4709 = vmatprep.subr.bf16.mxu1 %v8863_v55 }
 0xa9b   :  { %4710 = vmatpush1.bf16.msra.mxu1 %v8865_v56 }
 0xac2   :  { %v4116_v37 = vpop.f32.mrf.mxu1 }
 0xac3   :  { %v4159_v57 = vpop.f32.mrf.mxu0 }
 0xac4   :  { %v4160_v16 = vadd.f32 %v4159_v57, %v4116_v37  ;;  %v4118_v62 = vpop.f32.mrf.mxu1 }
 0xac5   :  { %v4161_v52 = vpop.f32.mrf.mxu0 }
 0xac6   :  { %v8105_v58 = vpack.c.bf16 %v4160_v16, %v4160_v16  ;;  %v4162_v59 = vadd.f32 %v4161_v52, %v4118_v62  ;;  %v4120_v61 = vpop.f32.mrf.mxu1  ;;  %v9357_v16 = vld [vmem:[#allocation7 + $0x8] sm:$0xff] }
 0xac7   :  { %v4163_v63 = vpop.f32.mrf.mxu0 }
 0xac8   :  { %4550 = vst [vmem:[#allocation3 + $0x48] sm:$0xf] %v8105_v58  ;;  %v8107_v1 = vpack.c.bf16 %v4162_v59, %v4162_v59  ;;  %v4164_v2 = vadd.f32 %v4163_v63, %v4120_v61  ;;  %v4122_v4 = vpop.f32.mrf.mxu1 }
 0xac9   :  { %v4165_v5 = vpop.f32.mrf.mxu0 }
 0xaca   :  { %4569 = vst [vmem:[#allocation3 + $0x6c] sm:$0xf] %v8107_v1  ;;  %v8106_v15 = vpack.c.bf16 %v4164_v2, %v4164_v2  ;;  %v4166_v3 = vadd.f32 %v4165_v5, %v4122_v4 }
 0xacc   :  { %4551 = vst [vmem:[#allocation3 + $0x58] sm:$0xf] %v8106_v15  ;;  %v8108_v6 = vpack.c.bf16 %v4166_v3, %v4166_v3 }
 0xace   :  { %4570 = vst [vmem:[#allocation3 + $0x7c] sm:$0xf] %v8108_v6 }
 0xad3   :  { %v8871_v10 = vld [vmem:[#allocation3 + $0x48] ss:$16 sps:$4 sm:$0xff]  }
 0xad5   :  { %v8866_v7 = vld [vmem:[#allocation3 + $0x6c] ss:$16 sps:$4 sm:$0xff]  }
 0xad6   :  { %4746 = vmatprep.subr.bf16.mxu0 %v8866_v7 }
 0xad7   :  { %4747 = vmatpush1.bf16.msra.mxu0 %v8868_v8 }
 0xad8   :  { %4748 = vmatprep.subr.bf16.mxu0 %v8869_v49 }
 0xadb   :  { %4749 = vmatpush1.bf16.msra.mxu0 %v8871_v10 }
 0xadc   :  { %4750 = vmatprep.subr.bf16.mxu0 %v10015_v29 }
 0xadf   :  { %4751 = vmatpush1.bf16.msra.mxu0 %v10017_v30 }
 0xae0   :  { %4752 = vmatprep.subr.bf16.mxu0 %v10015_v29 }
 0xae2   :  { %v8180_v11 = vpop.f32.mrf.mxu1 }
 0xae3   :  { %v8202_v45 = vpop.f32.mrf.mxu0  ;;  %4753 = vmatpush1.bf16.msra.mxu0 %v10017_v30 }
 0xae4   :  { %v8181_v12 = vpop.f32.mrf.mxu1 }
 0xae5   :  { %v8182_v13 = vadd.f32 %v8181_v12, %v8180_v11  ;;  %v8203_v14 = vpop.f32.mrf.mxu0 }
 0xae6   :  { %v8204_v17 = vadd.f32 %v8203_v14, %v8202_v45  ;;  %v8183_v18 = vpop.f32.mrf.mxu1 }
 0xae7   :  { %v8205_v19 = vpop.f32.mrf.mxu0 }
 0xae8   :  { %v4244_v20 = vadd.f32 %v8204_v17, %v8182_v13  ;;  %v8184_v23 = vpop.f32.mrf.mxu1 }
 0xae9   :  { %v8185_v24 = vadd.f32 %v8184_v23, %v8183_v18  ;;  %v8206_v60 = vpop.f32.mrf.mxu0 }
 0xaea   :  { %v8207_v25 = vadd.f32 %v8206_v60, %v8205_v19  ;;  %4254 = vxpose.xlu0.b32.start [1/2] (short) (narrow) %v4244_v20, 16 }
 0xaec   :  { %v4247_v27 = vadd.f32 %v8207_v25, %v8185_v24 }
 0xaee   :  { %4255 = vxpose.xlu0.b32.end [2/2] (short) (narrow) %v4247_v27, 16 }
 0xb66   :  { %v4270_v28 = vpop.trf.xlu0 }
 0xb67   :  { %v4300_v26 = vrot.slane %v4270_v28, %v9787_v36  ;;  %v4311_v29 = vrot.slane %v4270_v28, %v9785_v35  ;;  %v4322_v30 = vrot.slane %v4270_v28, %v9791_v40  ;;  %v4289_v33 = vrot.slane %v4270_v28, %v9794_v42 }
 0xb69   :  { %4302 = vbcast.lane.b32.xlu1 %v4300_v26, 256 }
 0xb6a   :  { %v4271_v21 = vpop.trf.xlu0 }
 0xb6b   :  { %v4337_v0 = vrot.slane %v4271_v21, %v9797_v47 }
 0xb6d   :  { %4306 = vbcast.lane.b32.xlu1 %v4300_v26, 264  ;;  %v4338_v31 = vcombine.high %v4337_v0, %v4337_v0  ;;  %v4345_v39 = vrot.slane %v4337_v0, %v9797_v47 }
 0xb6f   :  { %v4352_v38 = vrot.slane %v4338_v31, %v9797_v47  ;;  %v4353_v51 = vcombine.high %v4345_v39, %v4345_v39  ;;  %v4358_v17 = vrot.slane %v4345_v39, %v9794_v42 }
 0xb71   :  { %4313 = vbcast.lane.b32.xlu1 %v4311_v29, 256  ;;  %v4362_v41 = vrot.slane %v4352_v38, %v9794_v42  ;;  %v4366_v48 = vrot.slane %v4353_v51, %v9794_v42  ;;  %v4354_v58 = vcombine.high %v4352_v38, %v4352_v38 }
 0xb73   :  { %v4370_v5 = vrot.slane %v4354_v58, %v9794_v42 }
 0xb75   :  { %4317 = vbcast.lane.b32.xlu1 %v4311_v29, 264 }
 0xb79   :  { %4324 = vbcast.lane.b32.xlu1 %v4322_v30, 256 }
 0xb7d   :  { %4328 = vbcast.lane.b32.xlu1 %v4322_v30, 264 }
 0xb81   :  { %4291 = vbcast.lane.b32.xlu1 %v4289_v33, 256 }
 0xb85   :  { %4295 = vbcast.lane.b32.xlu1 %v4289_v33, 264 }
 0xbdb   :  { %v4303_v22 = vpop.permute.xlu1 %4302 }
 0xbdc   :  { %v4377_v43 = vadd.f32 %v4362_v41, %v4303_v22 }
 0xbde   :  { %vm4385_vm5 = vcmp.gt.f32.partialorder %v4377_v43, 0.0  ;;  %v4393_v53 = vmul.f32 0.2, %v4377_v43 }
 0xbdf   :  { %v4307_v32 = vpop.permute.xlu1 %4306 }
 0xbe0   :  { %v4378_v46 = vadd.f32 %v4362_v41, %v4307_v32  ;;  %v4401_v44 = vsel %vm4385_vm5, %v4377_v43, %v4393_v53 }
 0xbe1   :  { %v10038_v50 = vadd.f32 %v9356_v34, %v4401_v44 }
 0xbe2   :  { %vm4386_vm6 = vcmp.gt.f32.partialorder %v4378_v46, 0.0  ;;  %v4394_v54 = vmul.f32 0.2, %v4378_v46 }
 0xbe3   :  { %v4314_v55 = vpop.permute.xlu1 %4313  ;;  %v4421_v56 = vsel %vm564_vm4, %v10038_v50, -inf }
 0xbe4   :  { %v4379_v37 = vadd.f32 %v4366_v48, %v4314_v55  ;;  %4422 = vmax.xlane.f32.xlu0 %v4421_v56  ;;  %v4402_v57 = vsel %vm4386_vm6, %v4378_v46, %v4394_v54 }
 0xbe5   :  { %v4410_v62 = vadd.f32 %v9357_v16, %v4402_v57 }
 0xbe6   :  { %vm4387_vm7 = vcmp.gt.f32.partialorder %v4379_v37, 0.0  ;;  %v4395_v52 = vmul.f32 0.2, %v4379_v37 }
 0xbe7   :  { %v4318_v59 = vpop.permute.xlu1 %4317  ;;  %v4424_v61 = vsel %vm564_vm4, %v4410_v62, -inf }
 0xbe8   :  { %v4380_v63 = vadd.f32 %v4366_v48, %v4318_v59  ;;  %4425 = vmax.xlane.f32.xlu1 %v4424_v61  ;;  %v4403_v1 = vsel %vm4387_vm7, %v4379_v37, %v4395_v52 }
 0xbe9   :  { %v4411_v2 = vadd.f32 %v9356_v34, %v4403_v1 }
 0xbea   :  { %vm4388_vm8 = vcmp.gt.f32.partialorder %v4380_v63, 0.0  ;;  %v4396_v4 = vmul.f32 0.2, %v4380_v63 }
 0xbeb   :  { %v4325_v15 = vpop.permute.xlu1 %4324  ;;  %v4427_v3 = vsel %vm564_vm4, %v4411_v2, -inf }
 0xbec   :  { %v4381_v6 = vadd.f32 %v4370_v5, %v4325_v15  ;;  %4428 = vmax.xlane.f32.xlu1 %v4427_v3  ;;  %v4404_v7 = vsel %vm4388_vm8, %v4380_v63, %v4396_v4 }
 0xbed   :  { %v4412_v8 = vadd.f32 %v9357_v16, %v4404_v7 }
 0xbee   :  { %vm4389_vm9 = vcmp.gt.f32.partialorder %v4381_v6, 0.0  ;;  %v4397_v49 = vmul.f32 0.2, %v4381_v6 }
 0xbef   :  { %v4329_v10 = vpop.permute.xlu1 %4328  ;;  %v4430_v11 = vsel %vm564_vm4, %v4412_v8, -inf }
 0xbf0   :  { %v4382_v45 = vadd.f32 %v4370_v5, %v4329_v10  ;;  %4431 = vmax.xlane.f32.xlu1 %v4430_v11  ;;  %v4405_v12 = vsel %vm4389_vm9, %v4381_v6, %v4397_v49 }
 0xbf1   :  { %v4413_v13 = vadd.f32 %v9356_v34, %v4405_v12 }
 0xbf2   :  { %vm4390_vm10 = vcmp.gt.f32.partialorder %v4382_v45, 0.0  ;;  %v4398_v14 = vmul.f32 0.2, %v4382_v45 }
 0xbf3   :  { %v4292_v18 = vpop.permute.xlu1 %4291  ;;  %v4433_v19 = vsel %vm564_vm4, %v4413_v13, -inf }
 0xbf4   :  { %v4375_v20 = vadd.f32 %v4358_v17, %v4292_v18  ;;  %4434 = vmax.xlane.f32.xlu0 %v4433_v19  ;;  %v4406_v23 = vsel %vm4390_vm10, %v4382_v45, %v4398_v14 }
 0xbf5   :  { %v4414_v24 = vadd.f32 %v9357_v16, %v4406_v23 }
 0xbf6   :  { %vm4383_vm15 = vcmp.gt.f32.partialorder %v4375_v20, 0.0  ;;  %v4391_v60 = vmul.f32 0.2, %v4375_v20 }
 0xbf7   :  { %v4296_v25 = vpop.permute.xlu1 %4295  ;;  %v4436_v27 = vsel %vm564_vm4, %v4414_v24, -inf }
 0xbf8   :  { %v4376_v28 = vadd.f32 %v4358_v17, %v4296_v25  ;;  %4437 = vmax.xlane.f32.xlu1 %v4436_v27  ;;  %v4399_v26 = vsel %vm4383_vm15, %v4375_v20, %v4391_v60 }
 0xbf9   :  { %v4407_v29 = vadd.f32 %v9356_v34, %v4399_v26 }
 0xbfa   :  { %vm4384_vm0 = vcmp.gt.f32.partialorder %v4376_v28, 0.0  ;;  %v4392_v30 = vmul.f32 0.2, %v4376_v28 }
 0xbfb   :  { %v4415_v33 = vsel %vm564_vm4, %v4407_v29, -inf }
 0xbfc   :  { %4416 = vmax.xlane.f32.xlu0 %v4415_v33  ;;  %v4400_v21 = vsel %vm4384_vm0, %v4376_v28, %v4392_v30 }
 0xbfd   :  { %v4408_v0 = vadd.f32 %v9357_v16, %v4400_v21 }
 0xbff   :  { %v4418_v31 = vsel %vm564_vm4, %v4408_v0, -inf }
 0xc00   :  { %4419 = vmax.xlane.f32.xlu1 %v4418_v31 }
 0xc6d   :  { %v4423_v38 = vpop.xlane.xlu0 %4422 }
 0xc6e   :  { %v4441_v39 = vsub.f32 %v10038_v50, %v4423_v38 }
 0xc70   :  { %v4451_v41 = vmul.f32 1.442695, %v4441_v39  ;;  %v8874_v39 = vld [vmem:[#allocation16 + $0x11c] ss:$20 sps:$4 sm:$0xff]  }
 0xc71   :  { %v4426_v22 = vpop.xlane.xlu1 %4425  ;;  %5919 = vmatprep.subr.bf16.mxu1 %v8874_v39  ;;  %v8940_v39 = vld [vmem:[#allocation16 + $0x1e4] ss:$20 sps:$4 sm:$0xff]  }
 0xc72   :  { %9248 = vpow2.f32 %v4451_v41  ;;  %v4442_v43 = vsub.f32 %v4410_v62, %v4426_v22  ;;  %v8877_v22 = vld [vmem:[#allocation16 + $0x39c] ss:$20 sps:$4 sm:$0xff]  }
 0xc73   :  { %5962 = vmatprep.subr.bf16.mxu0 %v8877_v22  ;;  %v8938_v22 = vld [vmem:[#allocation16 + $0x1e0] ss:$20 sps:$4 sm:$0xff]  }
 0xc74   :  { %v4453_v51 = vmul.f32 1.442695, %v4442_v43 }
 0xc75   :  { %v4429_v53 = vpop.xlane.xlu1 %4428 }
 0xc76   :  { %9250 = vpow2.f32 %v4453_v51  ;;  %v4443_v32 = vsub.f32 %v4411_v2, %v4429_v53 }
 0xc78   :  { %v4455_v46 = vmul.f32 1.442695, %v4443_v32 }
 0xc79   :  { %v4432_v48 = vpop.xlane.xlu1 %4431 }
 0xc7a   :  { %9252 = vpow2.f32 %v4455_v46  ;;  %v4444_v44 = vsub.f32 %v4412_v8, %v4432_v48 }
 0xc7c   :  { %v4457_v34 = vmul.f32 1.442695, %v4444_v44 }
 0xc7d   :  { %v4435_v54 = vpop.xlane.xlu0 %4434 }
 0xc7e   :  { %9254 = vpow2.f32 %v4457_v34  ;;  %v4445_v55 = vsub.f32 %v4413_v13, %v4435_v54 }
 0xc7f   :  { %v9249_v56 = vpop.eup %9248 }
 0xc80   :  { %v4459_v37 = vmul.f32 1.442695, %v4445_v55  ;;  %v4469_v50 = vsel %vm564_vm4, %v9249_v56, 0.0 }
 0xc81   :  { %v4438_v57 = vpop.xlane.xlu1 %4437  ;;  %4470 = vadd.xlane.f32.xlu0 %v4469_v50 }
 0xc82   :  { %9256 = vpow2.f32 %v4459_v37  ;;  %v4446_v16 = vsub.f32 %v4414_v24, %v4438_v57  ;;  %v8875_v57 = vld [vmem:[#allocation16 + $0x398] ss:$20 sps:$4 sm:$0xff]  }
 0xc83   :  { %v9251_v62 = vpop.eup %9250 }
 0xc84   :  { %v4461_v52 = vmul.f32 1.442695, %v4446_v16  ;;  %v4472_v58 = vsel %vm564_vm4, %v9251_v62, 0.0 }
 0xc85   :  { %4473 = vadd.xlane.f32.xlu1 %v4472_v58  ;;  %v4417_v59 = vpop.xlane.xlu0 %4416  ;;  %v8878_v58 = vld [vmem:[#allocation16 + $0xf0] ss:$20 sps:$4 sm:$0xff]  }
 0xc86   :  { %9258 = vpow2.f32 %v4461_v52  ;;  %v4439_v61 = vsub.f32 %v4407_v29, %v4417_v59  ;;  %v8883_v52 = vld [vmem:[#allocation16 + $0x374] ss:$20 sps:$4 sm:$0xff]   ;;  %v8881_v59 = vld [vmem:[#allocation16 + $0x370] ss:$20 sps:$4 sm:$0xff]  }
 0xc87   :  { %v9253_v63 = vpop.eup %9252 }
 0xc88   :  { %v4447_v1 = vmul.f32 1.442695, %v4439_v61  ;;  %v4475_v2 = vsel %vm564_vm4, %v9253_v63, 0.0  ;;  %v8886_v61 = vld [vmem:[#allocation16 + $0xcc] ss:$20 sps:$4 sm:$0xff]  }
 0xc89   :  { %v4420_v4 = vpop.xlane.xlu1 %4419  ;;  %4476 = vadd.xlane.f32.xlu0 %v4475_v2  ;;  %v8887_v2 = vld [vmem:[#allocation16 + $0x348] ss:$20 sps:$4 sm:$0xff]  }
 0xc8a   :  { %9260 = vpow2.f32 %v4447_v1  ;;  %v4440_v5 = vsub.f32 %v4408_v0, %v4420_v4  ;;  %v8884_v1 = vld [vmem:[#allocation16 + $0xc8] ss:$20 sps:$4 sm:$0xff]   ;;  %v8892_v4 = vld [vmem:[#allocation16 + $0xa4] ss:$20 sps:$4 sm:$0xff]  }
 0xc8b   :  { %v9255_v15 = vpop.eup %9254 }
 0xc8c   :  { %v4449_v3 = vmul.f32 1.442695, %v4440_v5  ;;  %v4478_v6 = vsel %vm564_vm4, %v9255_v15, 0.0  ;;  %v8895_v5 = vld [vmem:[#allocation16 + $0x324] ss:$20 sps:$4 sm:$0xff]  }
 0xc8d   :  { %4479 = vadd.xlane.f32.xlu1 %v4478_v6  ;;  %v8898_v6 = vld [vmem:[#allocation16 + $0x7c] ss:$20 sps:$4 sm:$0xff]  }
 0xc8e   :  { %9262 = vpow2.f32 %v4449_v3  ;;  %v8893_v3 = vld [vmem:[#allocation16 + $0x320] ss:$20 sps:$4 sm:$0xff]  }
 0xc8f   :  { %v9257_v7 = vpop.eup %9256 }
 0xc90   :  { %v4481_v8 = vsel %vm564_vm4, %v9257_v7, 0.0 }
 0xc91   :  { %4482 = vadd.xlane.f32.xlu0 %v4481_v8  ;;  %v8896_v8 = vld [vmem:[#allocation16 + $0x78] ss:$20 sps:$4 sm:$0xff]  }
 0xc93   :  { %v9259_v49 = vpop.eup %9258 }
 0xc94   :  { %v4484_v10 = vsel %vm564_vm4, %v9259_v49, 0.0 }
 0xc95   :  { %4485 = vadd.xlane.f32.xlu1 %v4484_v10  ;;  %v8904_v10 = vld [vmem:[#allocation16 + $0x54] ss:$20 sps:$4 sm:$0xff]  }
 0xc97   :  { %v9261_v11 = vpop.eup %9260 }
 0xc98   :  { %v4463_v45 = vsel %vm564_vm4, %v9261_v11, 0.0 }
 0xc99   :  { %4464 = vadd.xlane.f32.xlu0 %v4463_v45  ;;  %v8902_v45 = vld [vmem:[#allocation16 + $0x50] ss:$20 sps:$4 sm:$0xff]  }
 0xc9b   :  { %v9263_v12 = vpop.eup %9262 }
 0xc9c   :  { %v4466_v13 = vsel %vm564_vm4, %v9263_v12, 0.0 }
 0xc9d   :  { %4467 = vadd.xlane.f32.xlu1 %v4466_v13  ;;  %v8910_v13 = vld [vmem:[#allocation16 + $0x2c] ss:$20 sps:$4 sm:$0xff]  }
 0xd0a   :  { %v4471_v14 = vpop.xlane.xlu0 %4470 }
 0xd0b   :  { %9264 = vrcp.f32 %v4471_v14  ;;  %v8913_v14 = vld [vmem:[#allocation16 + $0x2ac] ss:$20 sps:$4 sm:$0xff]  }
 0xd0e   :  { %v4474_v17 = vpop.xlane.xlu1 %4473 }
 0xd0f   :  { %9266 = vrcp.f32 %v4474_v17  ;;  %v8908_v17 = vld [vmem:[#allocation16 + $0x28] ss:$20 sps:$4 sm:$0xff]  }
 0xd12   :  { %v4477_v18 = vpop.xlane.xlu0 %4476 }
 0xd13   :  { %9268 = vrcp.f32 %v4477_v18  ;;  %v8911_v18 = vld [vmem:[#allocation16 + $0x2a8] ss:$20 sps:$4 sm:$0xff]  }
 0xd16   :  { %v4480_v19 = vpop.xlane.xlu1 %4479 }
 0xd17   :  { %9270 = vrcp.f32 %v4480_v19  ;;  %v8916_v19 = vld [vmem:[#allocation16 + $0x4] ss:$20 sps:$4 sm:$0xff]  }
 0xd18   :  { %v9265_v20 = vpop.eup %9264 }
 0xd19   :  { %v4497_v23 = vmul.f32 %v9265_v20, %v9249_v56  ;;  %v8872_v56 = vld [vmem:[#allocation16 + $0x118] ss:$20 sps:$4 sm:$0xff]  }
 0xd1a   :  { %v4483_v24 = vpop.xlane.xlu0 %4482  ;;  %v8919_v20 = vld [vmem:[#allocation16 + $0x284] ss:$20 sps:$4 sm:$0xff]  }
 0xd1b   :  { %9272 = vrcp.f32 %v4483_v24  ;;  %4516 = vrot.lane.b32.xlu0 %v4497_v23, %s9615_s2  ;;  %v8914_v23 = vld [vmem:[#allocation16] ss:$20 sps:$4 sm:$0xff]  }
 0xd1c   :  { %v9267_v60 = vpop.eup %9266  ;;  %v8917_v24 = vld [vmem:[#allocation16 + $0x280] ss:$20 sps:$4 sm:$0xff]  }
 0xd1d   :  { %v4498_v25 = vmul.f32 %v9267_v60, %v9251_v62  ;;  %v8880_v62 = vld [vmem:[#allocation16 + $0xf4] ss:$20 sps:$4 sm:$0xff]   ;;  %v8922_v60 = vld [vmem:[#allocation16 + $0x25c] ss:$20 sps:$4 sm:$0xff]  }
 0xd1e   :  { %v4486_v27 = vpop.xlane.xlu1 %4485 }
 0xd1f   :  { %9274 = vrcp.f32 %v4486_v27  ;;  %4518 = vrot.lane.b32.xlu1 %v4498_v25, %s9615_s2  ;;  %v8925_v25 = vld [vmem:[#allocation16 + $0x4dc] ss:$20 sps:$4 sm:$0xff]   ;;  %v8920_v27 = vld [vmem:[#allocation16 + $0x258] ss:$20 sps:$4 sm:$0xff]  }
 0xd20   :  { %v9269_v28 = vpop.eup %9268 }
 0xd21   :  { %v4499_v26 = vmul.f32 %v9269_v28, %v9253_v63  ;;  %v8889_v63 = vld [vmem:[#allocation16 + $0x34c] ss:$20 sps:$4 sm:$0xff]  }
 0xd22   :  { %v4465_v29 = vpop.xlane.xlu0 %4464  ;;  %v8923_v28 = vld [vmem:[#allocation16 + $0x4d8] ss:$20 sps:$4 sm:$0xff]  }
 0xd23   :  { %9276 = vrcp.f32 %v4465_v29  ;;  %4535 = vrot.lane.b32.xlu1 %v4499_v26, %s9616_s25  ;;  %v8928_v26 = vld [vmem:[#allocation16 + $0x234] ss:$20 sps:$4 sm:$0xff]  }
 0xd24   :  { %v9271_v30 = vpop.eup %9270  ;;  %v8931_v29 = vld [vmem:[#allocation16 + $0x4b4] ss:$20 sps:$4 sm:$0xff]  }
 0xd25   :  { %v4500_v33 = vmul.f32 %v9271_v30, %v9255_v15  ;;  %v8890_v15 = vld [vmem:[#allocation16 + $0xa0] ss:$20 sps:$4 sm:$0xff]   ;;  %v8926_v30 = vld [vmem:[#allocation16 + $0x230] ss:$20 sps:$4 sm:$0xff]  }
 0xd26   :  { %v4468_v21 = vpop.xlane.xlu1 %4467 }
 0xd27   :  { %9278 = vrcp.f32 %v4468_v21  ;;  %4537 = vrot.lane.b32.xlu1 %v4500_v33, %s9616_s25  ;;  %v8929_v33 = vld [vmem:[#allocation16 + $0x4b0] ss:$20 sps:$4 sm:$0xff]   ;;  %v8934_v21 = vld [vmem:[#allocation16 + $0x20c] ss:$20 sps:$4 sm:$0xff]  }
 0xd28   :  { %v9273_v0 = vpop.eup %9272 }
 0xd29   :  { %v4501_v31 = vmul.f32 %v9273_v0, %v9257_v7  ;;  %v8901_v7 = vld [vmem:[#allocation16 + $0x2fc] ss:$20 sps:$4 sm:$0xff]   ;;  %v8937_v0 = vld [vmem:[#allocation16 + $0x48c] ss:$20 sps:$4 sm:$0xff]  }
 0xd2b   :  { %4554 = vrot.lane.b32.xlu0 %v4501_v31, %s9617_s22  ;;  %v8932_v31 = vld [vmem:[#allocation16 + $0x208] ss:$20 sps:$4 sm:$0xff]  }
 0xd2c   :  { %v9275_v38 = vpop.eup %9274 }
 0xd2d   :  { %v4502_v41 = vmul.f32 %v9275_v38, %v9259_v49  ;;  %v8899_v49 = vld [vmem:[#allocation16 + $0x2f8] ss:$20 sps:$4 sm:$0xff]   ;;  %v8935_v38 = vld [vmem:[#allocation16 + $0x488] ss:$20 sps:$4 sm:$0xff]  }
 0xd2f   :  { %4556 = vrot.lane.b32.xlu1 %v4502_v41, %s9617_s22  ;;  %v8943_v41 = vld [vmem:[#allocation16 + $0x464] ss:$20 sps:$4 sm:$0xff]  }
 0xd30   :  { %v9277_v43 = vpop.eup %9276 }
 0xd31   :  { %v4495_v51 = vmul.f32 %v9277_v43, %v9261_v11  ;;  %v8907_v11 = vld [vmem:[#allocation16 + $0x2d4] ss:$20 sps:$4 sm:$0xff]  }
 0xd32   :  { %v8941_v43 = vld [vmem:[#allocation16 + $0x460] ss:$20 sps:$4 sm:$0xff]  }
 0xd33   :  { %4503 = vst.msk [vmem:[#allocation2] sm:$0xff] %vm564_vm4, %v4495_v51  ;;  %v8946_v51 = vld [vmem:[#allocation16 + $0x1bc] ss:$20 sps:$4 sm:$0xff]  }
 0xd34   :  { %v9279_v53 = vpop.eup %9278 }
 0xd35   :  { %v4496_v32 = vmul.f32 %v9279_v53, %v9263_v12  ;;  %v8905_v12 = vld [vmem:[#allocation16 + $0x2d0] ss:$20 sps:$4 sm:$0xff]  }
 0xd36   :  { %v8949_v53 = vld [vmem:[#allocation16 + $0x43c] ss:$20 sps:$4 sm:$0xff]  }
 0xd37   :  { %4504 = vst.msk [vmem:[#allocation2 + $0x8] sm:$0xff] %vm564_vm4, %v4496_v32  ;;  %v8944_v32 = vld [vmem:[#allocation16 + $0x1b8] ss:$20 sps:$4 sm:$0xff]  }
 0xd8d   :  { %v4517_v46 = vpop.permute.xlu0 %4516 }
 0xd8e   :  { %4522 = vst.msk [vmem:[#allocation2] sm:$0xff] %vm672_vm11, %v4517_v46  ;;  %v8947_v46 = vld [vmem:[#allocation16 + $0x438] ss:$20 sps:$4 sm:$0xff]  }
 0xd91   :  { %v4519_v48 = vpop.permute.xlu1 %4518 }
 0xd92   :  { %4523 = vst.msk [vmem:[#allocation2 + $0x8] sm:$0xff] %vm672_vm11, %v4519_v48  ;;  %v8952_v48 = vld [vmem:[#allocation16 + $0x194] ss:$20 sps:$4 sm:$0xff]  }
 0xd95   :  { %v4536_v44 = vpop.permute.xlu1 %4535 }
 0xd96   :  { %4541 = vst.msk [vmem:[#allocation2] sm:$0xff] %vm692_vm12, %v4536_v44  ;;  %v8955_v44 = vld [vmem:[#allocation16 + $0x414] ss:$20 sps:$4 sm:$0xff]  }
 0xd99   :  { %v4538_v34 = vpop.permute.xlu1 %4537 }
 0xd9a   :  { %4542 = vst.msk [vmem:[#allocation2 + $0x8] sm:$0xff] %vm692_vm12, %v4538_v34  ;;  %v8950_v34 = vld [vmem:[#allocation16 + $0x190] ss:$20 sps:$4 sm:$0xff]  }
 0xd9d   :  { %v4555_v54 = vpop.permute.xlu0 %4554 }
 0xd9e   :  { %4560 = vst.msk [vmem:[#allocation2] sm:$0xff] %vm712_vm13, %v4555_v54  ;;  %v8953_v54 = vld [vmem:[#allocation16 + $0x410] ss:$20 sps:$4 sm:$0xff]  }
 0xda1   :  { %v4557_v55 = vpop.permute.xlu1 %4556 }
 0xda2   :  { %4561 = vst.msk [vmem:[#allocation2 + $0x8] sm:$0xff] %vm712_vm13, %v4557_v55  ;;  %v8958_v55 = vld [vmem:[#allocation16 + $0x16c] ss:$20 sps:$4 sm:$0xff]  }
 0xda5   :  { %v4571_v37 = vld [vmem:[#allocation2] sm:$0xff] }
 0xda9   :  { %v4572_v50 = vld [vmem:[#allocation2 + $0x8] sm:$0xff] }
 0xdaa   :  { %v4573_v16 = vpack.c.bf16 %v4572_v50, %v4571_v37  ;;  %v8956_v37 = vld [vmem:[#allocation16 + $0x168] ss:$20 sps:$4 sm:$0xff]  }
 0xdab   :  { %v8959_v50 = vld [vmem:[#allocation16 + $0x3e8] ss:$20 sps:$4 sm:$0xff]  }
 0xdac   :  { %7833 = vmatmul.mubr.msk.bf16.vlgmr.msra.gmra.mxu1 %vm845_vm14, %v4573_v16  ;;  %7834 = vmatmul.mubr.msk.bf16.vlgmr.msra.gmra.mxu0 %vm845_vm14, %v4573_v16  ;;  %v8964_v16 = vld [vmem:[#allocation16 + $0x144] ss:$20 sps:$4 sm:$0xff]  }
 0xdad   :  { %5920 = vmatpush1.bf16.msra.mxu1 %v8872_v56  ;;  %5963 = vmatpush1.bf16.msra.mxu0 %v8875_v57  ;;  %v8961_v56 = vld [vmem:[#allocation16 + $0x3ec] ss:$20 sps:$4 sm:$0xff]  }
 0xdae   :  { %5921 = vmatprep.subr.bf16.mxu1 %v8880_v62  ;;  %5964 = vmatprep.subr.bf16.mxu0 %v8883_v52  ;;  %v8962_v57 = vld [vmem:[#allocation16 + $0x140] ss:$20 sps:$4 sm:$0xff]   ;;  %v8967_v52 = vld [vmem:[#allocation16 + $0x3c4] ss:$20 sps:$4 sm:$0xff]  }
 0xdaf   :  { %v8965_v62 = vld [vmem:[#allocation16 + $0x3c0] ss:$20 sps:$4 sm:$0xff]  }
 0xdb1   :  { %5922 = vmatpush1.bf16.msra.mxu1 %v8878_v58  ;;  %5965 = vmatpush1.bf16.msra.mxu0 %v8881_v59  ;;  %v8970_v58 = vld [vmem:[#allocation16 + $0x124] ss:$20 sps:$4 sm:$0xff]  }
 0xdb2   :  { %5923 = vmatprep.subr.bf16.mxu1 %v8886_v61  ;;  %5966 = vmatprep.subr.bf16.mxu0 %v8889_v63  ;;  %v8973_v59 = vld [vmem:[#allocation16 + $0x3a4] ss:$20 sps:$4 sm:$0xff]  }
 0xdb3   :  { %v4590_v61 = vld [vmem:[#allocation15] ss:$4 sm:$0xf] }
 0xdb4   :  { %v4595_v63 = vrot.slane %v4590_v61, %v9794_v42 }
 0xdb5   :  { %5924 = vmatpush1.bf16.msra.mxu1 %v8884_v1  ;;  %5967 = vmatpush1.bf16.msra.mxu0 %v8887_v2  ;;  %v4603_v1 = vrot.slane %v4590_v61, %v9785_v35 }
 0xdb6   :  { %5925 = vmatprep.subr.bf16.mxu1 %v8892_v4  ;;  %5968 = vmatprep.subr.bf16.mxu0 %v8895_v5  ;;  %v4599_v5 = vrot.slane %v4590_v61, %v9787_v36 }
 0xdb9   :  { %5926 = vmatpush1.bf16.msra.mxu1 %v8890_v15  ;;  %5969 = vmatpush1.bf16.msra.mxu0 %v8893_v3  ;;  %v4607_v15 = vrot.slane %v4590_v61, %v9791_v40 }
 0xdba   :  { %5927 = vmatprep.subr.bf16.mxu1 %v8898_v6  ;;  %5970 = vmatprep.subr.bf16.mxu0 %v8901_v7 }
 0xdbd   :  { %5928 = vmatpush1.bf16.msra.mxu1 %v8896_v8  ;;  %5971 = vmatpush1.bf16.msra.mxu0 %v8899_v49 }
 0xdbe   :  { %5929 = vmatprep.subr.bf16.mxu1 %v8904_v10  ;;  %5972 = vmatprep.subr.bf16.mxu0 %v8907_v11 }
 0xdc1   :  { %5930 = vmatpush1.bf16.msra.mxu1 %v8902_v45  ;;  %5973 = vmatpush1.bf16.msra.mxu0 %v8905_v12 }
 0xdc2   :  { %5931 = vmatprep.subr.bf16.mxu1 %v8910_v13  ;;  %5974 = vmatprep.subr.bf16.mxu0 %v8913_v14 }
 0xdc5   :  { %5932 = vmatpush1.bf16.msra.mxu1 %v8908_v17  ;;  %5975 = vmatpush1.bf16.msra.mxu0 %v8911_v18 }
 0xdc6   :  { %5933 = vmatprep.subr.bf16.mxu1 %v8916_v19  ;;  %5976 = vmatprep.subr.bf16.mxu0 %v8919_v20 }
 0xdc9   :  { %5934 = vmatpush1.bf16.msra.mxu1 %v8914_v23  ;;  %5977 = vmatpush1.bf16.msra.mxu0 %v8917_v24 }
 0xdca   :  { %5935 = vmatprep.subr.bf16.mxu1 %v8922_v60  ;;  %5978 = vmatprep.subr.bf16.mxu0 %v8925_v25 }
 0xdcd   :  { %5936 = vmatpush2.bf16.msra.mxu1 %v8920_v27  ;;  %5979 = vmatpush2.bf16.msra.mxu0 %v8923_v28 }
 0xdce   :  { %5937 = vmatprep.subr.bf16.mxu1 %v8928_v26  ;;  %5980 = vmatprep.subr.bf16.mxu0 %v8931_v29 }
 0xdd1   :  { %5938 = vmatpush2.bf16.msra.mxu1 %v8926_v30  ;;  %5981 = vmatpush2.bf16.msra.mxu0 %v8929_v33 }
 0xdd2   :  { %5939 = vmatprep.subr.bf16.mxu1 %v8934_v21  ;;  %5982 = vmatprep.subr.bf16.mxu0 %v8937_v0 }
 0xdd5   :  { %5940 = vmatpush2.bf16.msra.mxu1 %v8932_v31  ;;  %5983 = vmatpush2.bf16.msra.mxu0 %v8935_v38 }
 0xdd6   :  { %5941 = vmatprep.subr.bf16.mxu1 %v8940_v39  ;;  %5984 = vmatprep.subr.bf16.mxu0 %v8943_v41  ;;  %v4830_v41 = vld [vmem:[#allocation15 + $0x1] ss:$4 sm:$0xf] }
 0xdd9   :  { %5942 = vmatpush2.bf16.msra.mxu1 %v8938_v22  ;;  %5985 = vmatpush2.bf16.msra.mxu0 %v8941_v43  ;;  %v4861_v22 = vld [vmem:[#allocation15 + $0x2] ss:$4 sm:$0xf] }
 0xdda   :  { %5943 = vmatprep.subr.bf16.mxu1 %v8946_v51  ;;  %5986 = vmatprep.subr.bf16.mxu0 %v8949_v53 }
 0xddd   :  { %5944 = vmatpush2.bf16.msra.mxu1 %v8944_v32  ;;  %5987 = vmatpush2.bf16.msra.mxu0 %v8947_v46  ;;  %v4835_v32 = vrot.slane %v4830_v41, %v9794_v42  ;;  %v4866_v46 = vrot.slane %v4861_v22, %v9794_v42 }
 0xdde   :  { %5945 = vmatprep.subr.bf16.mxu1 %v8952_v48  ;;  %5988 = vmatprep.subr.bf16.mxu0 %v8955_v44  ;;  %v4843_v48 = vrot.slane %v4830_v41, %v9785_v35 }
 0xde1   :  { %5946 = vmatpush2.bf16.msra.mxu1 %v8950_v34  ;;  %5989 = vmatpush2.bf16.msra.mxu0 %v8953_v54 }
 0xde2   :  { %5947 = vmatprep.subr.bf16.mxu1 %v8958_v55  ;;  %5990 = vmatprep.subr.bf16.mxu0 %v8961_v56  ;;  %v4839_v55 = vrot.slane %v4830_v41, %v9787_v36  ;;  %v4847_v56 = vrot.slane %v4830_v41, %v9791_v40  ;;  %v8974_v41 = vld [vmem:[#allocation16 + $0xf8] ss:$20 sps:$4 sm:$0xff]  }
 0xde5   :  { %5948 = vmatpush2.bf16.msra.mxu1 %v8956_v37  ;;  %5991 = vmatpush2.bf16.msra.mxu0 %v8959_v50 }
 0xde6   :  { %5949 = vmatprep.subr.bf16.mxu1 %v8964_v16  ;;  %5992 = vmatprep.subr.bf16.mxu0 %v8967_v52  ;;  %v4870_v16 = vrot.slane %v4861_v22, %v9787_v36 }
 0xde9   :  { %5950 = vmatpush2.bf16.msra.mxu1 %v8962_v57  ;;  %5993 = vmatpush2.bf16.msra.mxu0 %v8965_v62  ;;  %v4878_v62 = vrot.slane %v4861_v22, %v9791_v40 }
 0xdea   :  { %6005 = vmatprep.subr.bf16.mxu1 %v8970_v58  ;;  %6048 = vmatprep.subr.bf16.mxu0 %v8973_v59 }
 0xe6c   :  { %v4729_v2 = vpop.f32.mrf.mxu1  ;;  %v4772_v4 = vpop.f32.mrf.mxu0 }
 0xe6d   :  { %v10080_v3 = vadd.f32 %v4729_v2, %v4595_v63  ;;  %v10082_v6 = vadd.f32 %v4772_v4, %v4603_v1 }
 0xe6e   :  { %v4731_v7 = vpop.f32.mrf.mxu1  ;;  %v4774_v8 = vpop.f32.mrf.mxu0 }
 0xe6f   :  { %v4789_v49 = vmin.f32 %v10080_v3, 0.0  ;;  %v4791_v10 = vmin.f32 %v10082_v6, 0.0  ;;  %v4732_v11 = vadd.f32 %v4731_v7, %v4599_v5  ;;  %v4775_v45 = vadd.f32 %v4774_v8, %v4607_v15 }
 0xe70   :  { %v4733_v12 = vpop.f32.mrf.mxu1  ;;  %v4776_v13 = vpop.f32.mrf.mxu0  ;;  %vm4781_vm2 = vcmp.gt.f32.partialorder %v10080_v3, 0.0  ;;  %vm4783_vm3 = vcmp.gt.f32.partialorder %v10082_v6, 0.0 }
 0xe71   :  { %v4797_v14 = vmul.f32 1.442695, %v4789_v49  ;;  %v4801_v17 = vmul.f32 1.442695, %v4791_v10  ;;  %v4734_v18 = vadd.f32 %v4733_v12, %v4595_v63  ;;  %v4777_v19 = vadd.f32 %v4776_v13, %v4603_v1 }
 0xe72   :  { %v4790_v20 = vmin.f32 %v4732_v11, 0.0  ;;  %v4792_v23 = vmin.f32 %v4775_v45, 0.0  ;;  %v4735_v24 = vpop.f32.mrf.mxu1  ;;  %v4778_v60 = vpop.f32.mrf.mxu0  ;;  %vm4782_vm5 = vcmp.gt.f32.partialorder %v4732_v11, 0.0  ;;  %vm4784_vm6 = vcmp.gt.f32.partialorder %v4775_v45, 0.0 }
 0xe73   :  { %v4793_v25 = vmin.f32 %v4734_v18, 0.0  ;;  %9280 = vpow2.f32 %v4797_v14  ;;  %v4795_v26 = vmin.f32 %v4777_v19, 0.0  ;;  %v4736_v30 = vadd.f32 %v4735_v24, %v4599_v5 }
 0xe74   :  { %v4799_v27 = vmul.f32 1.442695, %v4790_v20  ;;  %v4803_v28 = vmul.f32 1.442695, %v4792_v23  ;;  %9282 = vpow2.f32 %v4801_v17  ;;  %v4779_v33 = vadd.f32 %v4778_v60, %v4607_v15 }
 0xe75   :  { %v4805_v29 = vmul.f32 1.442695, %v4793_v25  ;;  %v4809_v21 = vmul.f32 1.442695, %v4795_v26  ;;  %v4794_v0 = vmin.f32 %v4736_v30, 0.0  ;;  %vm4785_vm7 = vcmp.gt.f32.partialorder %v4734_v18, 0.0 }
 0xe76   :  { %9284 = vpow2.f32 %v4799_v27  ;;  %v4796_v31 = vmin.f32 %v4779_v33, 0.0  ;;  %vm4787_vm8 = vcmp.gt.f32.partialorder %v4777_v19, 0.0  ;;  %vm4786_vm9 = vcmp.gt.f32.partialorder %v4736_v30, 0.0 }
 0xe77   :  { %9286 = vpow2.f32 %v4803_v28  ;;  %v4807_v38 = vmul.f32 1.442695, %v4794_v0  ;;  %vm4788_vm10 = vcmp.gt.f32.partialorder %v4779_v33, 0.0 }
 0xe78   :  { %9288 = vpow2.f32 %v4805_v29  ;;  %v4811_v39 = vmul.f32 1.442695, %v4796_v31 }
 0xe79   :  { %9290 = vpow2.f32 %v4809_v21  ;;  %v8968_v21 = vld [vmem:[#allocation16 + $0x120] ss:$20 sps:$4 sm:$0xff]  }
 0xe7a   :  { %9292 = vpow2.f32 %v4807_v38  ;;  %v8976_v38 = vld [vmem:[#allocation16 + $0xfc] ss:$20 sps:$4 sm:$0xff]  }
 0xe7b   :  { %9294 = vpow2.f32 %v4811_v39  ;;  %v8979_v39 = vld [vmem:[#allocation16 + $0x37c] ss:$20 sps:$4 sm:$0xff]  }
 0xe80   :  { %v9281_v43 = vpop.eup %9280 }
 0xe81   :  { %v9283_v51 = vpop.eup %9282  ;;  %v7835_v34 = vadd.f32 -1.0, %v9281_v43  ;;  %v8982_v43 = vld [vmem:[#allocation16 + $0xd4] ss:$20 sps:$4 sm:$0xff]  }
 0xe82   :  { %v7837_v50 = vadd.f32 -1.0, %v9283_v51  ;;  %v8985_v51 = vld [vmem:[#allocation16 + $0x354] ss:$20 sps:$4 sm:$0xff]  }
 0xe83   :  { %v9285_v53 = vpop.eup %9284  ;;  %v4821_v1 = vsel %vm4781_vm2, %v10080_v3, %v7835_v34  ;;  %v4874_v3 = vrot.slane %v4861_v22, %v9785_v35  ;;  %v8977_v22 = vld [vmem:[#allocation16 + $0x378] ss:$20 sps:$4 sm:$0xff]   ;;  %v8989_v34 = vld [vmem:[#allocation16 + $0x328] ss:$20 sps:$4 sm:$0xff]  }
 0xe84   :  { %v9287_v44 = vpop.eup %9286  ;;  %v7836_v54 = vadd.f32 -1.0, %v9285_v53  ;;  %v4823_v15 = vsel %vm4783_vm3, %v10082_v6, %v7837_v50  ;;  %v8980_v53 = vld [vmem:[#allocation16 + $0xd0] ss:$20 sps:$4 sm:$0xff]  }
 0xe85   :  { %v9289_v37 = vpop.eup %9288  ;;  %v7838_v57 = vadd.f32 -1.0, %v9287_v44  ;;  %v4854_v20 = vmul.f32 %v4843_v48, %v4823_v15  ;;  %v8986_v44 = vld [vmem:[#allocation16 + $0xa8] ss:$20 sps:$4 sm:$0xff]   ;;  %v9021_v15 = vld [vmem:[#allocation16 + $0x4e4] ss:$20 sps:$4 sm:$0xff]  }
 0xe86   :  { %v9291_v52 = vpop.eup %9290  ;;  %v7839_v58 = vadd.f32 -1.0, %v9289_v37  ;;  %v4822_v59 = vsel %vm4782_vm5, %v4732_v11, %v7836_v54  ;;  %v4852_v11 = vmul.f32 %v4835_v32, %v4821_v1  ;;  %v8994_v54 = vld [vmem:[#allocation16 + $0x84] ss:$20 sps:$4 sm:$0xff]   ;;  %v8995_v37 = vld [vmem:[#allocation16 + $0x300] ss:$20 sps:$4 sm:$0xff]  }
 0xe87   :  { %v7841_v61 = vadd.f32 -1.0, %v9291_v52  ;;  %v9293_v63 = vpop.eup %9292  ;;  %v4824_v2 = vsel %vm4784_vm6, %v4775_v45, %v7838_v57  ;;  %v4853_v10 = vmul.f32 %v4839_v55, %v4822_v59  ;;  %v4885_v26 = vadd.f32 %v4874_v3, %v4854_v20  ;;  %v9000_v50 = vld [vmem:[#allocation16 + $0x5c] ss:$20 sps:$4 sm:$0xff]   ;;  %v9006_v52 = vld [vmem:[#allocation16 + $0x34] ss:$20 sps:$4 sm:$0xff]  }
 0xe88   :  { %v4825_v4 = vsel %vm4785_vm7, %v4734_v18, %v7839_v58  ;;  %v9295_v5 = vpop.eup %9294  ;;  %v7840_v49 = vadd.f32 -1.0, %v9293_v63  ;;  %v4855_v14 = vmul.f32 %v4847_v56, %v4824_v2  ;;  %v9003_v57 = vld [vmem:[#allocation16 + $0x2dc] ss:$20 sps:$4 sm:$0xff]   ;;  %v9009_v58 = vld [vmem:[#allocation16 + $0x2b4] ss:$20 sps:$4 sm:$0xff]  }
 0xe89   :  { %v4856_v7 = vmul.f32 %v4835_v32, %v4825_v4  ;;  %v4827_v8 = vsel %vm4787_vm8, %v4777_v19, %v7841_v61  ;;  %v7842_v13 = vadd.f32 -1.0, %v9295_v5  ;;  %v4884_v6 = vadd.f32 %v4870_v16, %v4853_v10  ;;  %v8983_v32 = vld [vmem:[#allocation16 + $0x350] ss:$20 sps:$4 sm:$0xff]   ;;  %v9012_v63 = vld [vmem:[#allocation16 + $0xc] ss:$20 sps:$4 sm:$0xff]  }
 0xe8a   :  { %v4858_v12 = vmul.f32 %v4843_v48, %v4827_v8  ;;  %v4826_v17 = vsel %vm4786_vm9, %v4736_v30, %v7840_v49  ;;  %v4883_v19 = vadd.f32 %v4866_v46, %v4852_v11  ;;  %v4886_v27 = vadd.f32 %v4878_v62, %v4855_v14  ;;  %v8971_v30 = vld [vmem:[#allocation16 + $0x3a0] ss:$20 sps:$4 sm:$0xff]   ;;  %v9004_v59 = vld [vmem:[#allocation16 + $0x30] ss:$20 sps:$4 sm:$0xff]   ;;  %v9010_v2 = vld [vmem:[#allocation16 + $0x8] ss:$20 sps:$4 sm:$0xff]  }
 0xe8b   :  { %v4857_v45 = vmul.f32 %v4839_v55, %v4826_v17  ;;  %v4828_v18 = vsel %vm4788_vm10, %v4779_v33, %v7842_v13  ;;  %v4887_v23 = vadd.f32 %v4866_v46, %v4856_v7  ;;  %v8988_v46 = vld [vmem:[#allocation16 + $0xac] ss:$20 sps:$4 sm:$0xff]   ;;  %v8997_v55 = vld [vmem:[#allocation16 + $0x304] ss:$20 sps:$4 sm:$0xff]   ;;  %v9013_v4 = vld [vmem:[#allocation16 + $0x288] ss:$20 sps:$4 sm:$0xff]  }
 0xe8c   :  { %v4859_v24 = vmul.f32 %v4847_v56, %v4828_v18  ;;  %v4889_v60 = vadd.f32 %v4874_v3, %v4858_v12  ;;  %v8991_v48 = vld [vmem:[#allocation16 + $0x32c] ss:$20 sps:$4 sm:$0xff]   ;;  %v9007_v61 = vld [vmem:[#allocation16 + $0x2b0] ss:$20 sps:$4 sm:$0xff]   ;;  %v9030_v11 = vld [vmem:[#allocation16 + $0x214] ss:$20 sps:$4 sm:$0xff]  }
 0xe8d   :  { %v4888_v25 = vadd.f32 %v4870_v16, %v4857_v45  ;;  %v10102_v31 = vpack.c.bf16 %v4887_v23, %v4883_v19  ;;  %v8992_v56 = vld [vmem:[#allocation16 + $0x80] ss:$20 sps:$4 sm:$0xff]   ;;  %v8998_v16 = vld [vmem:[#allocation16 + $0x58] ss:$20 sps:$4 sm:$0xff]   ;;  %v9024_v49 = vld [vmem:[#allocation16 + $0x23c] ss:$20 sps:$4 sm:$0xff]  }
 0xe8e   :  { %v4890_v28 = vadd.f32 %v4878_v62, %v4859_v24  ;;  %v10105_v33 = vpack.c.bf16 %v4889_v60, %v4885_v26  ;;  %v9001_v62 = vld [vmem:[#allocation16 + $0x2d8] ss:$20 sps:$4 sm:$0xff]   ;;  %v9016_v7 = vld [vmem:[#allocation16 + $0x260] ss:$20 sps:$4 sm:$0xff]   ;;  %v9027_v10 = vld [vmem:[#allocation16 + $0x4bc] ss:$20 sps:$4 sm:$0xff]  }
 0xe8f   :  { %v10098_v29 = vpack.c.bf16 %v4888_v25, %v4884_v6  ;;  %v9015_v1 = vld [vmem:[#allocation16 + $0x28c] ss:$20 sps:$4 sm:$0xff]   ;;  %v9018_v5 = vld [vmem:[#allocation16 + $0x264] ss:$20 sps:$4 sm:$0xff]   ;;  %v9033_v14 = vld [vmem:[#allocation16 + $0x494] ss:$20 sps:$4 sm:$0xff]  }
 0xe90   :  { %v10100_v0 = vpack.c.bf16 %v4890_v28, %v4886_v27  ;;  %v9019_v8 = vld [vmem:[#allocation16 + $0x4e0] ss:$20 sps:$4 sm:$0xff]   ;;  %v9022_v12 = vld [vmem:[#allocation16 + $0x238] ss:$20 sps:$4 sm:$0xff]   ;;  %v9028_v17 = vld [vmem:[#allocation16 + $0x210] ss:$20 sps:$4 sm:$0xff]  }
 0xe91   :  { %5951 = vmatprep.mubr.bf16.mxu1 %v10098_v29  ;;  %v9025_v13 = vld [vmem:[#allocation16 + $0x4b8] ss:$20 sps:$4 sm:$0xff]   ;;  %v9031_v20 = vld [vmem:[#allocation16 + $0x490] ss:$20 sps:$4 sm:$0xff]   ;;  %v9034_v18 = vld [vmem:[#allocation16 + $0x1e8] ss:$20 sps:$4 sm:$0xff]  }
 0xe92   :  { %5994 = vmatprep.mubr.bf16.mxu0 %v10100_v0  ;;  %5952 = vmatmul.mubr.bf16.vlgmr.msra.gmra.mxu1 %v10102_v31  ;;  %v9036_v3 = vld [vmem:[#allocation16 + $0x1ec] ss:$20 sps:$4 sm:$0xff]   ;;  %v9037_v23 = vld [vmem:[#allocation16 + $0x468] ss:$20 sps:$4 sm:$0xff]   ;;  %v9042_v24 = vld [vmem:[#allocation16 + $0x1c4] ss:$20 sps:$4 sm:$0xff]  }
 0xe93   :  { %5995 = vmatmul.mubr.bf16.vlgmr.msra.gmra.mxu0 %v10105_v33  ;;  %6006 = vmatpush1.bf16.msra.mxu1 %v8968_v21  ;;  %v9039_v45 = vld [vmem:[#allocation16 + $0x46c] ss:$20 sps:$4 sm:$0xff]   ;;  %v9045_v60 = vld [vmem:[#allocation16 + $0x444] ss:$20 sps:$4 sm:$0xff]   ;;  %v9048_v19 = vld [vmem:[#allocation16 + $0x19c] ss:$20 sps:$4 sm:$0xff]  }
 0xe94   :  { %6049 = vmatpush1.bf16.msra.mxu0 %v8971_v30  ;;  %6037 = vmatprep.mubr.bf16.mxu1 %v10098_v29  ;;  %v9040_v6 = vld [vmem:[#allocation16 + $0x1c0] ss:$20 sps:$4 sm:$0xff]   ;;  %v9051_v27 = vld [vmem:[#allocation16 + $0x41c] ss:$20 sps:$4 sm:$0xff]   ;;  %v9046_v28 = vld [vmem:[#allocation16 + $0x198] ss:$20 sps:$4 sm:$0xff]  }
 0xe95   :  { %6080 = vmatprep.mubr.bf16.mxu0 %v10100_v0  ;;  %6007 = vmatprep.subr.bf16.mxu1 %v8976_v38  ;;  %v9043_v25 = vld [vmem:[#allocation16 + $0x440] ss:$20 sps:$4 sm:$0xff]   ;;  %v9049_v26 = vld [vmem:[#allocation16 + $0x418] ss:$20 sps:$4 sm:$0xff]   ;;  %v9052_v38 = vld [vmem:[#allocation16 + $0x170] ss:$20 sps:$4 sm:$0xff]  }
 0xe96   :  { %6050 = vmatprep.subr.bf16.mxu0 %v8979_v39  ;;  %v9054_v21 = vld [vmem:[#allocation16 + $0x174] ss:$20 sps:$4 sm:$0xff]   ;;  %v9055_v39 = vld [vmem:[#allocation16 + $0x3f0] ss:$20 sps:$4 sm:$0xff]  }
 0xe97   :  { %6008 = vmatpush1.bf16.msra.mxu1 %v8974_v41  ;;  %v9057_v30 = vld [vmem:[#allocation16 + $0x3f4] ss:$20 sps:$4 sm:$0xff]   ;;  %v9060_v41 = vld [vmem:[#allocation16 + $0x14c] ss:$20 sps:$4 sm:$0xff]  }
 0xe98   :  { %6051 = vmatpush1.bf16.msra.mxu0 %v8977_v22  ;;  %6009 = vmatprep.subr.bf16.mxu1 %v8982_v43  ;;  %v9063_v22 = vld [vmem:[#allocation16 + $0x3cc] ss:$20 sps:$4 sm:$0xff]   ;;  %v9058_v43 = vld [vmem:[#allocation16 + $0x148] ss:$20 sps:$4 sm:$0xff]  }
 0xe99   :  { %6052 = vmatprep.subr.bf16.mxu0 %v8985_v51  ;;  %v9061_v51 = vld [vmem:[#allocation16 + $0x3c8] ss:$20 sps:$4 sm:$0xff]  }
 0xe9b   :  { %6010 = vmatpush1.bf16.msra.mxu1 %v8980_v53  ;;  %v9064_v53 = vld [vmem:[#allocation16 + $0x268] ss:$20 sps:$4 sm:$0xff]  }
 0xe9c   :  { %6053 = vmatpush1.bf16.msra.mxu0 %v8983_v32  ;;  %6011 = vmatprep.subr.bf16.mxu1 %v8988_v46  ;;  %v9065_v32 = vld [vmem:[#allocation16 + $0x4e8] ss:$20 sps:$4 sm:$0xff]  }
 0xe9d   :  { %6054 = vmatprep.subr.bf16.mxu0 %v8991_v48  ;;  %v9066_v46 = vld [vmem:[#allocation16 + $0x128] ss:$20 sps:$4 sm:$0xff]  }
 0xe9e   :  { %v9067_v48 = vld [vmem:[#allocation16 + $0x3a8] ss:$20 sps:$4 sm:$0xff]  }
 0xe9f   :  { %6012 = vmatpush1.bf16.msra.mxu1 %v8986_v44  ;;  %v9068_v44 = vld [vmem:[#allocation16 + $0x240] ss:$20 sps:$4 sm:$0xff]  }
 0xea0   :  { %6055 = vmatpush1.bf16.msra.mxu0 %v8989_v34  ;;  %6013 = vmatprep.subr.bf16.mxu1 %v8994_v54  ;;  %v9069_v34 = vld [vmem:[#allocation16 + $0x4c0] ss:$20 sps:$4 sm:$0xff]  }
 0xea1   :  { %6056 = vmatprep.subr.bf16.mxu0 %v8997_v55  ;;  %v9070_v54 = vld [vmem:[#allocation16 + $0x100] ss:$20 sps:$4 sm:$0xff]  }
 0xea2   :  { %v9071_v55 = vld [vmem:[#allocation16 + $0x380] ss:$20 sps:$4 sm:$0xff]  }
 0xea3   :  { %6014 = vmatpush1.bf16.msra.mxu1 %v8992_v56  ;;  %v9072_v56 = vld [vmem:[#allocation16 + $0x218] ss:$20 sps:$4 sm:$0xff]  }
 0xea4   :  { %6057 = vmatpush1.bf16.msra.mxu0 %v8995_v37  ;;  %6015 = vmatprep.subr.bf16.mxu1 %v9000_v50  ;;  %v9073_v37 = vld [vmem:[#allocation16 + $0x498] ss:$20 sps:$4 sm:$0xff]  }
 0xea5   :  { %6058 = vmatprep.subr.bf16.mxu0 %v9003_v57  ;;  %v9074_v50 = vld [vmem:[#allocation16 + $0xd8] ss:$20 sps:$4 sm:$0xff]  }
 0xea6   :  { %v9075_v57 = vld [vmem:[#allocation16 + $0x358] ss:$20 sps:$4 sm:$0xff]  }
 0xea7   :  { %6016 = vmatpush1.bf16.msra.mxu1 %v8998_v16  ;;  %v9076_v16 = vld [vmem:[#allocation16 + $0x1f0] ss:$20 sps:$4 sm:$0xff]  }
 0xea8   :  { %6059 = vmatpush1.bf16.msra.mxu0 %v9001_v62  ;;  %6017 = vmatprep.subr.bf16.mxu1 %v9006_v52  ;;  %v9077_v62 = vld [vmem:[#allocation16 + $0x470] ss:$20 sps:$4 sm:$0xff]  }
 0xea9   :  { %6060 = vmatprep.subr.bf16.mxu0 %v9009_v58  ;;  %v9078_v52 = vld [vmem:[#allocation16 + $0xb0] ss:$20 sps:$4 sm:$0xff]   ;;  %v9080_v58 = vld [vmem:[#allocation16 + $0x1c8] ss:$20 sps:$4 sm:$0xff]  }
 0xeab   :  { %6018 = vmatpush1.bf16.msra.mxu1 %v9004_v59  ;;  %v9081_v59 = vld [vmem:[#allocation16 + $0x448] ss:$20 sps:$4 sm:$0xff]  }
 0xeac   :  { %6061 = vmatpush1.bf16.msra.mxu0 %v9007_v61  ;;  %6019 = vmatprep.subr.bf16.mxu1 %v9012_v63  ;;  %v9083_v61 = vld [vmem:[#allocation16 + $0x308] ss:$20 sps:$4 sm:$0xff]   ;;  %v9084_v63 = vld [vmem:[#allocation16 + $0x1a0] ss:$20 sps:$4 sm:$0xff]  }
 0xead   :  { %6062 = vmatprep.subr.bf16.mxu0 %v9015_v1  ;;  %v9085_v1 = vld [vmem:[#allocation16 + $0x420] ss:$20 sps:$4 sm:$0xff]  }
 0xeaf   :  { %6020 = vmatpush1.bf16.msra.mxu1 %v9010_v2  ;;  %v9086_v2 = vld [vmem:[#allocation16 + $0x60] ss:$20 sps:$4 sm:$0xff]  }
 0xeb0   :  { %6063 = vmatpush1.bf16.msra.mxu0 %v9013_v4  ;;  %6021 = vmatprep.subr.bf16.mxu1 %v9018_v5  ;;  %v9087_v4 = vld [vmem:[#allocation16 + $0x2e0] ss:$20 sps:$4 sm:$0xff]   ;;  %v9088_v5 = vld [vmem:[#allocation16 + $0x178] ss:$20 sps:$4 sm:$0xff]  }
 0xeb1   :  { %6064 = vmatprep.subr.bf16.mxu0 %v9021_v15  ;;  %v9089_v15 = vld [vmem:[#allocation16 + $0x3f8] ss:$20 sps:$4 sm:$0xff]  }
 0xeb3   :  { %6022 = vmatpush2.bf16.msra.mxu1 %v9016_v7  ;;  %v9090_v7 = vld [vmem:[#allocation16 + $0x38] ss:$20 sps:$4 sm:$0xff]  }
 0xeb4   :  { %6065 = vmatpush2.bf16.msra.mxu0 %v9019_v8  ;;  %6023 = vmatprep.subr.bf16.mxu1 %v9024_v49  ;;  %v9091_v8 = vld [vmem:[#allocation16 + $0x2b8] ss:$20 sps:$4 sm:$0xff]   ;;  %v9092_v49 = vld [vmem:[#allocation16 + $0x150] ss:$20 sps:$4 sm:$0xff]  }
 0xeb5   :  { %6066 = vmatprep.subr.bf16.mxu0 %v9027_v10  ;;  %v9093_v10 = vld [vmem:[#allocation16 + $0x3d0] ss:$20 sps:$4 sm:$0xff]  }
 0xeb7   :  { %6024 = vmatpush2.bf16.msra.mxu1 %v9022_v12  ;;  %v9094_v12 = vld [vmem:[#allocation16 + $0x10] ss:$20 sps:$4 sm:$0xff]  }
 0xeb8   :  { %6067 = vmatpush2.bf16.msra.mxu0 %v9025_v13  ;;  %6025 = vmatprep.subr.bf16.mxu1 %v9030_v11  ;;  %v9095_v13 = vld [vmem:[#allocation16 + $0x290] ss:$20 sps:$4 sm:$0xff]   ;;  %v9358_v11 = vld [vmem:[#allocation3 + $0x8] sm:$0xff] }
 0xeb9   :  { %6068 = vmatprep.subr.bf16.mxu0 %v9033_v14  ;;  %v10116_v14 = vcombine.high %v9358_v11, %v9358_v11 }
 0xebb   :  { %6026 = vmatpush2.bf16.msra.mxu1 %v9028_v17  ;;  %v10118_v17 = vcombine.low %v9358_v11, %v9358_v11 }
 0xebc   :  { %6069 = vmatpush2.bf16.msra.mxu0 %v9031_v20  ;;  %6027 = vmatprep.subr.bf16.mxu1 %v9036_v3 }
 0xebd   :  { %6070 = vmatprep.subr.bf16.mxu0 %v9039_v45 }
 0xebf   :  { %6028 = vmatpush2.bf16.msra.mxu1 %v9034_v18 }
 0xec0   :  { %6071 = vmatpush2.bf16.msra.mxu0 %v9037_v23  ;;  %6029 = vmatprep.subr.bf16.mxu1 %v9042_v24 }
 0xec1   :  { %6072 = vmatprep.subr.bf16.mxu0 %v9045_v60 }
 0xec3   :  { %6030 = vmatpush2.bf16.msra.mxu1 %v9040_v6 }
 0xec4   :  { %6073 = vmatpush2.bf16.msra.mxu0 %v9043_v25  ;;  %6031 = vmatprep.subr.bf16.mxu1 %v9048_v19 }
 0xec5   :  { %6074 = vmatprep.subr.bf16.mxu0 %v9051_v27 }
 0xec7   :  { %6032 = vmatpush2.bf16.msra.mxu1 %v9046_v28 }
 0xec8   :  { %6075 = vmatpush2.bf16.msra.mxu0 %v9049_v26  ;;  %6033 = vmatprep.subr.bf16.mxu1 %v9054_v21 }
 0xec9   :  { %6076 = vmatprep.subr.bf16.mxu0 %v9057_v30  ;;  %v9096_v30 = vld [vmem:[#allocation3 + $0x20] ss:$16 sps:$4 sm:$0xff]  }
 0xecb   :  { %6034 = vmatpush2.bf16.msra.mxu1 %v9052_v38 }
 0xecc   :  { %6077 = vmatpush2.bf16.msra.mxu0 %v9055_v39  ;;  %6035 = vmatprep.subr.bf16.mxu1 %v9060_v41  ;;  %v9101_v39 = vld [vmem:[#allocation3 + $0x4] ss:$16 sps:$4 sm:$0xff]  }
 0xecd   :  { %6078 = vmatprep.subr.bf16.mxu0 %v9063_v22 }
 0xecf   :  { %6036 = vmatpush2.bf16.msra.mxu1 %v9058_v43 }
 0xed0   :  { %6079 = vmatpush2.bf16.msra.mxu0 %v9061_v51  ;;  %8208 = vmatprep.subr.bf16.mxu1 %v9064_v53 }
 0xed1   :  { %8230 = vmatprep.subr.bf16.mxu0 %v9065_v32 }
 0xed2   :  { %6038 = vmatmul.mubr.bf16.vlgmr.msra.gmra.mxu1 %v10102_v31 }
 0xed3   :  { %6081 = vmatmul.mubr.bf16.vlgmr.msra.gmra.mxu0 %v10105_v33  ;;  %8209 = vmatpush3.bf16.msra.mxu1 %v9066_v46 }
 0xed4   :  { %6123 = vmatprep.mubr.bf16.mxu1 %v10098_v29  ;;  %8231 = vmatpush3.bf16.msra.mxu0 %v9067_v48  ;;  %v9079_v29 = vld [vmem:[#allocation16 + $0x330] ss:$20 sps:$4 sm:$0xff]  }
 0xed5   :  { %6164 = vmatprep.mubr.bf16.mxu0 %v10100_v0  ;;  %8210 = vmatprep.subr.bf16.mxu1 %v9068_v44  ;;  %v9082_v0 = vld [vmem:[#allocation16 + $0x88] ss:$20 sps:$4 sm:$0xff]  }
 0xed6   :  { %8232 = vmatprep.subr.bf16.mxu0 %v9069_v34 }
 0xed7   :  { %8211 = vmatpush3.bf16.msra.mxu1 %v9070_v54 }
 0xed8   :  { %8233 = vmatpush3.bf16.msra.mxu0 %v9071_v55  ;;  %8212 = vmatprep.subr.bf16.mxu1 %v9072_v56 }
 0xed9   :  { %8234 = vmatprep.subr.bf16.mxu0 %v9073_v37 }
 0xedb   :  { %8213 = vmatpush3.bf16.msra.mxu1 %v9074_v50 }
 0xedc   :  { %8235 = vmatpush3.bf16.msra.mxu0 %v9075_v57  ;;  %8214 = vmatprep.subr.bf16.mxu1 %v9076_v16 }
 0xedd   :  { %8236 = vmatprep.subr.bf16.mxu0 %v9077_v62  ;;  %v9102_v62 = vld [vmem:[#allocation3 + $0x68] ss:$16 sps:$4 sm:$0xff]  }
 0xedf   :  { %8215 = vmatpush3.bf16.msra.mxu1 %v9078_v52 }
 0xee0   :  { %8237 = vmatpush3.bf16.msra.mxu0 %v9079_v29  ;;  %8216 = vmatprep.subr.bf16.mxu1 %v9080_v58  ;;  %v9107_v29 = vld [vmem:[#allocation3 + $0x4c] ss:$16 sps:$4 sm:$0xff]  }
 0xee1   :  { %8238 = vmatprep.subr.bf16.mxu0 %v9081_v59 }
 0xee3   :  { %8217 = vmatpush3.bf16.msra.mxu1 %v9082_v0 }
 0xee4   :  { %8239 = vmatpush3.bf16.msra.mxu0 %v9083_v61  ;;  %8218 = vmatprep.subr.bf16.mxu1 %v9084_v63 }
 0xee5   :  { %8240 = vmatprep.subr.bf16.mxu0 %v9085_v1 }
 0xee7   :  { %8219 = vmatpush3.bf16.msra.mxu1 %v9086_v2 }
 0xee8   :  { %8241 = vmatpush3.bf16.msra.mxu0 %v9087_v4  ;;  %8220 = vmatprep.subr.bf16.mxu1 %v9088_v5 }
 0xee9   :  { %8242 = vmatprep.subr.bf16.mxu0 %v9089_v15 }
 0xeeb   :  { %8221 = vmatpush3.bf16.msra.mxu1 %v9090_v7 }
 0xeec   :  { %8243 = vmatpush3.bf16.msra.mxu0 %v9091_v8  ;;  %8222 = vmatprep.subr.bf16.mxu1 %v9092_v49 }
 0xeed   :  { %8244 = vmatprep.subr.bf16.mxu0 %v9093_v10 }
 0xeef   :  { %8223 = vmatpush3.bf16.msra.mxu1 %v9094_v12 }
 0xef0   :  { %8245 = vmatpush3.bf16.msra.mxu0 %v9095_v13  ;;  %6626 = vmatprep.subr.bf16.mxu1 %v10116_v14 }
 0xef2   :  { %6124 = vmatmul.mubr.bf16.vlgmr.msra.gmra.mxu1 %v10102_v31 }
 0xef3   :  { %6165 = vmatmul.mubr.bf16.vlgmr.msra.gmra.mxu0 %v10105_v33  ;;  %6627 = vmatpush1.bf16.msra.mxu1 %v10118_v17 }
 0xef4   :  { %6628 = vmatprep.subr.bf16.mxu1 %v10116_v14  ;;  %6650 = vmatprep.mubr.bf16.mxu1 %v9358_v11 }
 0xef5   :  { %6693 = vmatprep.mubr.bf16.mxu0 %v9358_v11 }
 0xef7   :  { %6629 = vmatpush1.bf16.msra.mxu1 %v10118_v17 }
 0xf52   :  { %v5953_v20 = vpop.f32.mrf.mxu1 }
 0xf53   :  { %v5996_v3 = vpop.f32.mrf.mxu0 }
 0xf54   :  { %v5997_v45 = vadd.f32 %v5996_v3, %v5953_v20  ;;  %v5955_v18 = vpop.f32.mrf.mxu1 }
 0xf55   :  { %v5998_v23 = vpop.f32.mrf.mxu0 }
 0xf56   :  { %v8109_v24 = vpack.c.bf16 %v5997_v45, %v5997_v45  ;;  %v5999_v60 = vadd.f32 %v5998_v23, %v5955_v18  ;;  %v5957_v6 = vpop.f32.mrf.mxu1 }
 0xf57   :  { %v6000_v25 = vpop.f32.mrf.mxu0 }
 0xf58   :  { %6435 = vst [vmem:[#allocation3] sm:$0xf] %v8109_v24  ;;  %v8111_v31 = vpack.c.bf16 %v5999_v60, %v5999_v60  ;;  %v6001_v33 = vadd.f32 %v6000_v25, %v5957_v6  ;;  %v5959_v19 = vpop.f32.mrf.mxu1 }
 0xf59   :  { %v6002_v27 = vpop.f32.mrf.mxu0 }
 0xf5a   :  { %6454 = vst [vmem:[#allocation3 + $0x24] sm:$0xf] %v8111_v31  ;;  %v8110_v28 = vpack.c.bf16 %v6001_v33, %v6001_v33  ;;  %v6003_v26 = vadd.f32 %v6002_v27, %v5959_v19 }
 0xf5c   :  { %6436 = vst [vmem:[#allocation3 + $0x10] sm:$0xf] %v8110_v28  ;;  %v8112_v21 = vpack.c.bf16 %v6003_v26, %v6003_v26 }
 0xf5e   :  { %6455 = vst [vmem:[#allocation3 + $0x34] sm:$0xf] %v8112_v21  ;;  %v9359_v21 = vld [vmem:[#allocation7] sm:$0xff] }
 0xf63   :  { %v9099_v41 = vld [vmem:[#allocation3] ss:$16 sps:$4 sm:$0xff]  }
 0xf65   :  { %v9098_v38 = vld [vmem:[#allocation3 + $0x24] ss:$16 sps:$4 sm:$0xff]  }
 0xf66   :  { %6630 = vmatprep.subr.bf16.mxu1 %v9098_v38 }
 0xf67   :  { %6631 = vmatpush1.bf16.msra.mxu1 %v9096_v30 }
 0xf68   :  { %6632 = vmatprep.subr.bf16.mxu1 %v9101_v39 }
 0xf6b   :  { %6633 = vmatpush1.bf16.msra.mxu1 %v9099_v41 }
 0xf92   :  { %v6039_v22 = vpop.f32.mrf.mxu1 }
 0xf93   :  { %v6082_v43 = vpop.f32.mrf.mxu0 }
 0xf94   :  { %v6083_v51 = vadd.f32 %v6082_v43, %v6039_v22  ;;  %v6041_v53 = vpop.f32.mrf.mxu1  ;;  %v9360_v43 = vld [vmem:[#allocation7 + $0x8] sm:$0xff] }
 0xf95   :  { %v6084_v32 = vpop.f32.mrf.mxu0 }
 0xf96   :  { %v8113_v46 = vpack.c.bf16 %v6083_v51, %v6083_v51  ;;  %v6085_v48 = vadd.f32 %v6084_v32, %v6041_v53  ;;  %v6043_v44 = vpop.f32.mrf.mxu1 }
 0xf97   :  { %v6086_v34 = vpop.f32.mrf.mxu0 }
 0xf98   :  { %6473 = vst [vmem:[#allocation3 + $0x48] sm:$0xf] %v8113_v46  ;;  %v8115_v54 = vpack.c.bf16 %v6085_v48, %v6085_v48  ;;  %v6087_v55 = vadd.f32 %v6086_v34, %v6043_v44  ;;  %v6045_v56 = vpop.f32.mrf.mxu1 }
 0xf99   :  { %v6088_v37 = vpop.f32.mrf.mxu0 }
 0xf9a   :  { %6492 = vst [vmem:[#allocation3 + $0x6c] sm:$0xf] %v8115_v54  ;;  %v8114_v50 = vpack.c.bf16 %v6087_v55, %v6087_v55  ;;  %v6089_v57 = vadd.f32 %v6088_v37, %v6045_v56 }
 0xf9c   :  { %6474 = vst [vmem:[#allocation3 + $0x58] sm:$0xf] %v8114_v50  ;;  %v8116_v16 = vpack.c.bf16 %v6089_v57, %v6089_v57 }
 0xf9e   :  { %6493 = vst [vmem:[#allocation3 + $0x7c] sm:$0xf] %v8116_v16 }
 0xfa3   :  { %v9105_v58 = vld [vmem:[#allocation3 + $0x48] ss:$16 sps:$4 sm:$0xff]  }
 0xfa5   :  { %v9104_v52 = vld [vmem:[#allocation3 + $0x6c] ss:$16 sps:$4 sm:$0xff]  }
 0xfa6   :  { %6669 = vmatprep.subr.bf16.mxu0 %v9104_v52 }
 0xfa7   :  { %6670 = vmatpush1.bf16.msra.mxu0 %v9102_v62 }
 0xfa8   :  { %6671 = vmatprep.subr.bf16.mxu0 %v9107_v29 }
 0xfab   :  { %6672 = vmatpush1.bf16.msra.mxu0 %v9105_v58 }
 0xfac   :  { %6673 = vmatprep.subr.bf16.mxu0 %v10116_v14 }
 0xfaf   :  { %6674 = vmatpush1.bf16.msra.mxu0 %v10118_v17 }
 0xfb0   :  { %6675 = vmatprep.subr.bf16.mxu0 %v10116_v14 }
 0xfb2   :  { %v8224_v59 = vpop.f32.mrf.mxu1 }
 0xfb3   :  { %v8246_v0 = vpop.f32.mrf.mxu0  ;;  %6676 = vmatpush1.bf16.msra.mxu0 %v10118_v17 }
 0xfb4   :  { %v8225_v61 = vpop.f32.mrf.mxu1 }
 0xfb5   :  { %v8226_v63 = vadd.f32 %v8225_v61, %v8224_v59  ;;  %v8247_v1 = vpop.f32.mrf.mxu0 }
 0xfb6   :  { %v8248_v2 = vadd.f32 %v8247_v1, %v8246_v0  ;;  %v8227_v4 = vpop.f32.mrf.mxu1 }
 0xfb7   :  { %v8249_v5 = vpop.f32.mrf.mxu0 }
 0xfb8   :  { %v6167_v15 = vadd.f32 %v8248_v2, %v8226_v63  ;;  %v8228_v7 = vpop.f32.mrf.mxu1 }
 0xfb9   :  { %v8229_v8 = vadd.f32 %v8228_v7, %v8227_v4  ;;  %v8250_v49 = vpop.f32.mrf.mxu0 }
 0xfba   :  { %v8251_v10 = vadd.f32 %v8250_v49, %v8249_v5  ;;  %6177 = vxpose.xlu0.b32.start [1/2] (short) (narrow) %v6167_v15, 16 }
 0xfbc   :  { %v6170_v12 = vadd.f32 %v8251_v10, %v8229_v8 }
 0xfbe   :  { %6178 = vxpose.xlu0.b32.end [2/2] (short) (narrow) %v6170_v12, 16 }
0x1036   :  { %v6193_v13 = vpop.trf.xlu0 }
0x1037   :  { %v6223_v11 = vrot.slane %v6193_v13, %v9787_v36  ;;  %v6234_v14 = vrot.slane %v6193_v13, %v9785_v35  ;;  %v6245_v17 = vrot.slane %v6193_v13, %v9791_v40  ;;  %v6212_v20 = vrot.slane %v6193_v13, %v9794_v42 }
0x1039   :  { %6225 = vbcast.lane.b32.xlu1 %v6223_v11, 256 }
0x103a   :  { %v6194_v3 = vpop.trf.xlu0 }
0x103b   :  { %v6260_v45 = vrot.slane %v6194_v3, %v9797_v47 }
0x103d   :  { %6229 = vbcast.lane.b32.xlu1 %v6223_v11, 264  ;;  %v6261_v18 = vcombine.high %v6260_v45, %v6260_v45  ;;  %v6268_v24 = vrot.slane %v6260_v45, %v9797_v47 }
0x103f   :  { %v6275_v23 = vrot.slane %v6261_v18, %v9797_v47  ;;  %v6276_v31 = vcombine.high %v6268_v24, %v6268_v24  ;;  %v6281_v1 = vrot.slane %v6268_v24, %v9794_v42 }
0x1041   :  { %6236 = vbcast.lane.b32.xlu1 %v6234_v14, 256  ;;  %v6285_v60 = vrot.slane %v6275_v23, %v9794_v42  ;;  %v6289_v28 = vrot.slane %v6276_v31, %v9794_v42  ;;  %v6277_v32 = vcombine.high %v6275_v23, %v6275_v23 }
0x1043   :  { %v6293_v56 = vrot.slane %v6277_v32, %v9794_v42 }
0x1045   :  { %6240 = vbcast.lane.b32.xlu1 %v6234_v14, 264 }
0x1049   :  { %6247 = vbcast.lane.b32.xlu1 %v6245_v17, 256 }
0x104d   :  { %6251 = vbcast.lane.b32.xlu1 %v6245_v17, 264 }
0x1051   :  { %6214 = vbcast.lane.b32.xlu1 %v6212_v20, 256 }
0x1055   :  { %6218 = vbcast.lane.b32.xlu1 %v6212_v20, 264 }
0x10ab   :  { %v6226_v6 = vpop.permute.xlu1 %6225 }
0x10ac   :  { %v6300_v25 = vadd.f32 %v6285_v60, %v6226_v6 }
0x10ae   :  { %vm6308_vm15 = vcmp.gt.f32.partialorder %v6300_v25, 0.0  ;;  %v6316_v33 = vmul.f32 0.2, %v6300_v25 }
0x10af   :  { %v6230_v19 = vpop.permute.xlu1 %6229 }
0x10b0   :  { %v6301_v27 = vadd.f32 %v6285_v60, %v6230_v19  ;;  %v6324_v26 = vsel %vm6308_vm15, %v6300_v25, %v6316_v33 }
0x10b1   :  { %v10139_v30 = vadd.f32 %v9359_v21, %v6324_v26 }
0x10b2   :  { %vm6309_vm0 = vcmp.gt.f32.partialorder %v6301_v27, 0.0  ;;  %v6317_v38 = vmul.f32 0.2, %v6301_v27 }
0x10b3   :  { %v6237_v39 = vpop.permute.xlu1 %6236  ;;  %v6344_v47 = vsel %vm564_vm4, %v10139_v30, -inf }
0x10b4   :  { %v6302_v41 = vadd.f32 %v6289_v28, %v6237_v39  ;;  %6345 = vmax.xlane.f32.xlu0 %v6344_v47  ;;  %v6325_v22 = vsel %vm6309_vm0, %v6301_v27, %v6317_v38 }
0x10b5   :  { %v6333_v51 = vadd.f32 %v9360_v43, %v6325_v22 }
0x10b6   :  { %vm6310_vm2 = vcmp.gt.f32.partialorder %v6302_v41, 0.0  ;;  %v6318_v53 = vmul.f32 0.2, %v6302_v41 }
0x10b7   :  { %v6241_v46 = vpop.permute.xlu1 %6240  ;;  %v6347_v48 = vsel %vm564_vm4, %v6333_v51, -inf }
0x10b8   :  { %v6303_v44 = vadd.f32 %v6289_v28, %v6241_v46  ;;  %6348 = vmax.xlane.f32.xlu1 %v6347_v48  ;;  %v6326_v34 = vsel %vm6310_vm2, %v6302_v41, %v6318_v53 }
0x10b9   :  { %v6334_v54 = vadd.f32 %v9359_v21, %v6326_v34 }
0x10ba   :  { %vm6311_vm3 = vcmp.gt.f32.partialorder %v6303_v44, 0.0  ;;  %v6319_v55 = vmul.f32 0.2, %v6303_v44 }
0x10bb   :  { %v6248_v37 = vpop.permute.xlu1 %6247  ;;  %v6350_v50 = vsel %vm564_vm4, %v6334_v54, -inf }
0x10bc   :  { %v6304_v57 = vadd.f32 %v6293_v56, %v6248_v37  ;;  %6351 = vmax.xlane.f32.xlu1 %v6350_v50  ;;  %v6327_v16 = vsel %vm6311_vm3, %v6303_v44, %v6319_v55 }
0x10bd   :  { %v6335_v62 = vadd.f32 %v9360_v43, %v6327_v16 }
0x10be   :  { %vm6312_vm5 = vcmp.gt.f32.partialorder %v6304_v57, 0.0  ;;  %v6320_v52 = vmul.f32 0.2, %v6304_v57 }
0x10bf   :  { %v6252_v29 = vpop.permute.xlu1 %6251  ;;  %v6353_v58 = vsel %vm564_vm4, %v6335_v62, -inf }
0x10c0   :  { %v6305_v59 = vadd.f32 %v6293_v56, %v6252_v29  ;;  %6354 = vmax.xlane.f32.xlu1 %v6353_v58  ;;  %v6328_v0 = vsel %vm6312_vm5, %v6304_v57, %v6320_v52 }
0x10c1   :  { %v6336_v61 = vadd.f32 %v9359_v21, %v6328_v0 }
0x10c2   :  { %vm6313_vm6 = vcmp.gt.f32.partialorder %v6305_v59, 0.0  ;;  %v6321_v63 = vmul.f32 0.2, %v6305_v59 }
0x10c3   :  { %v6215_v2 = vpop.permute.xlu1 %6214  ;;  %v6356_v4 = vsel %vm564_vm4, %v6336_v61, -inf }
0x10c4   :  { %v6298_v5 = vadd.f32 %v6281_v1, %v6215_v2  ;;  %6357 = vmax.xlane.f32.xlu0 %v6356_v4  ;;  %v6329_v15 = vsel %vm6313_vm6, %v6305_v59, %v6321_v63 }
0x10c5   :  { %v6337_v7 = vadd.f32 %v9360_v43, %v6329_v15 }
0x10c6   :  { %vm6306_vm7 = vcmp.gt.f32.partialorder %v6298_v5, 0.0  ;;  %v6314_v8 = vmul.f32 0.2, %v6298_v5 }
0x10c7   :  { %v6219_v49 = vpop.permute.xlu1 %6218  ;;  %v6359_v10 = vsel %vm564_vm4, %v6337_v7, -inf }
0x10c8   :  { %v6299_v12 = vadd.f32 %v6281_v1, %v6219_v49  ;;  %6360 = vmax.xlane.f32.xlu1 %v6359_v10  ;;  %v6322_v13 = vsel %vm6306_vm7, %v6298_v5, %v6314_v8 }
0x10c9   :  { %v6330_v11 = vadd.f32 %v9359_v21, %v6322_v13 }
0x10ca   :  { %vm6307_vm8 = vcmp.gt.f32.partialorder %v6299_v12, 0.0  ;;  %v6315_v14 = vmul.f32 0.2, %v6299_v12 }
0x10cb   :  { %v6338_v17 = vsel %vm564_vm4, %v6330_v11, -inf }
0x10cc   :  { %6339 = vmax.xlane.f32.xlu0 %v6338_v17  ;;  %v6323_v20 = vsel %vm6307_vm8, %v6299_v12, %v6315_v14 }
0x10cd   :  { %v6331_v3 = vadd.f32 %v9360_v43, %v6323_v20 }
0x10cf   :  { %v6341_v45 = vsel %vm564_vm4, %v6331_v3, -inf }
0x10d0   :  { %6342 = vmax.xlane.f32.xlu1 %v6341_v45 }
0x113d   :  { %v6346_v18 = vpop.xlane.xlu0 %6345 }
0x113e   :  { %v6364_v23 = vsub.f32 %v10139_v30, %v6346_v18 }
0x1140   :  { %v6374_v24 = vmul.f32 1.442695, %v6364_v23 }
0x1141   :  { %v6349_v60 = vpop.xlane.xlu1 %6348 }
0x1142   :  { %9296 = vpow2.f32 %v6374_v24  ;;  %v6365_v6 = vsub.f32 %v6333_v51, %v6349_v60 }
0x1144   :  { %v6376_v25 = vmul.f32 1.442695, %v6365_v6 }
0x1145   :  { %v6352_v31 = vpop.xlane.xlu1 %6351 }
0x1146   :  { %9298 = vpow2.f32 %v6376_v25  ;;  %v6366_v33 = vsub.f32 %v6334_v54, %v6352_v31 }
0x1148   :  { %v6378_v19 = vmul.f32 1.442695, %v6366_v33 }
0x1149   :  { %v6355_v27 = vpop.xlane.xlu1 %6354 }
0x114a   :  { %9300 = vpow2.f32 %v6378_v19  ;;  %v6367_v28 = vsub.f32 %v6335_v62, %v6355_v27 }
0x114c   :  { %v6380_v26 = vmul.f32 1.442695, %v6367_v28 }
0x114d   :  { %v6358_v21 = vpop.xlane.xlu0 %6357 }
0x114e   :  { %9302 = vpow2.f32 %v6380_v26  ;;  %v6368_v38 = vsub.f32 %v6336_v61, %v6358_v21 }
0x114f   :  { %v9297_v39 = vpop.eup %9296 }
0x1150   :  { %v6382_v47 = vmul.f32 1.442695, %v6368_v38  ;;  %v6392_v30 = vsel %vm564_vm4, %v9297_v39, 0.0 }
0x1151   :  { %v6361_v41 = vpop.xlane.xlu1 %6360  ;;  %6393 = vadd.xlane.f32.xlu0 %v6392_v30  ;;  %v9110_v30 = vld [vmem:[#allocation19 + $0x38] sm:$0xff]  }
0x1152   :  { %9304 = vpow2.f32 %v6382_v47  ;;  %v6369_v22 = vsub.f32 %v6337_v7, %v6361_v41  ;;  %v9109_v47 = vld [vmem:[#allocation19 + $0xf8] sm:$0xff]  }
0x1153   :  { %v9299_v43 = vpop.eup %9298  ;;  %8274 = vmatprep.subr.bf16.mxu0 %v9109_v47  ;;  %v9111_v41 = vld [vmem:[#allocation19 + $0xb8] sm:$0xff]  }
0x1154   :  { %v6384_v51 = vmul.f32 1.442695, %v6369_v22  ;;  %v6395_v53 = vsel %vm564_vm4, %v9299_v43, 0.0  ;;  %v9112_v22 = vld [vmem:[#allocation19 + $0x70] sm:$0xff]  }
0x1155   :  { %6396 = vadd.xlane.f32.xlu1 %v6395_v53  ;;  %v6340_v32 = vpop.xlane.xlu0 %6339  ;;  %v9115_v53 = vld [vmem:[#allocation19 + $0xb0] sm:$0xff]  }
0x1156   :  { %9306 = vpow2.f32 %v6384_v51  ;;  %v6362_v46 = vsub.f32 %v6330_v11, %v6340_v32  ;;  %v9114_v51 = vld [vmem:[#allocation19 + $0x30] sm:$0xff]   ;;  %v9116_v32 = vld [vmem:[#allocation19 + $0x68] sm:$0xff]  }
0x1157   :  { %v9301_v48 = vpop.eup %9300 }
0x1158   :  { %v6370_v44 = vmul.f32 1.442695, %v6362_v46  ;;  %v6398_v34 = vsel %vm564_vm4, %v9301_v48, 0.0  ;;  %v9117_v46 = vld [vmem:[#allocation19 + $0xe8] sm:$0xff]  }
0x1159   :  { %v6343_v54 = vpop.xlane.xlu1 %6342  ;;  %6399 = vadd.xlane.f32.xlu0 %v6398_v34  ;;  %v9120_v34 = vld [vmem:[#allocation19 + $0x60] sm:$0xff]  }
0x115a   :  { %9308 = vpow2.f32 %v6370_v44  ;;  %v6363_v55 = vsub.f32 %v6331_v3, %v6343_v54  ;;  %v9119_v44 = vld [vmem:[#allocation19 + $0xa8] sm:$0xff]   ;;  %v9121_v54 = vld [vmem:[#allocation19 + $0xe0] sm:$0xff]  }
0x115b   :  { %v9303_v56 = vpop.eup %9302 }
0x115c   :  { %v6372_v37 = vmul.f32 1.442695, %v6363_v55  ;;  %v6401_v50 = vsel %vm564_vm4, %v9303_v56, 0.0  ;;  %v9122_v55 = vld [vmem:[#allocation19 + $0x20] sm:$0xff]  }
0x115d   :  { %6402 = vadd.xlane.f32.xlu1 %v6401_v50  ;;  %v9125_v50 = vld [vmem:[#allocation19 + $0xd8] sm:$0xff]  }
0x115e   :  { %9310 = vpow2.f32 %v6372_v37  ;;  %v9124_v37 = vld [vmem:[#allocation19 + $0x58] sm:$0xff]  }
0x115f   :  { %v9305_v57 = vpop.eup %9304 }
0x1160   :  { %v6404_v16 = vsel %vm564_vm4, %v9305_v57, 0.0 }
0x1161   :  { %6405 = vadd.xlane.f32.xlu0 %v6404_v16  ;;  %v9127_v16 = vld [vmem:[#allocation19 + $0x98] sm:$0xff]  }
0x1163   :  { %v9307_v62 = vpop.eup %9306 }
0x1164   :  { %v6407_v52 = vsel %vm564_vm4, %v9307_v62, 0.0 }
0x1165   :  { %6408 = vadd.xlane.f32.xlu1 %v6407_v52  ;;  %v9129_v52 = vld [vmem:[#allocation19 + $0xd0] sm:$0xff]  }
0x1167   :  { %v9309_v29 = vpop.eup %9308 }
0x1168   :  { %v6386_v58 = vsel %vm564_vm4, %v9309_v29, 0.0 }
0x1169   :  { %6387 = vadd.xlane.f32.xlu0 %v6386_v58  ;;  %v9131_v58 = vld [vmem:[#allocation19 + $0x90] sm:$0xff]  }
0x116b   :  { %v9311_v59 = vpop.eup %9310 }
0x116c   :  { %v6389_v0 = vsel %vm564_vm4, %v9311_v59, 0.0 }
0x116d   :  { %6390 = vadd.xlane.f32.xlu1 %v6389_v0  ;;  %v9133_v0 = vld [vmem:[#allocation19 + $0xc8] sm:$0xff]  }
0x11da   :  { %v6394_v61 = vpop.xlane.xlu0 %6393 }
0x11db   :  { %9312 = vrcp.f32 %v6394_v61  ;;  %v9134_v61 = vld [vmem:[#allocation19 + $0x8] sm:$0xff]  }
0x11de   :  { %v6397_v63 = vpop.xlane.xlu1 %6396 }
0x11df   :  { %9314 = vrcp.f32 %v6397_v63  ;;  %v9135_v63 = vld [vmem:[#allocation19 + $0x88] sm:$0xff]  }
0x11e2   :  { %v6400_v1 = vpop.xlane.xlu0 %6399 }
0x11e3   :  { %9316 = vrcp.f32 %v6400_v1  ;;  %v9136_v1 = vld [vmem:[#allocation19 + $0x40] sm:$0xff]  }
0x11e6   :  { %v6403_v2 = vpop.xlane.xlu1 %6402 }
0x11e7   :  { %9318 = vrcp.f32 %v6403_v2  ;;  %v9137_v2 = vld [vmem:[#allocation19 + $0xc0] sm:$0xff]  }
0x11e8   :  { %v9313_v4 = vpop.eup %9312 }
0x11e9   :  { %v6420_v5 = vmul.f32 %v9313_v4, %v9297_v39  ;;  %v9108_v39 = vld [vmem:[#allocation19 + $0x78] sm:$0xff]   ;;  %v9138_v4 = vld [vmem:[#allocation19] sm:$0xff]  }
0x11ea   :  { %v6406_v15 = vpop.xlane.xlu0 %6405  ;;  %8252 = vmatprep.subr.bf16.mxu1 %v9108_v39 }
0x11eb   :  { %9320 = vrcp.f32 %v6406_v15  ;;  %6439 = vrot.lane.b32.xlu0 %v6420_v5, %s9615_s2  ;;  %v9139_v5 = vld [vmem:[#allocation19 + $0x80] sm:$0xff]   ;;  %v6513_v15 = vld [vmem:[#allocation18] ss:$4 sm:$0xf] }
0x11ec   :  { %v9315_v7 = vpop.eup %9314 }
0x11ed   :  { %v6421_v8 = vmul.f32 %v9315_v7, %v9299_v43  ;;  %v9113_v43 = vld [vmem:[#allocation19 + $0xf0] sm:$0xff]   ;;  %v6518_v7 = vrot.slane %v6513_v15, %v9794_v42 }
0x11ee   :  { %v6409_v49 = vpop.xlane.xlu1 %6408 }
0x11ef   :  { %9322 = vrcp.f32 %v6409_v49  ;;  %6441 = vrot.lane.b32.xlu1 %v6421_v8, %s9615_s2  ;;  %v6526_v8 = vrot.slane %v6513_v15, %v9785_v35 }
0x11f0   :  { %v9317_v10 = vpop.eup %9316 }
0x11f1   :  { %v6422_v12 = vmul.f32 %v9317_v10, %v9301_v48  ;;  %v9118_v48 = vld [vmem:[#allocation19 + $0x28] sm:$0xff]  }
0x11f2   :  { %v6388_v13 = vpop.xlane.xlu0 %6387 }
0x11f3   :  { %9324 = vrcp.f32 %v6388_v13  ;;  %6458 = vrot.lane.b32.xlu1 %v6422_v12, %s9616_s25  ;;  %v6522_v12 = vrot.slane %v6513_v15, %v9787_v36  ;;  %v6530_v13 = vrot.slane %v6513_v15, %v9791_v40 }
0x11f4   :  { %v9319_v11 = vpop.eup %9318 }
0x11f5   :  { %v6423_v14 = vmul.f32 %v9319_v11, %v9303_v56  ;;  %v9123_v56 = vld [vmem:[#allocation19 + $0xa0] sm:$0xff]  }
0x11f6   :  { %v6391_v17 = vpop.xlane.xlu1 %6390 }
0x11f7   :  { %9326 = vrcp.f32 %v6391_v17  ;;  %6460 = vrot.lane.b32.xlu1 %v6423_v14, %s9616_s25 }
0x11f8   :  { %v9321_v20 = vpop.eup %9320 }
0x11f9   :  { %v6424_v3 = vmul.f32 %v9321_v20, %v9305_v57  ;;  %v9126_v57 = vld [vmem:[#allocation19 + $0x18] sm:$0xff]  }
0x11fb   :  { %6477 = vrot.lane.b32.xlu0 %v6424_v3, %s9617_s22 }
0x11fc   :  { %v9323_v45 = vpop.eup %9322 }
0x11fd   :  { %v6425_v18 = vmul.f32 %v9323_v45, %v9307_v62  ;;  %v9128_v62 = vld [vmem:[#allocation19 + $0x50] sm:$0xff]  }
0x11ff   :  { %6479 = vrot.lane.b32.xlu1 %v6425_v18, %s9617_s22 }
0x1200   :  { %v9325_v23 = vpop.eup %9324 }
0x1201   :  { %v6418_v24 = vmul.f32 %v9325_v23, %v9309_v29  ;;  %v9130_v29 = vld [vmem:[#allocation19 + $0x10] sm:$0xff]  }
0x1203   :  { %6426 = vst.msk [vmem:[#allocation2] sm:$0xff] %vm564_vm4, %v6418_v24 }
0x1204   :  { %v9327_v60 = vpop.eup %9326 }
0x1205   :  { %v6419_v6 = vmul.f32 %v9327_v60, %v9311_v59  ;;  %v9132_v59 = vld [vmem:[#allocation19 + $0x48] sm:$0xff]  }
0x1207   :  { %6427 = vst.msk [vmem:[#allocation2 + $0x8] sm:$0xff] %vm564_vm4, %v6419_v6 }
0x125d   :  { %v6440_v25 = vpop.permute.xlu0 %6439 }
0x125e   :  { %6445 = vst.msk [vmem:[#allocation2] sm:$0xff] %vm672_vm11, %v6440_v25 }
0x1261   :  { %v6442_v31 = vpop.permute.xlu1 %6441 }
0x1262   :  { %6446 = vst.msk [vmem:[#allocation2 + $0x8] sm:$0xff] %vm672_vm11, %v6442_v31 }
0x1265   :  { %v6459_v33 = vpop.permute.xlu1 %6458 }
0x1266   :  { %6464 = vst.msk [vmem:[#allocation2] sm:$0xff] %vm692_vm12, %v6459_v33 }
0x1269   :  { %v6461_v19 = vpop.permute.xlu1 %6460 }
0x126a   :  { %6465 = vst.msk [vmem:[#allocation2 + $0x8] sm:$0xff] %vm692_vm12, %v6461_v19 }
0x126d   :  { %v6478_v27 = vpop.permute.xlu0 %6477 }
0x126e   :  { %6483 = vst.msk [vmem:[#allocation2] sm:$0xff] %vm712_vm13, %v6478_v27 }
0x1271   :  { %v6480_v28 = vpop.permute.xlu1 %6479 }
0x1272   :  { %6484 = vst.msk [vmem:[#allocation2 + $0x8] sm:$0xff] %vm712_vm13, %v6480_v28 }
0x1275   :  { %v6494_v26 = vld [vmem:[#allocation2] sm:$0xff] }
0x1279   :  { %v6495_v21 = vld [vmem:[#allocation2 + $0x8] sm:$0xff] }
0x127a   :  { %v6496_v38 = vpack.c.bf16 %v6495_v21, %v6494_v26 }
0x127c   :  { %8027 = vmatmul.mubr.msk.bf16.vlgmr.msra.gmra.mxu1 %vm845_vm14, %v6496_v38  ;;  %8028 = vmatmul.mubr.msk.bf16.vlgmr.msra.gmra.mxu0 %vm845_vm14, %v6496_v38 }
0x127d   :  { %8253 = vmatpush3.bf16.msra.mxu1 %v9110_v30  ;;  %8275 = vmatpush3.bf16.msra.mxu0 %v9111_v41 }
0x127e   :  { %8254 = vmatprep.subr.bf16.mxu1 %v9112_v22  ;;  %8276 = vmatprep.subr.bf16.mxu0 %v9113_v43 }
0x1281   :  { %8255 = vmatpush3.bf16.msra.mxu1 %v9114_v51  ;;  %8277 = vmatpush3.bf16.msra.mxu0 %v9115_v53 }
0x1282   :  { %8256 = vmatprep.subr.bf16.mxu1 %v9116_v32  ;;  %8278 = vmatprep.subr.bf16.mxu0 %v9117_v46 }
0x1285   :  { %8257 = vmatpush3.bf16.msra.mxu1 %v9118_v48  ;;  %8279 = vmatpush3.bf16.msra.mxu0 %v9119_v44  ;;  %v6753_v48 = vld [vmem:[#allocation18 + $0x1] ss:$4 sm:$0xf]  ;;  %v6784_v44 = vld [vmem:[#allocation18 + $0x2] ss:$4 sm:$0xf] }
0x1286   :  { %8258 = vmatprep.subr.bf16.mxu1 %v9120_v34  ;;  %8280 = vmatprep.subr.bf16.mxu0 %v9121_v54 }
0x1289   :  { %8259 = vmatpush3.bf16.msra.mxu1 %v9122_v55  ;;  %8281 = vmatpush3.bf16.msra.mxu0 %v9123_v56  ;;  %v6758_v56 = vrot.slane %v6753_v48, %v9794_v42 }
0x128a   :  { %8260 = vmatprep.subr.bf16.mxu1 %v9124_v37  ;;  %8282 = vmatprep.subr.bf16.mxu0 %v9125_v50  ;;  %v6789_v37 = vrot.slane %v6784_v44, %v9794_v42  ;;  %v6766_v50 = vrot.slane %v6753_v48, %v9785_v35 }
0x128d   :  { %8261 = vmatpush3.bf16.msra.mxu1 %v9126_v57  ;;  %8283 = vmatpush3.bf16.msra.mxu0 %v9127_v16 }
0x128e   :  { %8262 = vmatprep.subr.bf16.mxu1 %v9128_v62  ;;  %8284 = vmatprep.subr.bf16.mxu0 %v9129_v52  ;;  %v6762_v52 = vrot.slane %v6753_v48, %v9787_v36 }
0x1291   :  { %8263 = vmatpush3.bf16.msra.mxu1 %v9130_v29  ;;  %8285 = vmatpush3.bf16.msra.mxu0 %v9131_v58  ;;  %v6770_v29 = vrot.slane %v6753_v48, %v9791_v40 }
0x1292   :  { %8264 = vmatprep.subr.bf16.mxu1 %v9132_v59  ;;  %8286 = vmatprep.subr.bf16.mxu0 %v9133_v0 }
0x1295   :  { %8265 = vmatpush3.bf16.msra.mxu1 %v9134_v61  ;;  %8287 = vmatpush3.bf16.msra.mxu0 %v9135_v63  ;;  %v6793_v61 = vrot.slane %v6784_v44, %v9787_v36  ;;  %v6801_v63 = vrot.slane %v6784_v44, %v9791_v40 }
0x1296   :  { %8266 = vmatprep.subr.bf16.mxu1 %v9136_v1  ;;  %8288 = vmatprep.subr.bf16.mxu0 %v9137_v2 }
0x1299   :  { %8267 = vmatpush3.bf16.msra.mxu1 %v9138_v4  ;;  %8289 = vmatpush3.bf16.msra.mxu0 %v9139_v5 }
0x129a   :  { %8318 = vmatprep.subr.bf16.mxu1 %v9612_v9  ;;  %8338 = vmatprep.subr.bf16.mxu0 %v9612_v9 }
0x133c   :  { %v6652_v49 = vpop.f32.mrf.mxu1  ;;  %v6695_v10 = vpop.f32.mrf.mxu0 }
0x133d   :  { %v10183_v11 = vadd.f32 %v6652_v49, %v6518_v7  ;;  %v10185_v14 = vadd.f32 %v6695_v10, %v6526_v8 }
0x133e   :  { %v6654_v17 = vpop.f32.mrf.mxu1  ;;  %v6697_v20 = vpop.f32.mrf.mxu0 }
0x133f   :  { %v6712_v3 = vmin.f32 %v10183_v11, 0.0  ;;  %v6714_v45 = vmin.f32 %v10185_v14, 0.0  ;;  %v6655_v18 = vadd.f32 %v6654_v17, %v6522_v12  ;;  %v6698_v23 = vadd.f32 %v6697_v20, %v6530_v13 }
0x1340   :  { %v6656_v24 = vpop.f32.mrf.mxu1  ;;  %v6699_v60 = vpop.f32.mrf.mxu0  ;;  %vm6704_vm4 = vcmp.gt.f32.partialorder %v10183_v11, 0.0  ;;  %vm6706_vm11 = vcmp.gt.f32.partialorder %v10185_v14, 0.0 }
0x1341   :  { %v6720_v6 = vmul.f32 1.442695, %v6712_v3  ;;  %v6724_v25 = vmul.f32 1.442695, %v6714_v45  ;;  %v6657_v31 = vadd.f32 %v6656_v24, %v6518_v7  ;;  %v6700_v33 = vadd.f32 %v6699_v60, %v6526_v8 }
0x1342   :  { %v6713_v19 = vmin.f32 %v6655_v18, 0.0  ;;  %v6715_v27 = vmin.f32 %v6698_v23, 0.0  ;;  %v6658_v28 = vpop.f32.mrf.mxu1  ;;  %v6701_v26 = vpop.f32.mrf.mxu0  ;;  %vm6705_vm12 = vcmp.gt.f32.partialorder %v6655_v18, 0.0  ;;  %vm6707_vm13 = vcmp.gt.f32.partialorder %v6698_v23, 0.0 }
0x1343   :  { %v6716_v21 = vmin.f32 %v6657_v31, 0.0  ;;  %9328 = vpow2.f32 %v6720_v6  ;;  %v6718_v47 = vmin.f32 %v6700_v33, 0.0  ;;  %v6659_v41 = vadd.f32 %v6658_v28, %v6522_v12 }
0x1344   :  { %v6722_v38 = vmul.f32 1.442695, %v6713_v19  ;;  %v6726_v39 = vmul.f32 1.442695, %v6715_v27  ;;  %9330 = vpow2.f32 %v6724_v25  ;;  %v6702_v22 = vadd.f32 %v6701_v26, %v6530_v13 }
0x1345   :  { %v6728_v30 = vmul.f32 1.442695, %v6716_v21  ;;  %v6732_v43 = vmul.f32 1.442695, %v6718_v47  ;;  %v6717_v51 = vmin.f32 %v6659_v41, 0.0  ;;  %vm6708_vm9 = vcmp.gt.f32.partialorder %v6657_v31, 0.0 }
0x1346   :  { %9332 = vpow2.f32 %v6722_v38  ;;  %v6719_v53 = vmin.f32 %v6702_v22, 0.0  ;;  %vm6710_vm10 = vcmp.gt.f32.partialorder %v6700_v33, 0.0  ;;  %vm6709_vm15 = vcmp.gt.f32.partialorder %v6659_v41, 0.0  ;;  %v9140_v38 = vld [vmem:[%s10279_s12 + $0x38] sm:$0xff]  }
0x1347   :  { %9334 = vpow2.f32 %v6726_v39  ;;  %v6730_v32 = vmul.f32 1.442695, %v6717_v51  ;;  %vm6711_vm0 = vcmp.gt.f32.partialorder %v6702_v22, 0.0  ;;  %v9145_v51 = vld [vmem:[%s10279_s12 + $0x10] sm:$0xff]  }
0x1348   :  { %9336 = vpow2.f32 %v6728_v30  ;;  %v6734_v46 = vmul.f32 1.442695, %v6719_v53  ;;  %v9141_v30 = vld [vmem:[%s10279_s12 + $0x30] sm:$0xff]   ;;  %v9146_v53 = vld [vmem:[%s10279_s12 + $0x8] sm:$0xff]  }
0x1349   :  { %9338 = vpow2.f32 %v6732_v43  ;;  %v9144_v43 = vld [vmem:[%s10279_s12 + $0x18] sm:$0xff]  }
0x134a   :  { %9340 = vpow2.f32 %v6730_v32  ;;  %v9147_v32 = vld [vmem:[%s10279_s12] sm:$0xff]  }
0x134b   :  { %9342 = vpow2.f32 %v6734_v46  ;;  %v9148_v46 = vld [vmem:[%s10281_s14 + $0x18] sm:$0xff]  }
0x1350   :  { %v9329_v34 = vpop.eup %9328 }
0x1351   :  { %v9331_v54 = vpop.eup %9330  ;;  %v8029_v16 = vadd.f32 -1.0, %v9329_v34  ;;  %v8037_v34 = vld [vmem:[%s10278_s11] ss:$0 sm:$0xff] }
0x1352   :  { %v8031_v59 = vadd.f32 -1.0, %v9331_v54 }
0x1353   :  { %v9333_v55 = vpop.eup %9332  ;;  %v6744_v15 = vsel %vm6704_vm4, %v10183_v11, %v8029_v16  ;;  %v6797_v11 = vrot.slane %v6784_v44, %v9785_v35 }
0x1354   :  { %v9335_v57 = vpop.eup %9334  ;;  %v8030_v62 = vadd.f32 -1.0, %v9333_v55  ;;  %v6746_v40 = vsel %vm6706_vm11, %v10185_v14, %v8031_v59  ;;  %v6775_v3 = vmul.f32 %v6758_v56, %v6744_v15  ;;  %v8070_v15 = vld [vmem:[%s10280_s13] ss:$0 sm:$0xff]  ;;  %s9618_s13 = smov [#allocation21]  }
0x1355   :  { %v9337_v58 = vpop.eup %9336  ;;  %v8032_v0 = vadd.f32 -1.0, %v9335_v57  ;;  %v6777_v24 = vmul.f32 %v6766_v50, %v6746_v40 }
0x1356   :  { %v9339_v1 = vpop.eup %9338  ;;  %v8033_v42 = vadd.f32 -1.0, %v9337_v58  ;;  %v6745_v2 = vsel %vm6705_vm12, %v6655_v18, %v8030_v62 }
0x1357   :  { %v8035_v4 = vadd.f32 -1.0, %v9339_v1  ;;  %v9341_v5 = vpop.eup %9340  ;;  %v6747_v7 = vsel %vm6707_vm13, %v6698_v23, %v8032_v0  ;;  %v6776_v13 = vmul.f32 %v6762_v52, %v6745_v2  ;;  %v6808_v26 = vadd.f32 %v6797_v11, %v6777_v24  ;;  %v9149_v2 = vld [vmem:[%s10281_s14 + $0x10] sm:$0xff]  }
0x1358   :  { %v6748_v8 = vsel %vm6708_vm9, %v6657_v31, %v8033_v42  ;;  %v9343_v36 = vpop.eup %9342  ;;  %v8034_v12 = vadd.f32 -1.0, %v9341_v5  ;;  %v6778_v45 = vmul.f32 %v6770_v29, %v6747_v7  ;;  %v9151_v5 = vld [vmem:[%s10281_s14] sm:$0xff]  }
0x1359   :  { %v6779_v49 = vmul.f32 %v6758_v56, %v6748_v8  ;;  %v6750_v10 = vsel %vm6710_vm10, %v6700_v33, %v8035_v4  ;;  %v8036_v20 = vadd.f32 -1.0, %v9343_v36  ;;  %v6807_v14 = vadd.f32 %v6793_v61, %v6776_v13  ;;  %v9150_v4 = vld [vmem:[%s10281_s14 + $0x8] sm:$0xff]   ;;  %s7391_s14 = sshll.u32 %s9618_s13, 4  ;;  %s7392_s14 = int_to_ptr.vmem [resolvable:$true] %s7391_s14 }
0x135a   :  { %v6781_v17 = vmul.f32 %v6766_v50, %v6750_v10  ;;  %v6749_v18 = vsel %vm6709_vm15, %v6659_v41, %v8034_v12  ;;  %v6806_v33 = vadd.f32 %v6789_v37, %v6775_v3  ;;  %v6809_v27 = vadd.f32 %v6801_v63, %v6778_v45  ;;  %v9142_v41 = vld [vmem:[%s10279_s12 + $0x28] sm:$0xff]   ;;  %p9566_p9 = scmp.lt.s32.totalorder %s7392_s14, %s7392_s14 }
0x135b   :  { %v6780_v23 = vmul.f32 %v6762_v52, %v6749_v18  ;;  %v6751_v60 = vsel %vm6711_vm0, %v6702_v22, %v8036_v20  ;;  %v6810_v6 = vadd.f32 %v6789_v37, %v6779_v49  ;;  %v9143_v22 = vld [vmem:[%s10279_s12 + $0x20] sm:$0xff]  }
0x135c   :  { %v6782_v25 = vmul.f32 %v6770_v29, %v6751_v60  ;;  %v6812_v31 = vadd.f32 %v6797_v11, %v6781_v17 }
0x135d   :  { %v6811_v19 = vadd.f32 %v6793_v61, %v6780_v23  ;;  %v6814_v47 = vpack.c.bf16 %v6810_v6, %v6806_v33 }
0x135e   :  { %v6813_v28 = vadd.f32 %v6801_v63, %v6782_v25  ;;  %v6816_v35 = vpack.c.bf16 %v6812_v31, %v6808_v26 }
0x135f   :  { %v6815_v21 = vpack.c.bf16 %v6811_v19, %v6807_v14 }
0x1360   :  { %v6817_v39 = vpack.c.bf16 %v6813_v28, %v6809_v27 }
0x1361   :  { %7113 = vmatprep.mubr.bf16.mxu1 %v6815_v21 }
0x1362   :  { %7154 = vmatprep.mubr.bf16.mxu0 %v6817_v39  ;;  %7114 = vmatmul.mubr.bf16.vlgmr.msra.gmra.mxu1 %v6814_v47 }
0x1363   :  { %7155 = vmatmul.mubr.bf16.vlgmr.msra.gmra.mxu0 %v6816_v35  ;;  %8319 = vmatpush3.bf16.msra.mxu1 %v9140_v38 }
0x1364   :  { %8320 = vmatprep.subr.bf16.mxu1 %v9612_v9  ;;  %8334 = vmatprep.mubr.msk.bf16.mxu1 %vm9613_vm1, %v9612_v9 }
0x1365   :  { %8346 = vmatprep.mubr.msk.bf16.mxu0 %vm9613_vm1, %v9612_v9  ;;  %8339 = vmatpush3.bf16.msra.mxu0 %v9148_v46 }
0x1366   :  { %8340 = vmatprep.subr.bf16.mxu0 %v9612_v9 }
0x1367   :  { %8321 = vmatpush3.bf16.msra.mxu1 %v9141_v30 }
0x1368   :  { %8322 = vmatprep.subr.bf16.mxu1 %v9612_v9 }
0x1369   :  { %8341 = vmatpush3.bf16.msra.mxu0 %v9149_v2 }
0x136a   :  { %8342 = vmatprep.subr.bf16.mxu0 %v9612_v9 }
0x136b   :  { %8323 = vmatpush3.bf16.msra.mxu1 %v9142_v41 }
0x136c   :  { %8324 = vmatprep.subr.bf16.mxu1 %v9612_v9 }
0x136d   :  { %8343 = vmatpush3.bf16.msra.mxu0 %v9150_v4 }
0x136e   :  { %8344 = vmatprep.subr.bf16.mxu0 %v9612_v9 }
0x136f   :  { %8325 = vmatpush3.bf16.msra.mxu1 %v9143_v22 }
0x1370   :  { %8326 = vmatprep.subr.bf16.mxu1 %v9612_v9 }
0x1371   :  { %8345 = vmatpush3.bf16.msra.mxu0 %v9151_v5 }
0x1373   :  { %8327 = vmatpush3.bf16.msra.mxu1 %v9144_v43 }
0x1374   :  { %8328 = vmatprep.subr.bf16.mxu1 %v9612_v9 }
0x1377   :  { %8329 = vmatpush3.bf16.msra.mxu1 %v9145_v51 }
0x1378   :  { %8330 = vmatprep.subr.bf16.mxu1 %v9612_v9 }
0x137b   :  { %8331 = vmatpush3.bf16.msra.mxu1 %v9146_v53 }
0x137c   :  { %8332 = vmatprep.subr.bf16.mxu1 %v9612_v9  ;;  %v8079_v9 = vld [vmem:[%s10282_s15] ss:$0 sm:$0xff]  ;;  %s9561_s15 = scalar_lea.vmem %s7392_s14, 256 }
0x137d   :  { %p9562_p8 = scmp.ne.s32.totalorder %s7392_s14, %s9561_s15  ;;  %p9567_p10 = scmp.lt.s32.totalorder %s9561_s15, %s9561_s15 }
0x137f   :  { %8333 = vmatpush3.bf16.msra.mxu1 %v9147_v32  ;;  %p9568_p11 = por %p9567_p10, %p9566_p9 }
0x1381   :  { %p9569_p12 = pnand %p9568_p11, %p9562_p8 }
0x1422   :  { %v8268_v48 = vpop.f32.mrf.mxu1 }
0x1423   :  { %v8290_v44 = vpop.f32.mrf.mxu0 }
0x1424   :  { %v8269_v54 = vpop.f32.mrf.mxu1 }
0x1425   :  { %v8270_v55 = vadd.f32 %v8269_v54, %v8268_v48  ;;  %v8291_v56 = vpop.f32.mrf.mxu0 }
0x1426   :  { %v8271_v37 = vpop.f32.mrf.mxu1  ;;  %v8292_v62 = vadd.f32 %v8291_v56, %v8290_v44 }
0x1427   :  { %v7116_v50 = vadd.f32 %v8270_v55, %v8037_v34  ;;  %v8293_v57 = vpop.f32.mrf.mxu0 }
0x1428   :  { %v8272_v16 = vpop.f32.mrf.mxu1 }
0x1429   :  { %v8273_v52 = vadd.f32 %v8272_v16, %v8271_v37  ;;  %v8294_v29 = vpop.f32.mrf.mxu0  ;;  %v7157_v58 = vadd.f32 %v8292_v62, %v7116_v50 }
0x142a   :  { %v8295_v0 = vadd.f32 %v8294_v29, %v8293_v57 }
0x142b   :  { %v7119_v59 = vadd.f32 %v8273_v52, %v8037_v34  ;;  %v7163_v63 = vmax.f32 %v7157_v58, 0.0 }
0x142d   :  { %v7160_v61 = vadd.f32 %v8295_v0, %v7119_v59 }
0x142f   :  { %v7164_v1 = vmax.f32 %v7160_v61, 0.0 }
0x1431   :  { %v7165_v42 = vpack.c.bf16 %v7164_v1, %v7163_v63 }
0x1433   :  { %8335 = vmatmul.mubr.bf16.vlgmr.msra.gmra.mxu1 %v7165_v42 }
0x14f3   :  { %v7271_v7 = vpop.f32.mrf.mxu1 }
0x14f4   :  { %v7272_v36 = vadd.f32 %v8070_v15, %v7271_v7 }
0x14f5   :  { %v8336_v8 = vpop.f32.mrf.mxu1 }
0x14f6   :  { %v7278_v12 = vmax.f32 %v7272_v36, 0.0 }
0x14f7   :  { %v7274_v40 = vpop.f32.mrf.mxu1 }
0x14f8   :  { %v7275_v49 = vadd.f32 %v8070_v15, %v7274_v40 }
0x14f9   :  { %v8337_v10 = vpop.f32.mrf.mxu1 }
0x14fa   :  { %v7279_v13 = vmax.f32 %v7275_v49, 0.0 }
0x14fc   :  { %v7280_v17 = vpack.c.bf16 %v7279_v13, %v7278_v12 }
0x14fe   :  { %8347 = vmatmul.mubr.msk.bf16.vlgmr.msra.gmra.mxu0 %vm845_vm14, %v7280_v17 }
0x15be   :  { %v7357_v20 = vpop.f32.mrf.mxu0 }
0x15bf   :  { %v7358_v3 = vadd.f32 %v8079_v9, %v7357_v20 }
0x15c0   :  { %v8348_v45 = vpop.f32.mrf.mxu0 }
0x15c1   :  { %7364 = vmax.xlane.f32.xlu0 %v7358_v3 }
0x15c2   :  { %v7360_v18 = vpop.f32.mrf.mxu0 }
0x15c3   :  { %v7361_v24 = vadd.f32 %v8079_v9, %v7360_v18 }
0x15c4   :  { %v8349_v11 = vpop.f32.mrf.mxu0 }
0x15c5   :  { %7366 = vmax.xlane.f32.xlu1 %v7361_v24 }
0x164a   :  { %v7365_v23 = vpop.xlane.xlu0 %7364 }
0x164b   :  { %v7368_v60 = vsub.f32 %v7358_v3, %v7365_v23 }
0x164d   :  { %v7370_v6 = vmul.f32 1.442695, %v7368_v60 }
0x164e   :  { %v7367_v25 = vpop.xlane.xlu1 %7366 }
0x164f   :  { %9344 = vpow2.f32 %v7370_v6  ;;  %v7369_v31 = vsub.f32 %v7361_v24, %v7367_v25 }
0x1651   :  { %v7372_v14 = vmul.f32 1.442695, %v7369_v31 }
0x1653   :  { %9346 = vpow2.f32 %v7372_v14 }
0x165c   :  { %v9345_v19 = vpop.eup %9344 }
0x165d   :  { %7374 = vadd.xlane.f32.xlu0 %v9345_v19 }
0x1660   :  { %v9347_v33 = vpop.eup %9346 }
0x1661   :  { %7376 = vadd.xlane.f32.xlu0 %v9347_v33 }
0x16e6   :  { %v7375_v27 = vpop.xlane.xlu0 %7374 }
0x16e7   :  { %9348 = vlog2.f32 %v7375_v27 }
0x16ea   :  { %v7377_v28 = vpop.xlane.xlu0 %7376 }
0x16eb   :  { %9350 = vlog2.f32 %v7377_v28 }
0x16f4   :  { %v9349_v26 = vpop.eup %9348 }
0x16f5   :  { %v7379_v21 = vmul.f32 0.6931472, %v9349_v26 }
0x16f7   :  { %v7382_v38 = vsub.f32 %v7368_v60, %v7379_v21 }
0x16f8   :  { %v9351_v39 = vpop.eup %9350 }
0x16f9   :  { %v7381_v47 = vmul.f32 0.6931472, %v9351_v39  ;;  %7384 = vst [vmem:[#allocation21] sm:$0xff] %v7382_v38 }
0x16fb   :  { %v7383_v35 = vsub.f32 %v7369_v31, %v7381_v47 }
0x16fd   :  { %7385 = vst [vmem:[#allocation21 + $0x8] sm:$0xff] %v7383_v35 }
0x16fe   :  { %9572 = shalt.err (!%p9569_p12)
}
0x16ff   :  { %7397 = dma.vmem_to_hbm [thread:$0]  %s7392_s14, 256, %s10283_s16, [#allocation6], %s9597_s26, %s9597_s26, %s9598_s27  }
0x1700   :  { %9593 = dma.done.wait [#allocation6], 256  }
0x1701   :  { %9594 = vsyncadd [#allocation6], 4294967040 }
0x1702   :  { %7401 = vsyncpa [#allocation5], 1 }
0x1703   :  { %7402 = vsyncpa [#allocation8], 1 }
0x1704   :  { %7403 = vsyncpa [#allocation11], 1 }
0x1705   :  { %7404 = vsyncpa [#allocation14], 1 }
0x1706   :  { %7405 = vsyncpa [#allocation17], 1 }
0x1707   :  { %7406 = vsyncpa [#allocation20], 1 }
0x1708   :  { %7407 = vsyncpa [#allocation6], 1 }

</bundles_post_ra>
